<compile_context>
chip_gen: v5e
topology: v5e:2x2
jax: 0.10.0
libtpu: 0.0.40
codegen_flags: <defaults>
</compile_context>

<pallas_src>
import jax
import jax.numpy as jnp
from jax.experimental import pallas as pl
from jax.experimental.pallas import tpu as pltpu


def _round_up(x, m):
    return (x + m - 1) // m * m


# --------------------------- fused CaptionNet kernel ---------------------------
def _caption_lstm_kernel(x_ref, wih_ref, whh_ref, b_ref, wout_ref, bout_ref,
                         logits_ref, gx_sc, hs_sc, h_sc, c_sc):
    """Shapes (all padded):
       x_ref      [T*Bp, Ep]    time-major embeddings, flattened
       wih_ref    [Ep, 4*Hp]    gate-major (i, f, g, o)
       whh_ref    [Hp, 4*Hp]
       b_ref      [1, 4*Hp]     b_ih + b_hh
       wout_ref   [Hp, Vp]
       bout_ref   [1, Vp]
       logits_ref [T*Bp, Vp]
       gx_sc      [T, Bp, 4*Hp] scratch: precomputed x-gates
       hs_sc      [T, Bp, Hp]   scratch: hidden states
       h_sc, c_sc [Bp, Hp]      scratch: recurrent state
    """
    T, Bp, G = gx_sc.shape
    Hp = whh_ref.shape[0]

    # ---- batched input projection for ALL timesteps (one big MXU matmul) ----
    gx = jnp.dot(x_ref[...], wih_ref[...],
                 preferred_element_type=jnp.float32) + b_ref[...]
    gx_sc[...] = gx.reshape(T, Bp, G)

    h_sc[...] = jnp.zeros_like(h_sc)
    c_sc[...] = jnp.zeros_like(c_sc)

    # ---- serial recurrence: only h_prev @ W_hh + elementwise gates per step ----
    def step(t, carry):
        h_prev = h_sc[...]
        c_prev = c_sc[...]
        gates = gx_sc[t] + jnp.dot(h_prev, whh_ref[...],
                                   preferred_element_type=jnp.float32)
        # PyTorch gate order i, f, g, o; slices are lane-aligned (Hp % 128 == 0).
        i_g = jax.nn.sigmoid(gates[:, 0 * Hp:1 * Hp])
        f_g = jax.nn.sigmoid(gates[:, 1 * Hp:2 * Hp])
        g_g = jnp.tanh(gates[:, 2 * Hp:3 * Hp])
        o_g = jax.nn.sigmoid(gates[:, 3 * Hp:4 * Hp])
        c_new = f_g * c_prev + i_g * g_g
        h_new = o_g * jnp.tanh(c_new)
        c_sc[...] = c_new
        h_sc[...] = h_new
        hs_sc[t] = h_new
        return carry

    jax.lax.fori_loop(0, T, step, 0, unroll=True)

    # ---- batched output projection for ALL timesteps (one big MXU matmul) ----
    hs_flat = hs_sc[...].reshape(T * Bp, Hp)
    logits = jnp.dot(hs_flat, wout_ref[...],
                     preferred_element_type=jnp.float32) + bout_ref[...]
    logits_ref[...] = logits.astype(logits_ref.dtype)


def lstm_decoder_pallas(x_tbe_pad, wih_p, whh_p, b_p, wout_p, bout_p):
    """x_tbe_pad: [T, Bp, Ep] (padded) -> logits [T, Bp, Vp] (padded)."""
    T, Bp, Ep = x_tbe_pad.shape
    Hp = whh_p.shape[0]
    Vp = wout_p.shape[1]
    x2d = x_tbe_pad.reshape(T * Bp, Ep)

    logits2d = pl.pallas_call(
        _caption_lstm_kernel,
        out_shape=jax.ShapeDtypeStruct((T * Bp, Vp), jnp.float32),
        grid=(1,),
        in_specs=[
            pl.BlockSpec((T * Bp, Ep), lambda i: (0, 0)),
            pl.BlockSpec((Ep, 4 * Hp), lambda i: (0, 0)),
            pl.BlockSpec((Hp, 4 * Hp), lambda i: (0, 0)),
            pl.BlockSpec((1, 4 * Hp), lambda i: (0, 0)),
            pl.BlockSpec((Hp, Vp), lambda i: (0, 0)),
            pl.BlockSpec((1, Vp), lambda i: (0, 0)),
        ],
        out_specs=pl.BlockSpec((T * Bp, Vp), lambda i: (0, 0)),
        scratch_shapes=[
            pltpu.VMEM((T, Bp, 4 * Hp), jnp.float32),   # x-gates
            pltpu.VMEM((T, Bp, Hp), jnp.float32),       # hidden states
            pltpu.VMEM((Bp, Hp), jnp.float32),          # h
            pltpu.VMEM((Bp, Hp), jnp.float32),          # c
        ],
        compiler_params=pltpu.CompilerParams(
            dimension_semantics=("arbitrary",)),
        # TODO(synk): at realistic sizes (V~10-50k, H~512+) tile the vocab
        # projection over a "parallel" V grid axis (esp. for v7x's 64 MiB VMEM).
    )(x2d, wih_p, whh_p, b_p, wout_p, bout_p)
    return logits2d.reshape(T, Bp, Vp)


# --------------------------- parameter preparation -----------------------------
def prepare_kernel_params(raw):
    """Pad weights to lane/sublane-friendly shapes (gate-wise padding of H)."""
    E, fourH = raw["wih_t"].shape
    H = fourH // 4
    V = raw["out_w_t"].shape[1]
    Ep = _round_up(E, 128)
    Hp = _round_up(H, 128)
    Vp = _round_up(V, 128)

    wih = raw["wih_t"].reshape(E, 4, H)
    wih_p = jnp.zeros((Ep, 4, Hp), jnp.float32).at[:E, :, :H].set(wih)
    whh = raw["whh_t"].reshape(H, 4, H)
    whh_p = jnp.zeros((Hp, 4, Hp), jnp.float32).at[:H, :, :H].set(whh)
    b = raw["b_comb"].reshape(4, H)
    b_p = jnp.zeros((4, Hp), jnp.float32).at[:, :H].set(b)
    wout_p = jnp.zeros((Hp, Vp), jnp.float32).at[:H, :V].set(raw["out_w_t"])
    bout_p = jnp.zeros((1, Vp), jnp.float32).at[0, :V].set(raw["out_b"])

    return {
        "img_w_t": raw["img_w_t"],
        "img_b": raw["img_b"],
        "emb_table": raw["emb_table"],
        "wih_p": wih_p.reshape(Ep, 4 * Hp),
        "whh_p": whh_p.reshape(Hp, 4 * Hp),
        "b_p": b_p.reshape(1, 4 * Hp),
        "wout_p": wout_p,
        "bout_p": bout_p,
    }


# -------------------------------- full forward ---------------------------------
def caption_net_forward(kparams, image_vectors, captions_ix):
    """image_vectors: [B, cnn_feat], captions_ix: [B, S] int32 -> logits [B, S, V]."""
    # Glue in plain JAX (tiny matmul + gather + concat; XLA fuses these).
    img_emb = image_vectors @ kparams["img_w_t"] + kparams["img_b"]        # [B, E]
    cap_emb = jnp.take(kparams["emb_table"], captions_ix[:, :-1], axis=0)  # [B, S-1, E]
    emb = jnp.concatenate([img_emb[:, None, :], cap_emb], axis=1)          # [B, S, E]

    B, T, E = emb.shape
    V = kparams["emb_table"].shape[0]
    Ep = kparams["wih_p"].shape[0]
    Bp = _round_up(B, 8)

    x_tbe = jnp.transpose(emb, (1, 0, 2))                                  # [T, B, E]
    x_pad = jnp.pad(x_tbe, ((0, 0), (0, Bp - B), (0, Ep - E)))             # [T, Bp, Ep]

    logits_pad = lstm_decoder_pallas(
        x_pad, kparams["wih_p"], kparams["whh_p"], kparams["b_p"],
        kparams["wout_p"], kparams["bout_p"])                              # [T, Bp, Vp]
    return jnp.transpose(logits_pad, (1, 0, 2))[:B, :, :V]                 # [B, T, V]


# ------------------------------- JAX reference ----------------------------------
def caption_net_reference(raw, image_vectors, captions_ix):
    img_emb = image_vectors @ raw["img_w_t"] + raw["img_b"]
    cap_emb = jnp.take(raw["emb_table"], captions_ix[:, :-1], axis=0)
    emb = jnp.concatenate([img_emb[:, None, :], cap_emb], axis=1)
    B, T, E = emb.shape
    H = raw["whh_t"].shape[0]

    def step(carry, x_t):
        h, c = carry
        gates = x_t @ raw["wih_t"] + h @ raw["whh_t"] + raw["b_comb"]
        i = jax.nn.sigmoid(gates[:, 0 * H:1 * H])
        f = jax.nn.sigmoid(gates[:, 1 * H:2 * H])
        g = jnp.tanh(gates[:, 2 * H:3 * H])
        o = jax.nn.sigmoid(gates[:, 3 * H:4 * H])
        c = f * c + i * g
        h = o * jnp.tanh(c)
        return (h, c), h

    h0 = jnp.zeros((B, H), jnp.float32)
    _, hs = jax.lax.scan(step, (h0, h0), jnp.transpose(emb, (1, 0, 2)))
    hs = jnp.transpose(hs, (1, 0, 2))                                      # [B, T, H]
    return hs @ raw["out_w_t"] + raw["out_b"]


# ------------------------------------ main ---------------------------------------
if __name__ == "__main__":
    # Small, LSTM-friendly shapes consistent with the module.
    batch = 2
    cnn_feature_size = 256
    embed_size = 32
    hidden_size = 32
    vocab_size = 64
    sen_len = 8   # LSTM sequence = img + (sen_len - 1) tokens = 8 steps
    # NOTE: num_layers is fixed to 1 (reference module's (1, B, H) zero hidden state).

    key = jax.random.PRNGKey(0)
    keys = jax.random.split(key, 10)
    s = 0.1
    raw = {
        "img_w_t": s * jax.random.normal(keys[0], (cnn_feature_size, embed_size), jnp.float32),
        "img_b":   s * jax.random.normal(keys[1], (embed_size,), jnp.float32),
        "emb_table": s * jax.random.normal(keys[2], (vocab_size, embed_size), jnp.float32),
        "wih_t":  s * jax.random.normal(keys[3], (embed_size, 4 * hidden_size), jnp.float32),
        "whh_t":  s * jax.random.normal(keys[4], (hidden_size, 4 * hidden_size), jnp.float32),
        "b_comb": s * jax.random.normal(keys[5], (4 * hidden_size,), jnp.float32),  # b_ih + b_hh
        "out_w_t": s * jax.random.normal(keys[6], (hidden_size, vocab_size), jnp.float32),
        "out_b":   s * jax.random.normal(keys[7], (vocab_size,), jnp.float32),
    }

    image_vectors = jax.random.normal(keys[8], (batch, cnn_feature_size), jnp.float32)
    captions_ix = jax.random.randint(keys[9], (batch, sen_len), 0, vocab_size, jnp.int32)

    kparams = prepare_kernel_params(raw)
    fwd = jax.jit(caption_net_forward)
    logits = fwd(kparams, image_vectors, captions_ix)
    logits = jax.block_until_ready(logits)

    ref = caption_net_reference(raw, image_vectors, captions_ix)
    assert logits.shape == (batch, sen_len, vocab_size), logits.shape
    assert jnp.allclose(logits, ref, rtol=1e-4, atol=1e-4), "mismatch vs JAX reference"

    print("KERNEL_OK")
</pallas_src>

<mosaic_0001>
module attributes {stable_mosaic.version = 11 : i64} {
  func.func @_caption_lstm_kernel(%arg0: i32, %arg1: memref<64x128xf32, #tpu.memory_space<vmem>>, %arg2: memref<128x512xf32, #tpu.memory_space<vmem>>, %arg3: memref<128x512xf32, #tpu.memory_space<vmem>>, %arg4: memref<1x512xf32, #tpu.memory_space<vmem>>, %arg5: memref<128x128xf32, #tpu.memory_space<vmem>>, %arg6: memref<1x128xf32, #tpu.memory_space<vmem>>, %arg7: memref<64x128xf32, #tpu.memory_space<vmem>>, %arg8: memref<8x8x512xf32, #tpu.memory_space<vmem>>, %arg9: memref<8x8x128xf32, #tpu.memory_space<vmem>>, %arg10: memref<8x128xf32, #tpu.memory_space<vmem>>, %arg11: memref<8x128xf32, #tpu.memory_space<vmem>>) attributes {dimension_semantics = [#tpu.dimension_semantics<arbitrary>], iteration_bounds = array<i64: 1>, scalar_prefetch = 0 : i64, scratch_operands = 4 : i64, tpu.core_type = #tpu.core_type<tc>, window_params = [{pipeline_mode = #tpu.pipeline_mode<synchronous>, transform_indices = @transform_0, window_bounds = array<i64: 64, 128>}, {pipeline_mode = #tpu.pipeline_mode<synchronous>, transform_indices = @transform_1, window_bounds = array<i64: 128, 512>}, {pipeline_mode = #tpu.pipeline_mode<synchronous>, transform_indices = @transform_2, window_bounds = array<i64: 128, 512>}, {pipeline_mode = #tpu.pipeline_mode<synchronous>, transform_indices = @transform_3, window_bounds = array<i64: 1, 512>}, {pipeline_mode = #tpu.pipeline_mode<synchronous>, transform_indices = @transform_4, window_bounds = array<i64: 128, 128>}, {pipeline_mode = #tpu.pipeline_mode<synchronous>, transform_indices = @transform_5, window_bounds = array<i64: 1, 128>}, {pipeline_mode = #tpu.pipeline_mode<synchronous>, transform_indices = @transform_6, window_bounds = array<i64: 64, 128>}]} {
    %c0 = arith.constant 0 : index
    %c0_0 = arith.constant 0 : index
    %0 = vector.load %arg1[%c0, %c0_0] : memref<64x128xf32, #tpu.memory_space<vmem>>, vector<64x128xf32>
    %c0_1 = arith.constant 0 : index
    %c0_2 = arith.constant 0 : index
    %1 = vector.load %arg2[%c0_1, %c0_2] : memref<128x512xf32, #tpu.memory_space<vmem>>, vector<128x512xf32>
    %cst = arith.constant dense<0.000000e+00> : vector<64x512xf32>
    %2 = tpu.matmul %0, %1, %cst {dimension_numbers = #tpu.dot_dimension_numbers<[1], [0], [0], [1], [0, 0, 1, 1], [], []>} : vector<64x128xf32>, vector<128x512xf32>, vector<64x512xf32> -> vector<64x512xf32>
    %c0_3 = arith.constant 0 : index
    %c0_4 = arith.constant 0 : index
    %3 = vector.load %arg4[%c0_3, %c0_4] : memref<1x512xf32, #tpu.memory_space<vmem>>, vector<1x512xf32>
    %4 = vector.broadcast %3 : vector<1x512xf32> to vector<64x512xf32>
    %5 = arith.addf %2, %4 : vector<64x512xf32>
    %6 = vector.shape_cast %5 : vector<64x512xf32> to vector<8x8x512xf32>
    %c0_5 = arith.constant 0 : index
    %c0_6 = arith.constant 0 : index
    %c0_7 = arith.constant 0 : index
    %7 = vector.load %arg8[%c0_5, %c0_6, %c0_7] : memref<8x8x512xf32, #tpu.memory_space<vmem>>, vector<8x8x512xf32>
    tpu.vector_store %arg8[%c0_5, %c0_6, %c0_7], %6 {strides = array<i32>} : memref<8x8x512xf32, #tpu.memory_space<vmem>>, vector<8x8x512xf32>,
    %cst_8 = arith.constant 0.000000e+00 : f32
    %8 = vector.broadcast %cst_8 : f32 to vector<8x128xf32>
    %c0_9 = arith.constant 0 : index
    %c0_10 = arith.constant 0 : index
    %9 = vector.load %arg10[%c0_9, %c0_10] : memref<8x128xf32, #tpu.memory_space<vmem>>, vector<8x128xf32>
    tpu.vector_store %arg10[%c0_9, %c0_10], %8 {strides = array<i32>} : memref<8x128xf32, #tpu.memory_space<vmem>>, vector<8x128xf32>,
    %cst_11 = arith.constant 0.000000e+00 : f32
    %10 = vector.broadcast %cst_11 : f32 to vector<8x128xf32>
    %c0_12 = arith.constant 0 : index
    %c0_13 = arith.constant 0 : index
    %11 = vector.load %arg11[%c0_12, %c0_13] : memref<8x128xf32, #tpu.memory_space<vmem>>, vector<8x128xf32>
    tpu.vector_store %arg11[%c0_12, %c0_13], %10 {strides = array<i32>} : memref<8x128xf32, #tpu.memory_space<vmem>>, vector<8x128xf32>,
    %c0_i32 = arith.constant 0 : i32
    %c0_14 = arith.constant 0 : index
    %c0_15 = arith.constant 0 : index
    %12 = vector.load %arg10[%c0_14, %c0_15] : memref<8x128xf32, #tpu.memory_space<vmem>>, vector<8x128xf32>
    %c0_16 = arith.constant 0 : index
    %c0_17 = arith.constant 0 : index
    %13 = vector.load %arg11[%c0_16, %c0_17] : memref<8x128xf32, #tpu.memory_space<vmem>>, vector<8x128xf32>
    %14 = arith.index_cast %c0_i32 : i32 to index
    %c0_18 = arith.constant 0 : index
    %c0_19 = arith.constant 0 : index
    %15 = vector.load %arg8[%14, %c0_18, %c0_19] : memref<8x8x512xf32, #tpu.memory_space<vmem>>, vector<1x8x512xf32>
    %16 = vector.shape_cast %15 : vector<1x8x512xf32> to vector<8x512xf32>
    %c0_20 = arith.constant 0 : index
    %c0_21 = arith.constant 0 : index
    %17 = vector.load %arg3[%c0_20, %c0_21] : memref<128x512xf32, #tpu.memory_space<vmem>>, vector<128x512xf32>
    %cst_22 = arith.constant dense<0.000000e+00> : vector<8x512xf32>
    %18 = tpu.matmul %12, %17, %cst_22 {dimension_numbers = #tpu.dot_dimension_numbers<[1], [0], [0], [1], [0, 0, 1, 1], [], []>} : vector<8x128xf32>, vector<128x512xf32>, vector<8x512xf32> -> vector<8x512xf32>
    %19 = arith.addf %16, %18 : vector<8x512xf32>
    %20 = vector.extract_strided_slice %19 {offsets = [0, 0], sizes = [8, 128], strides = [1, 1]} : vector<8x512xf32> to vector<8x128xf32>
    %21 = arith.negf %20 : vector<8x128xf32>
    %22 = math.exp %21 : vector<8x128xf32>
    %cst_23 = arith.constant 1.000000e+00 : f32
    %23 = vector.broadcast %cst_23 : f32 to vector<8x128xf32>
    %24 = arith.addf %23, %22 : vector<8x128xf32>
    %25 = arith.divf %23, %24 : vector<8x128xf32>
    %26 = vector.extract_strided_slice %19 {offsets = [0, 128], sizes = [8, 128], strides = [1, 1]} : vector<8x512xf32> to vector<8x128xf32>
    %27 = arith.negf %26 : vector<8x128xf32>
    %28 = math.exp %27 : vector<8x128xf32>
    %cst_24 = arith.constant 1.000000e+00 : f32
    %29 = vector.broadcast %cst_24 : f32 to vector<8x128xf32>
    %30 = arith.addf %29, %28 : vector<8x128xf32>
    %31 = arith.divf %29, %30 : vector<8x128xf32>
    %32 = vector.extract_strided_slice %19 {offsets = [0, 256], sizes = [8, 128], strides = [1, 1]} : vector<8x512xf32> to vector<8x128xf32>
    %33 = math.tanh %32 : vector<8x128xf32>
    %34 = vector.extract_strided_slice %19 {offsets = [0, 384], sizes = [8, 128], strides = [1, 1]} : vector<8x512xf32> to vector<8x128xf32>
    %35 = arith.negf %34 : vector<8x128xf32>
    %36 = math.exp %35 : vector<8x128xf32>
    %cst_25 = arith.constant 1.000000e+00 : f32
    %37 = vector.broadcast %cst_25 : f32 to vector<8x128xf32>
    %38 = arith.addf %37, %36 : vector<8x128xf32>
    %39 = arith.divf %37, %38 : vector<8x128xf32>
    %40 = arith.mulf %31, %13 : vector<8x128xf32>
    %41 = arith.mulf %25, %33 : vector<8x128xf32>
    %42 = arith.addf %40, %41 : vector<8x128xf32>
    %43 = math.tanh %42 : vector<8x128xf32>
    %44 = arith.mulf %39, %43 : vector<8x128xf32>
    %c0_26 = arith.constant 0 : index
    %c0_27 = arith.constant 0 : index
    %45 = vector.load %arg11[%c0_26, %c0_27] : memref<8x128xf32, #tpu.memory_space<vmem>>, vector<8x128xf32>
    tpu.vector_store %arg11[%c0_26, %c0_27], %42 {strides = array<i32>} : memref<8x128xf32, #tpu.memory_space<vmem>>, vector<8x128xf32>,
    %c0_28 = arith.constant 0 : index
    %c0_29 = arith.constant 0 : index
    %46 = vector.load %arg10[%c0_28, %c0_29] : memref<8x128xf32, #tpu.memory_space<vmem>>, vector<8x128xf32>
    tpu.vector_store %arg10[%c0_28, %c0_29], %44 {strides = array<i32>} : memref<8x128xf32, #tpu.memory_space<vmem>>, vector<8x128xf32>,
    %47 = arith.index_cast %c0_i32 : i32 to index
    %c0_30 = arith.constant 0 : index
    %c0_31 = arith.constant 0 : index
    %48 = vector.load %arg9[%47, %c0_30, %c0_31] : memref<8x8x128xf32, #tpu.memory_space<vmem>>, vector<1x8x128xf32>
    %49 = vector.shape_cast %48 : vector<1x8x128xf32> to vector<8x128xf32>
    %50 = vector.shape_cast %44 : vector<8x128xf32> to vector<1x8x128xf32>
    tpu.vector_store %arg9[%47, %c0_30, %c0_31], %50 {strides = array<i32>} : memref<8x8x128xf32, #tpu.memory_space<vmem>>, vector<1x8x128xf32>,
    %c1_i32 = arith.constant 1 : i32
    %c0_32 = arith.constant 0 : index
    %c0_33 = arith.constant 0 : index
    %51 = vector.load %arg10[%c0_32, %c0_33] : memref<8x128xf32, #tpu.memory_space<vmem>>, vector<8x128xf32>
    %c0_34 = arith.constant 0 : index
    %c0_35 = arith.constant 0 : index
    %52 = vector.load %arg11[%c0_34, %c0_35] : memref<8x128xf32, #tpu.memory_space<vmem>>, vector<8x128xf32>
    %53 = arith.index_cast %c1_i32 : i32 to index
    %c0_36 = arith.constant 0 : index
    %c0_37 = arith.constant 0 : index
    %54 = vector.load %arg8[%53, %c0_36, %c0_37] : memref<8x8x512xf32, #tpu.memory_space<vmem>>, vector<1x8x512xf32>
    %55 = vector.shape_cast %54 : vector<1x8x512xf32> to vector<8x512xf32>
    %c0_38 = arith.constant 0 : index
    %c0_39 = arith.constant 0 : index
    %56 = vector.load %arg3[%c0_38, %c0_39] : memref<128x512xf32, #tpu.memory_space<vmem>>, vector<128x512xf32>
    %cst_40 = arith.constant dense<0.000000e+00> : vector<8x512xf32>
    %57 = tpu.matmul %51, %56, %cst_40 {dimension_numbers = #tpu.dot_dimension_numbers<[1], [0], [0], [1], [0, 0, 1, 1], [], []>} : vector<8x128xf32>, vector<128x512xf32>, vector<8x512xf32> -> vector<8x512xf32>
    %58 = arith.addf %55, %57 : vector<8x512xf32>
    %59 = vector.extract_strided_slice %58 {offsets = [0, 0], sizes = [8, 128], strides = [1, 1]} : vector<8x512xf32> to vector<8x128xf32>
    %60 = arith.negf %59 : vector<8x128xf32>
    %61 = math.exp %60 : vector<8x128xf32>
    %cst_41 = arith.constant 1.000000e+00 : f32
    %62 = vector.broadcast %cst_41 : f32 to vector<8x128xf32>
    %63 = arith.addf %62, %61 : vector<8x128xf32>
    %64 = arith.divf %62, %63 : vector<8x128xf32>
    %65 = vector.extract_strided_slice %58 {offsets = [0, 128], sizes = [8, 128], strides = [1, 1]} : vector<8x512xf32> to vector<8x128xf32>
    %66 = arith.negf %65 : vector<8x128xf32>
    %67 = math.exp %66 : vector<8x128xf32>
    %cst_42 = arith.constant 1.000000e+00 : f32
    %68 = vector.broadcast %cst_42 : f32 to vector<8x128xf32>
    %69 = arith.addf %68, %67 : vector<8x128xf32>
    %70 = arith.divf %68, %69 : vector<8x128xf32>
    %71 = vector.extract_strided_slice %58 {offsets = [0, 256], sizes = [8, 128], strides = [1, 1]} : vector<8x512xf32> to vector<8x128xf32>
    %72 = math.tanh %71 : vector<8x128xf32>
    %73 = vector.extract_strided_slice %58 {offsets = [0, 384], sizes = [8, 128], strides = [1, 1]} : vector<8x512xf32> to vector<8x128xf32>
    %74 = arith.negf %73 : vector<8x128xf32>
    %75 = math.exp %74 : vector<8x128xf32>
    %cst_43 = arith.constant 1.000000e+00 : f32
    %76 = vector.broadcast %cst_43 : f32 to vector<8x128xf32>
    %77 = arith.addf %76, %75 : vector<8x128xf32>
    %78 = arith.divf %76, %77 : vector<8x128xf32>
    %79 = arith.mulf %70, %52 : vector<8x128xf32>
    %80 = arith.mulf %64, %72 : vector<8x128xf32>
    %81 = arith.addf %79, %80 : vector<8x128xf32>
    %82 = math.tanh %81 : vector<8x128xf32>
    %83 = arith.mulf %78, %82 : vector<8x128xf32>
    %c0_44 = arith.constant 0 : index
    %c0_45 = arith.constant 0 : index
    %84 = vector.load %arg11[%c0_44, %c0_45] : memref<8x128xf32, #tpu.memory_space<vmem>>, vector<8x128xf32>
    tpu.vector_store %arg11[%c0_44, %c0_45], %81 {strides = array<i32>} : memref<8x128xf32, #tpu.memory_space<vmem>>, vector<8x128xf32>,
    %c0_46 = arith.constant 0 : index
    %c0_47 = arith.constant 0 : index
    %85 = vector.load %arg10[%c0_46, %c0_47] : memref<8x128xf32, #tpu.memory_space<vmem>>, vector<8x128xf32>
    tpu.vector_store %arg10[%c0_46, %c0_47], %83 {strides = array<i32>} : memref<8x128xf32, #tpu.memory_space<vmem>>, vector<8x128xf32>,
    %86 = arith.index_cast %c1_i32 : i32 to index
    %c0_48 = arith.constant 0 : index
    %c0_49 = arith.constant 0 : index
    %87 = vector.load %arg9[%86, %c0_48, %c0_49] : memref<8x8x128xf32, #tpu.memory_space<vmem>>, vector<1x8x128xf32>
    %88 = vector.shape_cast %87 : vector<1x8x128xf32> to vector<8x128xf32>
    %89 = vector.shape_cast %83 : vector<8x128xf32> to vector<1x8x128xf32>
    tpu.vector_store %arg9[%86, %c0_48, %c0_49], %89 {strides = array<i32>} : memref<8x8x128xf32, #tpu.memory_space<vmem>>, vector<1x8x128xf32>,
    %c2_i32 = arith.constant 2 : i32
    %c0_50 = arith.constant 0 : index
    %c0_51 = arith.constant 0 : index
    %90 = vector.load %arg10[%c0_50, %c0_51] : memref<8x128xf32, #tpu.memory_space<vmem>>, vector<8x128xf32>
    %c0_52 = arith.constant 0 : index
    %c0_53 = arith.constant 0 : index
    %91 = vector.load %arg11[%c0_52, %c0_53] : memref<8x128xf32, #tpu.memory_space<vmem>>, vector<8x128xf32>
    %92 = arith.index_cast %c2_i32 : i32 to index
    %c0_54 = arith.constant 0 : index
    %c0_55 = arith.constant 0 : index
    %93 = vector.load %arg8[%92, %c0_54, %c0_55] : memref<8x8x512xf32, #tpu.memory_space<vmem>>, vector<1x8x512xf32>
    %94 = vector.shape_cast %93 : vector<1x8x512xf32> to vector<8x512xf32>
    %c0_56 = arith.constant 0 : index
    %c0_57 = arith.constant 0 : index
    %95 = vector.load %arg3[%c0_56, %c0_57] : memref<128x512xf32, #tpu.memory_space<vmem>>, vector<128x512xf32>
    %cst_58 = arith.constant dense<0.000000e+00> : vector<8x512xf32>
    %96 = tpu.matmul %90, %95, %cst_58 {dimension_numbers = #tpu.dot_dimension_numbers<[1], [0], [0], [1], [0, 0, 1, 1], [], []>} : vector<8x128xf32>, vector<128x512xf32>, vector<8x512xf32> -> vector<8x512xf32>
    %97 = arith.addf %94, %96 : vector<8x512xf32>
    %98 = vector.extract_strided_slice %97 {offsets = [0, 0], sizes = [8, 128], strides = [1, 1]} : vector<8x512xf32> to vector<8x128xf32>
    %99 = arith.negf %98 : vector<8x128xf32>
    %100 = math.exp %99 : vector<8x128xf32>
    %cst_59 = arith.constant 1.000000e+00 : f32
    %101 = vector.broadcast %cst_59 : f32 to vector<8x128xf32>
    %102 = arith.addf %101, %100 : vector<8x128xf32>
    %103 = arith.divf %101, %102 : vector<8x128xf32>
    %104 = vector.extract_strided_slice %97 {offsets = [0, 128], sizes = [8, 128], strides = [1, 1]} : vector<8x512xf32> to vector<8x128xf32>
    %105 = arith.negf %104 : vector<8x128xf32>
    %106 = math.exp %105 : vector<8x128xf32>
    %cst_60 = arith.constant 1.000000e+00 : f32
    %107 = vector.broadcast %cst_60 : f32 to vector<8x128xf32>
    %108 = arith.addf %107, %106 : vector<8x128xf32>
    %109 = arith.divf %107, %108 : vector<8x128xf32>
    %110 = vector.extract_strided_slice %97 {offsets = [0, 256], sizes = [8, 128], strides = [1, 1]} : vector<8x512xf32> to vector<8x128xf32>
    %111 = math.tanh %110 : vector<8x128xf32>
    %112 = vector.extract_strided_slice %97 {offsets = [0, 384], sizes = [8, 128], strides = [1, 1]} : vector<8x512xf32> to vector<8x128xf32>
    %113 = arith.negf %112 : vector<8x128xf32>
    %114 = math.exp %113 : vector<8x128xf32>
    %cst_61 = arith.constant 1.000000e+00 : f32
    %115 = vector.broadcast %cst_61 : f32 to vector<8x128xf32>
    %116 = arith.addf %115, %114 : vector<8x128xf32>
    %117 = arith.divf %115, %116 : vector<8x128xf32>
    %118 = arith.mulf %109, %91 : vector<8x128xf32>
    %119 = arith.mulf %103, %111 : vector<8x128xf32>
    %120 = arith.addf %118, %119 : vector<8x128xf32>
    %121 = math.tanh %120 : vector<8x128xf32>
    %122 = arith.mulf %117, %121 : vector<8x128xf32>
    %c0_62 = arith.constant 0 : index
    %c0_63 = arith.constant 0 : index
    %123 = vector.load %arg11[%c0_62, %c0_63] : memref<8x128xf32, #tpu.memory_space<vmem>>, vector<8x128xf32>
    tpu.vector_store %arg11[%c0_62, %c0_63], %120 {strides = array<i32>} : memref<8x128xf32, #tpu.memory_space<vmem>>, vector<8x128xf32>,
    %c0_64 = arith.constant 0 : index
    %c0_65 = arith.constant 0 : index
    %124 = vector.load %arg10[%c0_64, %c0_65] : memref<8x128xf32, #tpu.memory_space<vmem>>, vector<8x128xf32>
    tpu.vector_store %arg10[%c0_64, %c0_65], %122 {strides = array<i32>} : memref<8x128xf32, #tpu.memory_space<vmem>>, vector<8x128xf32>,
    %125 = arith.index_cast %c2_i32 : i32 to index
    %c0_66 = arith.constant 0 : index
    %c0_67 = arith.constant 0 : index
    %126 = vector.load %arg9[%125, %c0_66, %c0_67] : memref<8x8x128xf32, #tpu.memory_space<vmem>>, vector<1x8x128xf32>
    %127 = vector.shape_cast %126 : vector<1x8x128xf32> to vector<8x128xf32>
    %128 = vector.shape_cast %122 : vector<8x128xf32> to vector<1x8x128xf32>
    tpu.vector_store %arg9[%125, %c0_66, %c0_67], %128 {strides = array<i32>} : memref<8x8x128xf32, #tpu.memory_space<vmem>>, vector<1x8x128xf32>,
    %c3_i32 = arith.constant 3 : i32
    %c0_68 = arith.constant 0 : index
    %c0_69 = arith.constant 0 : index
    %129 = vector.load %arg10[%c0_68, %c0_69] : memref<8x128xf32, #tpu.memory_space<vmem>>, vector<8x128xf32>
    %c0_70 = arith.constant 0 : index
    %c0_71 = arith.constant 0 : index
    %130 = vector.load %arg11[%c0_70, %c0_71] : memref<8x128xf32, #tpu.memory_space<vmem>>, vector<8x128xf32>
    %131 = arith.index_cast %c3_i32 : i32 to index
    %c0_72 = arith.constant 0 : index
    %c0_73 = arith.constant 0 : index
    %132 = vector.load %arg8[%131, %c0_72, %c0_73] : memref<8x8x512xf32, #tpu.memory_space<vmem>>, vector<1x8x512xf32>
    %133 = vector.shape_cast %132 : vector<1x8x512xf32> to vector<8x512xf32>
    %c0_74 = arith.constant 0 : index
    %c0_75 = arith.constant 0 : index
    %134 = vector.load %arg3[%c0_74, %c0_75] : memref<128x512xf32, #tpu.memory_space<vmem>>, vector<128x512xf32>
    %cst_76 = arith.constant dense<0.000000e+00> : vector<8x512xf32>
    %135 = tpu.matmul %129, %134, %cst_76 {dimension_numbers = #tpu.dot_dimension_numbers<[1], [0], [0], [1], [0, 0, 1, 1], [], []>} : vector<8x128xf32>, vector<128x512xf32>, vector<8x512xf32> -> vector<8x512xf32>
    %136 = arith.addf %133, %135 : vector<8x512xf32>
    %137 = vector.extract_strided_slice %136 {offsets = [0, 0], sizes = [8, 128], strides = [1, 1]} : vector<8x512xf32> to vector<8x128xf32>
    %138 = arith.negf %137 : vector<8x128xf32>
    %139 = math.exp %138 : vector<8x128xf32>
    %cst_77 = arith.constant 1.000000e+00 : f32
    %140 = vector.broadcast %cst_77 : f32 to vector<8x128xf32>
    %141 = arith.addf %140, %139 : vector<8x128xf32>
    %142 = arith.divf %140, %141 : vector<8x128xf32>
    %143 = vector.extract_strided_slice %136 {offsets = [0, 128], sizes = [8, 128], strides = [1, 1]} : vector<8x512xf32> to vector<8x128xf32>
    %144 = arith.negf %143 : vector<8x128xf32>
    %145 = math.exp %144 : vector<8x128xf32>
    %cst_78 = arith.constant 1.000000e+00 : f32
    %146 = vector.broadcast %cst_78 : f32 to vector<8x128xf32>
    %147 = arith.addf %146, %145 : vector<8x128xf32>
    %148 = arith.divf %146, %147 : vector<8x128xf32>
    %149 = vector.extract_strided_slice %136 {offsets = [0, 256], sizes = [8, 128], strides = [1, 1]} : vector<8x512xf32> to vector<8x128xf32>
    %150 = math.tanh %149 : vector<8x128xf32>
    %151 = vector.extract_strided_slice %136 {offsets = [0, 384], sizes = [8, 128], strides = [1, 1]} : vector<8x512xf32> to vector<8x128xf32>
    %152 = arith.negf %151 : vector<8x128xf32>
    %153 = math.exp %152 : vector<8x128xf32>
    %cst_79 = arith.constant 1.000000e+00 : f32
    %154 = vector.broadcast %cst_79 : f32 to vector<8x128xf32>
    %155 = arith.addf %154, %153 : vector<8x128xf32>
    %156 = arith.divf %154, %155 : vector<8x128xf32>
    %157 = arith.mulf %148, %130 : vector<8x128xf32>
    %158 = arith.mulf %142, %150 : vector<8x128xf32>
    %159 = arith.addf %157, %158 : vector<8x128xf32>
    %160 = math.tanh %159 : vector<8x128xf32>
    %161 = arith.mulf %156, %160 : vector<8x128xf32>
    %c0_80 = arith.constant 0 : index
    %c0_81 = arith.constant 0 : index
    %162 = vector.load %arg11[%c0_80, %c0_81] : memref<8x128xf32, #tpu.memory_space<vmem>>, vector<8x128xf32>
    tpu.vector_store %arg11[%c0_80, %c0_81], %159 {strides = array<i32>} : memref<8x128xf32, #tpu.memory_space<vmem>>, vector<8x128xf32>,
    %c0_82 = arith.constant 0 : index
    %c0_83 = arith.constant 0 : index
    %163 = vector.load %arg10[%c0_82, %c0_83] : memref<8x128xf32, #tpu.memory_space<vmem>>, vector<8x128xf32>
    tpu.vector_store %arg10[%c0_82, %c0_83], %161 {strides = array<i32>} : memref<8x128xf32, #tpu.memory_space<vmem>>, vector<8x128xf32>,
    %164 = arith.index_cast %c3_i32 : i32 to index
    %c0_84 = arith.constant 0 : index
    %c0_85 = arith.constant 0 : index
    %165 = vector.load %arg9[%164, %c0_84, %c0_85] : memref<8x8x128xf32, #tpu.memory_space<vmem>>, vector<1x8x128xf32>
    %166 = vector.shape_cast %165 : vector<1x8x128xf32> to vector<8x128xf32>
    %167 = vector.shape_cast %161 : vector<8x128xf32> to vector<1x8x128xf32>
    tpu.vector_store %arg9[%164, %c0_84, %c0_85], %167 {strides = array<i32>} : memref<8x8x128xf32, #tpu.memory_space<vmem>>, vector<1x8x128xf32>,
    %c4_i32 = arith.constant 4 : i32
    %c0_86 = arith.constant 0 : index
    %c0_87 = arith.constant 0 : index
    %168 = vector.load %arg10[%c0_86, %c0_87] : memref<8x128xf32, #tpu.memory_space<vmem>>, vector<8x128xf32>
    %c0_88 = arith.constant 0 : index
    %c0_89 = arith.constant 0 : index
    %169 = vector.load %arg11[%c0_88, %c0_89] : memref<8x128xf32, #tpu.memory_space<vmem>>, vector<8x128xf32>
    %170 = arith.index_cast %c4_i32 : i32 to index
    %c0_90 = arith.constant 0 : index
    %c0_91 = arith.constant 0 : index
    %171 = vector.load %arg8[%170, %c0_90, %c0_91] : memref<8x8x512xf32, #tpu.memory_space<vmem>>, vector<1x8x512xf32>
    %172 = vector.shape_cast %171 : vector<1x8x512xf32> to vector<8x512xf32>
    %c0_92 = arith.constant 0 : index
    %c0_93 = arith.constant 0 : index
    %173 = vector.load %arg3[%c0_92, %c0_93] : memref<128x512xf32, #tpu.memory_space<vmem>>, vector<128x512xf32>
    %cst_94 = arith.constant dense<0.000000e+00> : vector<8x512xf32>
    %174 = tpu.matmul %168, %173, %cst_94 {dimension_numbers = #tpu.dot_dimension_numbers<[1], [0], [0], [1], [0, 0, 1, 1], [], []>} : vector<8x128xf32>, vector<128x512xf32>, vector<8x512xf32> -> vector<8x512xf32>
    %175 = arith.addf %172, %174 : vector<8x512xf32>
    %176 = vector.extract_strided_slice %175 {offsets = [0, 0], sizes = [8, 128], strides = [1, 1]} : vector<8x512xf32> to vector<8x128xf32>
    %177 = arith.negf %176 : vector<8x128xf32>
    %178 = math.exp %177 : vector<8x128xf32>
    %cst_95 = arith.constant 1.000000e+00 : f32
    %179 = vector.broadcast %cst_95 : f32 to vector<8x128xf32>
    %180 = arith.addf %179, %178 : vector<8x128xf32>
    %181 = arith.divf %179, %180 : vector<8x128xf32>
    %182 = vector.extract_strided_slice %175 {offsets = [0, 128], sizes = [8, 128], strides = [1, 1]} : vector<8x512xf32> to vector<8x128xf32>
    %183 = arith.negf %182 : vector<8x128xf32>
    %184 = math.exp %183 : vector<8x128xf32>
    %cst_96 = arith.constant 1.000000e+00 : f32
    %185 = vector.broadcast %cst_96 : f32 to vector<8x128xf32>
    %186 = arith.addf %185, %184 : vector<8x128xf32>
    %187 = arith.divf %185, %186 : vector<8x128xf32>
    %188 = vector.extract_strided_slice %175 {offsets = [0, 256], sizes = [8, 128], strides = [1, 1]} : vector<8x512xf32> to vector<8x128xf32>
    %189 = math.tanh %188 : vector<8x128xf32>
    %190 = vector.extract_strided_slice %175 {offsets = [0, 384], sizes = [8, 128], strides = [1, 1]} : vector<8x512xf32> to vector<8x128xf32>
    %191 = arith.negf %190 : vector<8x128xf32>
    %192 = math.exp %191 : vector<8x128xf32>
    %cst_97 = arith.constant 1.000000e+00 : f32
    %193 = vector.broadcast %cst_97 : f32 to vector<8x128xf32>
    %194 = arith.addf %193, %192 : vector<8x128xf32>
    %195 = arith.divf %193, %194 : vector<8x128xf32>
    %196 = arith.mulf %187, %169 : vector<8x128xf32>
    %197 = arith.mulf %181, %189 : vector<8x128xf32>
    %198 = arith.addf %196, %197 : vector<8x128xf32>
    %199 = math.tanh %198 : vector<8x128xf32>
    %200 = arith.mulf %195, %199 : vector<8x128xf32>
    %c0_98 = arith.constant 0 : index
    %c0_99 = arith.constant 0 : index
    %201 = vector.load %arg11[%c0_98, %c0_99] : memref<8x128xf32, #tpu.memory_space<vmem>>, vector<8x128xf32>
    tpu.vector_store %arg11[%c0_98, %c0_99], %198 {strides = array<i32>} : memref<8x128xf32, #tpu.memory_space<vmem>>, vector<8x128xf32>,
    %c0_100 = arith.constant 0 : index
    %c0_101 = arith.constant 0 : index
    %202 = vector.load %arg10[%c0_100, %c0_101] : memref<8x128xf32, #tpu.memory_space<vmem>>, vector<8x128xf32>
    tpu.vector_store %arg10[%c0_100, %c0_101], %200 {strides = array<i32>} : memref<8x128xf32, #tpu.memory_space<vmem>>, vector<8x128xf32>,
    %203 = arith.index_cast %c4_i32 : i32 to index
    %c0_102 = arith.constant 0 : index
    %c0_103 = arith.constant 0 : index
    %204 = vector.load %arg9[%203, %c0_102, %c0_103] : memref<8x8x128xf32, #tpu.memory_space<vmem>>, vector<1x8x128xf32>
    %205 = vector.shape_cast %204 : vector<1x8x128xf32> to vector<8x128xf32>
    %206 = vector.shape_cast %200 : vector<8x128xf32> to vector<1x8x128xf32>
    tpu.vector_store %arg9[%203, %c0_102, %c0_103], %206 {strides = array<i32>} : memref<8x8x128xf32, #tpu.memory_space<vmem>>, vector<1x8x128xf32>,
    %c5_i32 = arith.constant 5 : i32
    %c0_104 = arith.constant 0 : index
    %c0_105 = arith.constant 0 : index
    %207 = vector.load %arg10[%c0_104, %c0_105] : memref<8x128xf32, #tpu.memory_space<vmem>>, vector<8x128xf32>
    %c0_106 = arith.constant 0 : index
    %c0_107 = arith.constant 0 : index
    %208 = vector.load %arg11[%c0_106, %c0_107] : memref<8x128xf32, #tpu.memory_space<vmem>>, vector<8x128xf32>
    %209 = arith.index_cast %c5_i32 : i32 to index
    %c0_108 = arith.constant 0 : index
    %c0_109 = arith.constant 0 : index
    %210 = vector.load %arg8[%209, %c0_108, %c0_109] : memref<8x8x512xf32, #tpu.memory_space<vmem>>, vector<1x8x512xf32>
    %211 = vector.shape_cast %210 : vector<1x8x512xf32> to vector<8x512xf32>
    %c0_110 = arith.constant 0 : index
    %c0_111 = arith.constant 0 : index
    %212 = vector.load %arg3[%c0_110, %c0_111] : memref<128x512xf32, #tpu.memory_space<vmem>>, vector<128x512xf32>
    %cst_112 = arith.constant dense<0.000000e+00> : vector<8x512xf32>
    %213 = tpu.matmul %207, %212, %cst_112 {dimension_numbers = #tpu.dot_dimension_numbers<[1], [0], [0], [1], [0, 0, 1, 1], [], []>} : vector<8x128xf32>, vector<128x512xf32>, vector<8x512xf32> -> vector<8x512xf32>
    %214 = arith.addf %211, %213 : vector<8x512xf32>
    %215 = vector.extract_strided_slice %214 {offsets = [0, 0], sizes = [8, 128], strides = [1, 1]} : vector<8x512xf32> to vector<8x128xf32>
    %216 = arith.negf %215 : vector<8x128xf32>
    %217 = math.exp %216 : vector<8x128xf32>
    %cst_113 = arith.constant 1.000000e+00 : f32
    %218 = vector.broadcast %cst_113 : f32 to vector<8x128xf32>
    %219 = arith.addf %218, %217 : vector<8x128xf32>
    %220 = arith.divf %218, %219 : vector<8x128xf32>
    %221 = vector.extract_strided_slice %214 {offsets = [0, 128], sizes = [8, 128], strides = [1, 1]} : vector<8x512xf32> to vector<8x128xf32>
    %222 = arith.negf %221 : vector<8x128xf32>
    %223 = math.exp %222 : vector<8x128xf32>
    %cst_114 = arith.constant 1.000000e+00 : f32
    %224 = vector.broadcast %cst_114 : f32 to vector<8x128xf32>
    %225 = arith.addf %224, %223 : vector<8x128xf32>
    %226 = arith.divf %224, %225 : vector<8x128xf32>
    %227 = vector.extract_strided_slice %214 {offsets = [0, 256], sizes = [8, 128], strides = [1, 1]} : vector<8x512xf32> to vector<8x128xf32>
    %228 = math.tanh %227 : vector<8x128xf32>
    %229 = vector.extract_strided_slice %214 {offsets = [0, 384], sizes = [8, 128], strides = [1, 1]} : vector<8x512xf32> to vector<8x128xf32>
    %230 = arith.negf %229 : vector<8x128xf32>
    %231 = math.exp %230 : vector<8x128xf32>
    %cst_115 = arith.constant 1.000000e+00 : f32
    %232 = vector.broadcast %cst_115 : f32 to vector<8x128xf32>
    %233 = arith.addf %232, %231 : vector<8x128xf32>
    %234 = arith.divf %232, %233 : vector<8x128xf32>
    %235 = arith.mulf %226, %208 : vector<8x128xf32>
    %236 = arith.mulf %220, %228 : vector<8x128xf32>
    %237 = arith.addf %235, %236 : vector<8x128xf32>
    %238 = math.tanh %237 : vector<8x128xf32>
    %239 = arith.mulf %234, %238 : vector<8x128xf32>
    %c0_116 = arith.constant 0 : index
    %c0_117 = arith.constant 0 : index
    %240 = vector.load %arg11[%c0_116, %c0_117] : memref<8x128xf32, #tpu.memory_space<vmem>>, vector<8x128xf32>
    tpu.vector_store %arg11[%c0_116, %c0_117], %237 {strides = array<i32>} : memref<8x128xf32, #tpu.memory_space<vmem>>, vector<8x128xf32>,
    %c0_118 = arith.constant 0 : index
    %c0_119 = arith.constant 0 : index
    %241 = vector.load %arg10[%c0_118, %c0_119] : memref<8x128xf32, #tpu.memory_space<vmem>>, vector<8x128xf32>
    tpu.vector_store %arg10[%c0_118, %c0_119], %239 {strides = array<i32>} : memref<8x128xf32, #tpu.memory_space<vmem>>, vector<8x128xf32>,
    %242 = arith.index_cast %c5_i32 : i32 to index
    %c0_120 = arith.constant 0 : index
    %c0_121 = arith.constant 0 : index
    %243 = vector.load %arg9[%242, %c0_120, %c0_121] : memref<8x8x128xf32, #tpu.memory_space<vmem>>, vector<1x8x128xf32>
    %244 = vector.shape_cast %243 : vector<1x8x128xf32> to vector<8x128xf32>
    %245 = vector.shape_cast %239 : vector<8x128xf32> to vector<1x8x128xf32>
    tpu.vector_store %arg9[%242, %c0_120, %c0_121], %245 {strides = array<i32>} : memref<8x8x128xf32, #tpu.memory_space<vmem>>, vector<1x8x128xf32>,
    %c6_i32 = arith.constant 6 : i32
    %c0_122 = arith.constant 0 : index
    %c0_123 = arith.constant 0 : index
    %246 = vector.load %arg10[%c0_122, %c0_123] : memref<8x128xf32, #tpu.memory_space<vmem>>, vector<8x128xf32>
    %c0_124 = arith.constant 0 : index
    %c0_125 = arith.constant 0 : index
    %247 = vector.load %arg11[%c0_124, %c0_125] : memref<8x128xf32, #tpu.memory_space<vmem>>, vector<8x128xf32>
    %248 = arith.index_cast %c6_i32 : i32 to index
    %c0_126 = arith.constant 0 : index
    %c0_127 = arith.constant 0 : index
    %249 = vector.load %arg8[%248, %c0_126, %c0_127] : memref<8x8x512xf32, #tpu.memory_space<vmem>>, vector<1x8x512xf32>
    %250 = vector.shape_cast %249 : vector<1x8x512xf32> to vector<8x512xf32>
    %c0_128 = arith.constant 0 : index
    %c0_129 = arith.constant 0 : index
    %251 = vector.load %arg3[%c0_128, %c0_129] : memref<128x512xf32, #tpu.memory_space<vmem>>, vector<128x512xf32>
    %cst_130 = arith.constant dense<0.000000e+00> : vector<8x512xf32>
    %252 = tpu.matmul %246, %251, %cst_130 {dimension_numbers = #tpu.dot_dimension_numbers<[1], [0], [0], [1], [0, 0, 1, 1], [], []>} : vector<8x128xf32>, vector<128x512xf32>, vector<8x512xf32> -> vector<8x512xf32>
    %253 = arith.addf %250, %252 : vector<8x512xf32>
    %254 = vector.extract_strided_slice %253 {offsets = [0, 0], sizes = [8, 128], strides = [1, 1]} : vector<8x512xf32> to vector<8x128xf32>
    %255 = arith.negf %254 : vector<8x128xf32>
    %256 = math.exp %255 : vector<8x128xf32>
    %cst_131 = arith.constant 1.000000e+00 : f32
    %257 = vector.broadcast %cst_131 : f32 to vector<8x128xf32>
    %258 = arith.addf %257, %256 : vector<8x128xf32>
    %259 = arith.divf %257, %258 : vector<8x128xf32>
    %260 = vector.extract_strided_slice %253 {offsets = [0, 128], sizes = [8, 128], strides = [1, 1]} : vector<8x512xf32> to vector<8x128xf32>
    %261 = arith.negf %260 : vector<8x128xf32>
    %262 = math.exp %261 : vector<8x128xf32>
    %cst_132 = arith.constant 1.000000e+00 : f32
    %263 = vector.broadcast %cst_132 : f32 to vector<8x128xf32>
    %264 = arith.addf %263, %262 : vector<8x128xf32>
    %265 = arith.divf %263, %264 : vector<8x128xf32>
    %266 = vector.extract_strided_slice %253 {offsets = [0, 256], sizes = [8, 128], strides = [1, 1]} : vector<8x512xf32> to vector<8x128xf32>
    %267 = math.tanh %266 : vector<8x128xf32>
    %268 = vector.extract_strided_slice %253 {offsets = [0, 384], sizes = [8, 128], strides = [1, 1]} : vector<8x512xf32> to vector<8x128xf32>
    %269 = arith.negf %268 : vector<8x128xf32>
    %270 = math.exp %269 : vector<8x128xf32>
    %cst_133 = arith.constant 1.000000e+00 : f32
    %271 = vector.broadcast %cst_133 : f32 to vector<8x128xf32>
    %272 = arith.addf %271, %270 : vector<8x128xf32>
    %273 = arith.divf %271, %272 : vector<8x128xf32>
    %274 = arith.mulf %265, %247 : vector<8x128xf32>
    %275 = arith.mulf %259, %267 : vector<8x128xf32>
    %276 = arith.addf %274, %275 : vector<8x128xf32>
    %277 = math.tanh %276 : vector<8x128xf32>
    %278 = arith.mulf %273, %277 : vector<8x128xf32>
    %c0_134 = arith.constant 0 : index
    %c0_135 = arith.constant 0 : index
    %279 = vector.load %arg11[%c0_134, %c0_135] : memref<8x128xf32, #tpu.memory_space<vmem>>, vector<8x128xf32>
    tpu.vector_store %arg11[%c0_134, %c0_135], %276 {strides = array<i32>} : memref<8x128xf32, #tpu.memory_space<vmem>>, vector<8x128xf32>,
    %c0_136 = arith.constant 0 : index
    %c0_137 = arith.constant 0 : index
    %280 = vector.load %arg10[%c0_136, %c0_137] : memref<8x128xf32, #tpu.memory_space<vmem>>, vector<8x128xf32>
    tpu.vector_store %arg10[%c0_136, %c0_137], %278 {strides = array<i32>} : memref<8x128xf32, #tpu.memory_space<vmem>>, vector<8x128xf32>,
    %281 = arith.index_cast %c6_i32 : i32 to index
    %c0_138 = arith.constant 0 : index
    %c0_139 = arith.constant 0 : index
    %282 = vector.load %arg9[%281, %c0_138, %c0_139] : memref<8x8x128xf32, #tpu.memory_space<vmem>>, vector<1x8x128xf32>
    %283 = vector.shape_cast %282 : vector<1x8x128xf32> to vector<8x128xf32>
    %284 = vector.shape_cast %278 : vector<8x128xf32> to vector<1x8x128xf32>
    tpu.vector_store %arg9[%281, %c0_138, %c0_139], %284 {strides = array<i32>} : memref<8x8x128xf32, #tpu.memory_space<vmem>>, vector<1x8x128xf32>,
    %c7_i32 = arith.constant 7 : i32
    %c0_140 = arith.constant 0 : index
    %c0_141 = arith.constant 0 : index
    %285 = vector.load %arg10[%c0_140, %c0_141] : memref<8x128xf32, #tpu.memory_space<vmem>>, vector<8x128xf32>
    %c0_142 = arith.constant 0 : index
    %c0_143 = arith.constant 0 : index
    %286 = vector.load %arg11[%c0_142, %c0_143] : memref<8x128xf32, #tpu.memory_space<vmem>>, vector<8x128xf32>
    %287 = arith.index_cast %c7_i32 : i32 to index
    %c0_144 = arith.constant 0 : index
    %c0_145 = arith.constant 0 : index
    %288 = vector.load %arg8[%287, %c0_144, %c0_145] : memref<8x8x512xf32, #tpu.memory_space<vmem>>, vector<1x8x512xf32>
    %289 = vector.shape_cast %288 : vector<1x8x512xf32> to vector<8x512xf32>
    %c0_146 = arith.constant 0 : index
    %c0_147 = arith.constant 0 : index
    %290 = vector.load %arg3[%c0_146, %c0_147] : memref<128x512xf32, #tpu.memory_space<vmem>>, vector<128x512xf32>
    %cst_148 = arith.constant dense<0.000000e+00> : vector<8x512xf32>
    %291 = tpu.matmul %285, %290, %cst_148 {dimension_numbers = #tpu.dot_dimension_numbers<[1], [0], [0], [1], [0, 0, 1, 1], [], []>} : vector<8x128xf32>, vector<128x512xf32>, vector<8x512xf32> -> vector<8x512xf32>
    %292 = arith.addf %289, %291 : vector<8x512xf32>
    %293 = vector.extract_strided_slice %292 {offsets = [0, 0], sizes = [8, 128], strides = [1, 1]} : vector<8x512xf32> to vector<8x128xf32>
    %294 = arith.negf %293 : vector<8x128xf32>
    %295 = math.exp %294 : vector<8x128xf32>
    %cst_149 = arith.constant 1.000000e+00 : f32
    %296 = vector.broadcast %cst_149 : f32 to vector<8x128xf32>
    %297 = arith.addf %296, %295 : vector<8x128xf32>
    %298 = arith.divf %296, %297 : vector<8x128xf32>
    %299 = vector.extract_strided_slice %292 {offsets = [0, 128], sizes = [8, 128], strides = [1, 1]} : vector<8x512xf32> to vector<8x128xf32>
    %300 = arith.negf %299 : vector<8x128xf32>
    %301 = math.exp %300 : vector<8x128xf32>
    %cst_150 = arith.constant 1.000000e+00 : f32
    %302 = vector.broadcast %cst_150 : f32 to vector<8x128xf32>
    %303 = arith.addf %302, %301 : vector<8x128xf32>
    %304 = arith.divf %302, %303 : vector<8x128xf32>
    %305 = vector.extract_strided_slice %292 {offsets = [0, 256], sizes = [8, 128], strides = [1, 1]} : vector<8x512xf32> to vector<8x128xf32>
    %306 = math.tanh %305 : vector<8x128xf32>
    %307 = vector.extract_strided_slice %292 {offsets = [0, 384], sizes = [8, 128], strides = [1, 1]} : vector<8x512xf32> to vector<8x128xf32>
    %308 = arith.negf %307 : vector<8x128xf32>
    %309 = math.exp %308 : vector<8x128xf32>
    %cst_151 = arith.constant 1.000000e+00 : f32
    %310 = vector.broadcast %cst_151 : f32 to vector<8x128xf32>
    %311 = arith.addf %310, %309 : vector<8x128xf32>
    %312 = arith.divf %310, %311 : vector<8x128xf32>
    %313 = arith.mulf %304, %286 : vector<8x128xf32>
    %314 = arith.mulf %298, %306 : vector<8x128xf32>
    %315 = arith.addf %313, %314 : vector<8x128xf32>
    %316 = math.tanh %315 : vector<8x128xf32>
    %317 = arith.mulf %312, %316 : vector<8x128xf32>
    %c0_152 = arith.constant 0 : index
    %c0_153 = arith.constant 0 : index
    %318 = vector.load %arg11[%c0_152, %c0_153] : memref<8x128xf32, #tpu.memory_space<vmem>>, vector<8x128xf32>
    tpu.vector_store %arg11[%c0_152, %c0_153], %315 {strides = array<i32>} : memref<8x128xf32, #tpu.memory_space<vmem>>, vector<8x128xf32>,
    %c0_154 = arith.constant 0 : index
    %c0_155 = arith.constant 0 : index
    %319 = vector.load %arg10[%c0_154, %c0_155] : memref<8x128xf32, #tpu.memory_space<vmem>>, vector<8x128xf32>
    tpu.vector_store %arg10[%c0_154, %c0_155], %317 {strides = array<i32>} : memref<8x128xf32, #tpu.memory_space<vmem>>, vector<8x128xf32>,
    %320 = arith.index_cast %c7_i32 : i32 to index
    %c0_156 = arith.constant 0 : index
    %c0_157 = arith.constant 0 : index
    %321 = vector.load %arg9[%320, %c0_156, %c0_157] : memref<8x8x128xf32, #tpu.memory_space<vmem>>, vector<1x8x128xf32>
    %322 = vector.shape_cast %321 : vector<1x8x128xf32> to vector<8x128xf32>
    %323 = vector.shape_cast %317 : vector<8x128xf32> to vector<1x8x128xf32>
    tpu.vector_store %arg9[%320, %c0_156, %c0_157], %323 {strides = array<i32>} : memref<8x8x128xf32, #tpu.memory_space<vmem>>, vector<1x8x128xf32>,
    %c8_i32 = arith.constant 8 : i32
    %c0_158 = arith.constant 0 : index
    %c0_159 = arith.constant 0 : index
    %c0_160 = arith.constant 0 : index
    %324 = vector.load %arg9[%c0_158, %c0_159, %c0_160] : memref<8x8x128xf32, #tpu.memory_space<vmem>>, vector<8x8x128xf32>
    %325 = vector.shape_cast %324 : vector<8x8x128xf32> to vector<64x128xf32>
    %c0_161 = arith.constant 0 : index
    %c0_162 = arith.constant 0 : index
    %326 = vector.load %arg5[%c0_161, %c0_162] : memref<128x128xf32, #tpu.memory_space<vmem>>, vector<128x128xf32>
    %cst_163 = arith.constant dense<0.000000e+00> : vector<64x128xf32>
    %327 = tpu.matmul %325, %326, %cst_163 {dimension_numbers = #tpu.dot_dimension_numbers<[1], [0], [0], [1], [0, 0, 1, 1], [], []>} : vector<64x128xf32>, vector<128x128xf32>, vector<64x128xf32> -> vector<64x128xf32>
    %c0_164 = arith.constant 0 : index
    %c0_165 = arith.constant 0 : index
    %328 = vector.load %arg6[%c0_164, %c0_165] : memref<1x128xf32, #tpu.memory_space<vmem>>, vector<1x128xf32>
    %329 = vector.broadcast %328 : vector<1x128xf32> to vector<64x128xf32>
    %330 = arith.addf %327, %329 : vector<64x128xf32>
    %c0_166 = arith.constant 0 : index
    %c0_167 = arith.constant 0 : index
    %331 = vector.load %arg7[%c0_166, %c0_167] : memref<64x128xf32, #tpu.memory_space<vmem>>, vector<64x128xf32>
    tpu.vector_store %arg7[%c0_166, %c0_167], %330 {strides = array<i32>} : memref<64x128xf32, #tpu.memory_space<vmem>>, vector<64x128xf32>,
    return
  }
  func.func @transform_0(%arg0: i32) -> (i32, i32) {
    %c0_i32 = arith.constant 0 : i32
    %c0_i32_0 = arith.constant 0 : i32
    %c0_i32_1 = arith.constant 0 : i32
    return %c0_i32, %c0_i32_0 : i32, i32
  }
  func.func @transform_1(%arg0: i32) -> (i32, i32) {
    %c0_i32 = arith.constant 0 : i32
    %c0_i32_0 = arith.constant 0 : i32
    %c0_i32_1 = arith.constant 0 : i32
    return %c0_i32, %c0_i32_0 : i32, i32
  }
  func.func @transform_2(%arg0: i32) -> (i32, i32) {
    %c0_i32 = arith.constant 0 : i32
    %c0_i32_0 = arith.constant 0 : i32
    %c0_i32_1 = arith.constant 0 : i32
    return %c0_i32, %c0_i32_0 : i32, i32
  }
  func.func @transform_3(%arg0: i32) -> (i32, i32) {
    %c0_i32 = arith.constant 0 : i32
    %c0_i32_0 = arith.constant 0 : i32
    %c0_i32_1 = arith.constant 0 : i32
    return %c0_i32, %c0_i32_0 : i32, i32
  }
  func.func @transform_4(%arg0: i32) -> (i32, i32) {
    %c0_i32 = arith.constant 0 : i32
    %c0_i32_0 = arith.constant 0 : i32
    %c0_i32_1 = arith.constant 0 : i32
    return %c0_i32, %c0_i32_0 : i32, i32
  }
  func.func @transform_5(%arg0: i32) -> (i32, i32) {
    %c0_i32 = arith.constant 0 : i32
    %c0_i32_0 = arith.constant 0 : i32
    %c0_i32_1 = arith.constant 0 : i32
    return %c0_i32, %c0_i32_0 : i32, i32
  }
  func.func @transform_6(%arg0: i32) -> (i32, i32) {
    %c0_i32 = arith.constant 0 : i32
    %c0_i32_0 = arith.constant 0 : i32
    %c0_i32_1 = arith.constant 0 : i32
    return %c0_i32, %c0_i32_0 : i32, i32
  }
}

</mosaic_0001>

<bundles_post_ra>
// kernel: caption_net_forward.1
= control target key start
LH: loop header
LB: loop body
LE: loop exit
PB: predicated region body
PF: predicated region fallthrough
CT: control target
= control target key end

     0   :  { %11 = vsyncpa [#allocation7], 0  ;;  %s3723_s0 = inlined_call_operand.vmem [shape: f32[64,128], index: 0, kind: input, shape index: {}]   ;;  %s3724_s1 = inlined_call_operand.hbm [shape: f32[128,512], index: 1, kind: input, shape index: {}]   ;;  %s3725_s2 = inlined_call_operand.hbm [shape: f32[128,512], index: 2, kind: input, shape index: {}]   ;;  %s3726_s3 = inlined_call_operand.vmem [shape: f32[1,512], index: 3, kind: input, shape index: {}]   ;;  %s3727_s4 = inlined_call_operand.vmem [shape: f32[128,128], index: 4, kind: input, shape index: {}]   ;;  %s3728_s5 = inlined_call_operand.vmem [shape: f32[1,128], index: 5, kind: input, shape index: {}]   ;;  %s3729_s6 = inlined_call_operand.vmem [shape: f32[64,128], index: 6, kind: output, shape index: {}]  }
   0x1   :  { %s19_s23 = sshll.u32 %s3724_s1, 4  ;;  %s20_s23 = int_to_ptr.hbm [resolvable:$true] %s19_s23 }
   0x2   :  { %12 = vsyncpa [#allocation9], 0  ;;  %s2418_s24 = smov [#allocation6]   ;;  %s32_s28 = sshll.u32 %s3725_s2, 4  ;;  %s33_s28 = int_to_ptr.hbm [resolvable:$true] %s32_s28 }
   0x3   :  { %s21_s25 = sshll.u32 %s2418_s24, 4  ;;  %s2419_s29 = smov 512   ;;  %s22_s25 = int_to_ptr.vmem [resolvable:$true] %s21_s25 }
   0x4   :  { %s2420_s30 = smov 32   ;;  %s2421_s7 = smov [#allocation8]  }
   0x5   :  { %27 = dma.hbm_to_vmem [thread:$0]  %s20_s23, 8192, %s22_s25, [#allocation7], %s2419_s29, %s2419_s29, %s2420_s30  }
   0x6   :  { %s34_s8 = sshll.u32 %s2421_s7, 4  ;;  %s35_s8 = int_to_ptr.vmem [resolvable:$true] %s34_s8 }
   0x7   :  { %40 = dma.hbm_to_vmem [thread:$0]  %s33_s28, 8192, %s35_s8, [#allocation9], %s2419_s29, %s2419_s29, %s2420_s30  }
   0x8   :  { %2414 = dma.done.wait [#allocation7], 8192  }
   0x9   :  { %2415 = vsyncadd [#allocation7], 4294959104 }
   0xa   :  { %2416 = dma.done.wait [#allocation9], 8192  }
   0xb   :  { %2417 = vsyncadd [#allocation9], 4294959104  ;;  %v123_v0 = vld [vmem:[#allocation6 + $0x1e0] sm:$0xff]  ;;  %v126_v1 = vld [vmem:[#allocation6 + $0x1f8] sm:$0xff]  ;;  %v2422_v57 = vmov 0.0  }
   0xc   :  { %v119_v2 = vld [vmem:[#allocation6 + $0x1c0] sm:$0xff]  ;;  %137 = vmatpush.msra.mxu1 %v123_v0  ;;  %2216 = vmatpush.msra.mxu2 %v123_v0  ;;  %v122_v3 = vld [vmem:[#allocation6 + $0x1d8] sm:$0xff]  ;;  %v124_v49 = vld [vmem:[#allocation6 + $0x1e8] sm:$0xff] }
   0xd   :  { %v2464_v4 = vld [vmem:[#allocation8 + $0x1e0] sm:$0xff]  ;;  %260 = vmatpush.msra.mxu3 %v126_v1  ;;  %v118_v7 = vld [vmem:[#allocation6 + $0x1b8] sm:$0xff]  ;;  %v125_v50 = vld [vmem:[#allocation6 + $0x1f0] sm:$0xff] }
   0xe   :  { %405 = vmatpush.msra.mxu0 %v2464_v4  ;;  %v115_v5 = vld [vmem:[#allocation6 + $0x1a0] sm:$0xff]  ;;  %138 = vmatpush.msra.mxu1 %v119_v2  ;;  %v114_v10 = vld [vmem:[#allocation6 + $0x198] sm:$0xff]  ;;  %v120_v52 = vld [vmem:[#allocation6 + $0x1c8] sm:$0xff] }
   0xf   :  { %v2467_v6 = vld [vmem:[#allocation8 + $0x1c0] sm:$0xff]  ;;  %2217 = vmatpush.msra.mxu2 %v119_v2  ;;  %261 = vmatpush.msra.mxu3 %v122_v3  ;;  %v110_v13 = vld [vmem:[#allocation6 + $0x178] sm:$0xff]  ;;  %v121_v53 = vld [vmem:[#allocation6 + $0x1d0] sm:$0xff] }
  0x10   :  { %v2469_v8 = vld [vmem:[#allocation8 + $0x1a0] sm:$0xff]  ;;  %406 = vmatpush.msra.mxu0 %v2467_v6  ;;  %139 = vmatpush.msra.mxu1 %v115_v5  ;;  %v106_v16 = vld [vmem:[#allocation6 + $0x158] sm:$0xff]  ;;  %v116_v54 = vld [vmem:[#allocation6 + $0x1a8] sm:$0xff] }
  0x11   :  { %v111_v9 = vld [vmem:[#allocation6 + $0x180] sm:$0xff]  ;;  %2218 = vmatpush.msra.mxu2 %v115_v5  ;;  %262 = vmatpush.msra.mxu3 %v118_v7  ;;  %v102_v19 = vld [vmem:[#allocation6 + $0x138] sm:$0xff]  ;;  %v117_v56 = vld [vmem:[#allocation6 + $0x1b0] sm:$0xff] }
  0x12   :  { %v2472_v11 = vld [vmem:[#allocation8 + $0x180] sm:$0xff]  ;;  %407 = vmatpush.msra.mxu0 %v2469_v8  ;;  %140 = vmatpush.msra.mxu1 %v111_v9  ;;  %v98_v22 = vld [vmem:[#allocation6 + $0x118] sm:$0xff]  ;;  %v112_v58 = vld [vmem:[#allocation6 + $0x188] sm:$0xff] }
  0x13   :  { %v107_v12 = vld [vmem:[#allocation6 + $0x160] sm:$0xff]  ;;  %2219 = vmatpush.msra.mxu2 %v111_v9  ;;  %263 = vmatpush.msra.mxu3 %v114_v10  ;;  %v94_v25 = vld [vmem:[#allocation6 + $0xf8] sm:$0xff]  ;;  %v113_v60 = vld [vmem:[#allocation6 + $0x190] sm:$0xff] }
  0x14   :  { %v2475_v14 = vld [vmem:[#allocation8 + $0x160] sm:$0xff]  ;;  %408 = vmatpush.msra.mxu0 %v2472_v11  ;;  %141 = vmatpush.msra.mxu1 %v107_v12  ;;  %v90_v28 = vld [vmem:[#allocation6 + $0xd8] sm:$0xff]  ;;  %v2533_v61 = vld [vmem:[%s3723_s0 + $0x8] sm:$0xff] }
  0x15   :  { %v103_v15 = vld [vmem:[#allocation6 + $0x140] sm:$0xff]  ;;  %2220 = vmatpush.msra.mxu2 %v107_v12  ;;  %264 = vmatpush.msra.mxu3 %v110_v13  ;;  %v86_v31 = vld [vmem:[#allocation6 + $0xb8] sm:$0xff]  ;;  %v2539_v62 = vld [vmem:[%s3723_s0 + $0x28] sm:$0xff] }
  0x16   :  { %v2478_v17 = vld [vmem:[#allocation8 + $0x140] sm:$0xff]  ;;  %409 = vmatpush.msra.mxu0 %v2475_v14  ;;  %142 = vmatpush.msra.mxu1 %v103_v15  ;;  %v82_v34 = vld [vmem:[#allocation6 + $0x98] sm:$0xff]  ;;  %v108_v63 = vld [vmem:[#allocation6 + $0x168] sm:$0xff] }
  0x17   :  { %v99_v18 = vld [vmem:[#allocation6 + $0x120] sm:$0xff]  ;;  %2221 = vmatpush.msra.mxu2 %v103_v15  ;;  %265 = vmatpush.msra.mxu3 %v106_v16  ;;  %v78_v37 = vld [vmem:[#allocation6 + $0x78] sm:$0xff]  ;;  %v109_v0 = vld [vmem:[#allocation6 + $0x170] sm:$0xff] }
  0x18   :  { %v2481_v20 = vld [vmem:[#allocation8 + $0x120] sm:$0xff]  ;;  %410 = vmatpush.msra.mxu0 %v2478_v17  ;;  %143 = vmatpush.msra.mxu1 %v99_v18  ;;  %v74_v40 = vld [vmem:[#allocation6 + $0x58] sm:$0xff]  ;;  %v104_v1 = vld [vmem:[#allocation6 + $0x148] sm:$0xff] }
  0x19   :  { %v95_v21 = vld [vmem:[#allocation6 + $0x100] sm:$0xff]  ;;  %2222 = vmatpush.msra.mxu2 %v99_v18  ;;  %266 = vmatpush.msra.mxu3 %v102_v19  ;;  %v70_v43 = vld [vmem:[#allocation6 + $0x38] sm:$0xff]  ;;  %v105_v3 = vld [vmem:[#allocation6 + $0x150] sm:$0xff] }
  0x1a   :  { %v2484_v23 = vld [vmem:[#allocation8 + $0x100] sm:$0xff]  ;;  %411 = vmatpush.msra.mxu0 %v2481_v20  ;;  %144 = vmatpush.msra.mxu1 %v95_v21  ;;  %v66_v46 = vld [vmem:[#allocation6 + $0x18] sm:$0xff]  ;;  %v100_v5 = vld [vmem:[#allocation6 + $0x128] sm:$0xff] }
  0x1b   :  { %v91_v24 = vld [vmem:[#allocation6 + $0xe0] sm:$0xff]  ;;  %2223 = vmatpush.msra.mxu2 %v95_v21  ;;  %267 = vmatpush.msra.mxu3 %v98_v22  ;;  %v2524_v55 = vld [vmem:[#allocation8 + $0x1f8] sm:$0xff]  ;;  %v96_v9 = vld [vmem:[#allocation6 + $0x108] sm:$0xff] }
  0x1c   :  { %v2487_v26 = vld [vmem:[#allocation8 + $0xe0] sm:$0xff]  ;;  %412 = vmatpush.msra.mxu0 %v2484_v23  ;;  %145 = vmatpush.msra.mxu1 %v91_v24  ;;  %v2528_v59 = vld [vmem:[#allocation8 + $0x1d8] sm:$0xff]  ;;  %v97_v12 = vld [vmem:[#allocation6 + $0x110] sm:$0xff] }
  0x1d   :  { %v87_v27 = vld [vmem:[#allocation6 + $0xc0] sm:$0xff]  ;;  %2224 = vmatpush.msra.mxu2 %v91_v24  ;;  %268 = vmatpush.msra.mxu3 %v94_v25  ;;  %v2544_v2 = vld [vmem:[#allocation8 + $0x1b8] sm:$0xff]  ;;  %v2557_v13 = vld [vmem:[%s3723_s0 + $0x10] sm:$0xff] }
  0x1e   :  { %v2490_v29 = vld [vmem:[#allocation8 + $0xc0] sm:$0xff]  ;;  %413 = vmatpush.msra.mxu0 %v2487_v26  ;;  %146 = vmatpush.msra.mxu1 %v87_v27  ;;  %v2548_v7 = vld [vmem:[#allocation8 + $0x198] sm:$0xff]  ;;  %v2563_v15 = vld [vmem:[%s3723_s0 + $0x30] sm:$0xff] }
  0x1f   :  { %v83_v30 = vld [vmem:[#allocation6 + $0xa0] sm:$0xff]  ;;  %2225 = vmatpush.msra.mxu2 %v87_v27  ;;  %269 = vmatpush.msra.mxu3 %v90_v28  ;;  %v2551_v10 = vld [vmem:[#allocation8 + $0x178] sm:$0xff]  ;;  %v92_v16 = vld [vmem:[#allocation6 + $0xe8] sm:$0xff] }
  0x20   :  { %v2493_v32 = vld [vmem:[#allocation8 + $0xa0] sm:$0xff]  ;;  %414 = vmatpush.msra.mxu0 %v2490_v29  ;;  %147 = vmatpush.msra.mxu1 %v83_v30  ;;  %v88_v18 = vld [vmem:[#allocation6 + $0xc8] sm:$0xff]  ;;  %v2568_v19 = vld [vmem:[#allocation8 + $0x158] sm:$0xff] }
  0x21   :  { %v79_v33 = vld [vmem:[#allocation6 + $0x80] sm:$0xff]  ;;  %2226 = vmatpush.msra.mxu2 %v83_v30  ;;  %270 = vmatpush.msra.mxu3 %v86_v31  ;;  %v89_v21 = vld [vmem:[#allocation6 + $0xd0] sm:$0xff]  ;;  %v84_v22 = vld [vmem:[#allocation6 + $0xa8] sm:$0xff] }
  0x22   :  { %v2496_v35 = vld [vmem:[#allocation8 + $0x80] sm:$0xff]  ;;  %415 = vmatpush.msra.mxu0 %v2493_v32  ;;  %148 = vmatpush.msra.mxu1 %v79_v33  ;;  %v2572_v24 = vld [vmem:[#allocation8 + $0x138] sm:$0xff]  ;;  %v80_v25 = vld [vmem:[#allocation6 + $0x88] sm:$0xff] }
  0x23   :  { %v75_v36 = vld [vmem:[#allocation6 + $0x60] sm:$0xff]  ;;  %2227 = vmatpush.msra.mxu2 %v79_v33  ;;  %271 = vmatpush.msra.mxu3 %v82_v34  ;;  %v2575_v27 = vld [vmem:[#allocation8 + $0x118] sm:$0xff]  ;;  %v81_v28 = vld [vmem:[#allocation6 + $0x90] sm:$0xff] }
  0x24   :  { %v2499_v38 = vld [vmem:[#allocation8 + $0x60] sm:$0xff]  ;;  %416 = vmatpush.msra.mxu0 %v2496_v35  ;;  %149 = vmatpush.msra.mxu1 %v75_v36  ;;  %v2581_v30 = vld [vmem:[%s3723_s0 + $0x18] sm:$0xff]  ;;  %v76_v33 = vld [vmem:[#allocation6 + $0x68] sm:$0xff] }
  0x25   :  { %v71_v39 = vld [vmem:[#allocation6 + $0x40] sm:$0xff]  ;;  %2228 = vmatpush.msra.mxu2 %v75_v36  ;;  %272 = vmatpush.msra.mxu3 %v78_v37  ;;  %v2587_v31 = vld [vmem:[%s3723_s0 + $0x38] sm:$0xff]  ;;  %v72_v34 = vld [vmem:[#allocation6 + $0x48] sm:$0xff] }
  0x26   :  { %v2502_v41 = vld [vmem:[#allocation8 + $0x40] sm:$0xff]  ;;  %417 = vmatpush.msra.mxu0 %v2499_v38  ;;  %150 = vmatpush.msra.mxu1 %v71_v39  ;;  %v2592_v36 = vld [vmem:[#allocation8 + $0xf8] sm:$0xff]  ;;  %v73_v37 = vld [vmem:[#allocation6 + $0x50] sm:$0xff] }
  0x27   :  { %v67_v42 = vld [vmem:[#allocation6 + $0x20] sm:$0xff]  ;;  %2229 = vmatpush.msra.mxu2 %v71_v39  ;;  %273 = vmatpush.msra.mxu3 %v74_v40  ;;  %v68_v39 = vld [vmem:[#allocation6 + $0x28] sm:$0xff]  ;;  %v2596_v40 = vld [vmem:[#allocation8 + $0xd8] sm:$0xff] }
  0x28   :  { %v2505_v44 = vld [vmem:[#allocation8 + $0x20] sm:$0xff]  ;;  %418 = vmatpush.msra.mxu0 %v2502_v41  ;;  %151 = vmatpush.msra.mxu1 %v67_v42 }
  0x29   :  { %v63_v45 = vld [vmem:[#allocation6] sm:$0xff]  ;;  %2230 = vmatpush.msra.mxu2 %v67_v42  ;;  %274 = vmatpush.msra.mxu3 %v70_v43  ;;  %v64_v42 = vld [vmem:[#allocation6 + $0x8] sm:$0xff]  ;;  %v2599_v43 = vld [vmem:[#allocation8 + $0xb8] sm:$0xff] }
  0x2a   :  { %v2511_v47 = vld [vmem:[%s3723_s0] sm:$0xff]  ;;  %419 = vmatpush.msra.mxu0 %v2505_v44  ;;  %152 = vmatpush.msra.mxu1 %v63_v45 }
  0x2b   :  { %v2517_v48 = vld [vmem:[%s3723_s0 + $0x20] sm:$0xff]  ;;  %2231 = vmatpush.msra.mxu2 %v63_v45  ;;  %275 = vmatpush.msra.mxu3 %v66_v46  ;;  %v65_v45 = vld [vmem:[#allocation6 + $0x10] sm:$0xff]  ;;  %v2603_v46 = vld [vmem:[#allocation8 + $0x1e8] sm:$0xff] }
  0x2c   :  { %153 = vmatmul.f32.vlgmr.msra.gmra.mxu1 %v2511_v47  ;;  %v2520_v51 = vld [vmem:[#allocation8] sm:$0xff]  ;;  %165 = vmatmul.f32.vlgmr.msra.gmra.mxu2 %v2517_v48 }
  0x2d   :  { %178 = vmatpush.msrb.mxu1 %v124_v49  ;;  %276 = vmatmul.f32.vlgmr.msra.gmra.mxu3 %v2511_v47  ;;  %v2606_v49 = vld [vmem:[#allocation8 + $0x1f0] sm:$0xff] }
  0x2e   :  { %219 = vmatpush.msrb.mxu2 %v125_v50  ;;  %420 = vmatpush.msra.mxu0 %v2520_v51  ;;  %v2610_v50 = vld [vmem:[#allocation8 + $0x1c8] sm:$0xff] }
  0x2f   :  { %179 = vmatpush.msrb.mxu1 %v120_v52  ;;  %421 = vmatmul.f32.vlgmr.msra.gmra.mxu0 %v2422_v57  ;;  %v2616_v52 = vld [vmem:[#allocation8 + $0x1d0] sm:$0xff] }
  0x30   :  { %220 = vmatpush.msrb.mxu2 %v121_v53  ;;  %465 = vmatpush.msrb.mxu3 %v2524_v55  ;;  %v2622_v53 = vld [vmem:[#allocation8 + $0x78] sm:$0xff] }
  0x31   :  { %180 = vmatpush.msrb.mxu1 %v116_v54  ;;  %626 = vmatpush.msrb.mxu0 %v2464_v4  ;;  %v101_v4 = vld [vmem:[#allocation6 + $0x130] sm:$0xff] }
  0x32   :  { %221 = vmatpush.msrb.mxu2 %v117_v56  ;;  %466 = vmatpush.msrb.mxu3 %v2528_v59  ;;  %v2625_v54 = vld [vmem:[#allocation8 + $0x1b0] sm:$0xff]  ;;  %v2628_v56 = vld [vmem:[#allocation8 + $0x188] sm:$0xff] }
  0x33   :  { %181 = vmatpush.msrb.mxu1 %v112_v58  ;;  %627 = vmatpush.msrb.mxu0 %v2467_v6  ;;  %v93_v6 = vld [vmem:[#allocation6 + $0xf0] sm:$0xff] }
  0x34   :  { %222 = vmatpush.msrb.mxu2 %v113_v60  ;;  %156 = vmatmul.f32.gmra.mxu1 %v2533_v61  ;;  %v2636_v58 = vld [vmem:[#allocation8 + $0x190] sm:$0xff]  ;;  %v2638_v60 = vld [vmem:[#allocation8 + $0x168] sm:$0xff] }
  0x35   :  { %168 = vmatmul.f32.gmra.mxu2 %v2539_v62  ;;  %182 = vmatpush.msrb.mxu1 %v108_v63  ;;  %v2644_v63 = vld [vmem:[#allocation8 + $0x170] sm:$0xff] }
  0x36   :  { %279 = vmatmul.f32.gmra.mxu3 %v2533_v61  ;;  %223 = vmatpush.msrb.mxu2 %v109_v0  ;;  %v2650_v0 = vld [vmem:[#allocation8 + $0x38] sm:$0xff] }
  0x37   :  { %183 = vmatpush.msrb.mxu1 %v104_v1  ;;  %467 = vmatpush.msrb.mxu3 %v2544_v2  ;;  %v2654_v1 = vld [vmem:[#allocation8 + $0x150] sm:$0xff] }
  0x38   :  { %224 = vmatpush.msrb.mxu2 %v105_v3  ;;  %628 = vmatpush.msrb.mxu0 %v2469_v8  ;;  %v85_v8 = vld [vmem:[#allocation6 + $0xb0] sm:$0xff]  ;;  %v2660_v3 = vld [vmem:[#allocation8 + $0x18] sm:$0xff] }
  0x39   :  { %184 = vmatpush.msrb.mxu1 %v100_v5  ;;  %468 = vmatpush.msrb.mxu3 %v2548_v7  ;;  %v2664_v5 = vld [vmem:[#allocation8 + $0x130] sm:$0xff] }
  0x3a   :  { %225 = vmatpush.msrb.mxu2 %v101_v4  ;;  %629 = vmatpush.msrb.mxu0 %v2472_v11  ;;  %v77_v11 = vld [vmem:[#allocation6 + $0x70] sm:$0xff]  ;;  %v2666_v4 = vld [vmem:[#allocation8 + $0x108] sm:$0xff] }
  0x3b   :  { %185 = vmatpush.msrb.mxu1 %v96_v9  ;;  %469 = vmatpush.msrb.mxu3 %v2551_v10  ;;  %v2674_v9 = vld [vmem:[#allocation8 + $0xe8] sm:$0xff] }
  0x3c   :  { %226 = vmatpush.msrb.mxu2 %v97_v12  ;;  %159 = vmatmul.f32.gmra.mxu1 %v2557_v13  ;;  %v2679_v12 = vld [vmem:[#allocation8 + $0xf0] sm:$0xff] }
  0x3d   :  { %171 = vmatmul.f32.gmra.mxu2 %v2563_v15  ;;  %186 = vmatpush.msrb.mxu1 %v92_v16  ;;  %v2688_v16 = vld [vmem:[#allocation8 + $0xd0] sm:$0xff] }
  0x3e   :  { %282 = vmatmul.f32.gmra.mxu3 %v2557_v13  ;;  %227 = vmatpush.msrb.mxu2 %v93_v6  ;;  %v2691_v6 = vld [vmem:[#allocation8 + $0xa8] sm:$0xff] }
  0x3f   :  { %187 = vmatpush.msrb.mxu1 %v88_v18  ;;  %470 = vmatpush.msrb.mxu3 %v2568_v19  ;;  %v2698_v18 = vld [vmem:[#allocation8 + $0x88] sm:$0xff] }
  0x40   :  { %228 = vmatpush.msrb.mxu2 %v89_v21  ;;  %630 = vmatpush.msrb.mxu0 %v2475_v14  ;;  %v69_v14 = vld [vmem:[#allocation6 + $0x30] sm:$0xff]  ;;  %v2706_v21 = vld [vmem:[#allocation8 + $0x68] sm:$0xff] }
  0x41   :  { %188 = vmatpush.msrb.mxu1 %v84_v22  ;;  %471 = vmatpush.msrb.mxu3 %v2572_v24  ;;  %v2713_v22 = vld [vmem:[#allocation8 + $0x48] sm:$0xff] }
  0x42   :  { %229 = vmatpush.msrb.mxu2 %v85_v8  ;;  %631 = vmatpush.msrb.mxu0 %v2478_v17  ;;  %v2612_v17 = vld [vmem:[#allocation8 + $0x98] sm:$0xff]  ;;  %v2720_v8 = vld [vmem:[#allocation8 + $0x50] sm:$0xff] }
  0x43   :  { %189 = vmatpush.msrb.mxu1 %v80_v25  ;;  %472 = vmatpush.msrb.mxu3 %v2575_v27  ;;  %v2727_v25 = vld [vmem:[#allocation8 + $0x30] sm:$0xff] }
  0x44   :  { %230 = vmatpush.msrb.mxu2 %v81_v28  ;;  %162 = vmatmul.f32.gmra.mxu1 %v2581_v30  ;;  %v2731_v28 = vld [vmem:[#allocation8 + $0x8] sm:$0xff] }
  0x45   :  { %174 = vmatmul.f32.gmra.mxu2 %v2587_v31  ;;  %190 = vmatpush.msrb.mxu1 %v76_v33 }
  0x46   :  { %285 = vmatmul.f32.gmra.mxu3 %v2581_v30  ;;  %231 = vmatpush.msrb.mxu2 %v77_v11 }
  0x47   :  { %191 = vmatpush.msrb.mxu1 %v72_v34  ;;  %473 = vmatpush.msrb.mxu3 %v2592_v36 }
  0x48   :  { %232 = vmatpush.msrb.mxu2 %v73_v37  ;;  %632 = vmatpush.msrb.mxu0 %v2481_v20  ;;  %v2619_v20 = vld [vmem:[#allocation8 + $0x1a8] sm:$0xff] }
  0x49   :  { %192 = vmatpush.msrb.mxu1 %v68_v39  ;;  %474 = vmatpush.msrb.mxu3 %v2596_v40 }
  0x4a   :  { %233 = vmatpush.msrb.mxu2 %v69_v14  ;;  %633 = vmatpush.msrb.mxu0 %v2484_v23  ;;  %v2647_v23 = vld [vmem:[#allocation8 + $0x148] sm:$0xff] }
  0x4b   :  { %193 = vmatpush.msrb.mxu1 %v64_v42  ;;  %475 = vmatpush.msrb.mxu3 %v2599_v43 }
  0x4c   :  { %234 = vmatpush.msrb.mxu2 %v65_v45  ;;  %194 = vmatmul.f32.vlgmr.msrb.gmra.mxu1 %v2511_v47 }
  0x4d   :  { %235 = vmatmul.f32.vlgmr.msrb.gmra.mxu2 %v2511_v47  ;;  %425 = vmatpush.msra.mxu1 %v2603_v46  ;;  %v2631_v47 = vld [vmem:[#allocation8 + $0x58] sm:$0xff] }
  0x4e   :  { %288 = vmatmul.f32.gmra.mxu3 %v2517_v48  ;;  %445 = vmatpush.msra.mxu2 %v2606_v49 }
  0x4f   :  { %426 = vmatpush.msra.mxu1 %v2610_v50  ;;  %476 = vmatpush.msrb.mxu3 %v2612_v17 }
  0x50   :  { %446 = vmatpush.msra.mxu2 %v2616_v52  ;;  %634 = vmatpush.msrb.mxu0 %v2487_v26  ;;  %v2657_v26 = vld [vmem:[#allocation8 + $0x128] sm:$0xff] }
  0x51   :  { %427 = vmatpush.msra.mxu1 %v2619_v20  ;;  %477 = vmatpush.msrb.mxu3 %v2622_v53 }
  0x52   :  { %447 = vmatpush.msra.mxu2 %v2625_v54  ;;  %635 = vmatpush.msrb.mxu0 %v2490_v29  ;;  %v2683_v29 = vld [vmem:[#allocation8 + $0xc8] sm:$0xff] }
  0x53   :  { %428 = vmatpush.msra.mxu1 %v2628_v56  ;;  %478 = vmatpush.msrb.mxu3 %v2631_v47 }
  0x54   :  { %197 = vmatmul.f32.gmra.mxu1 %v2533_v61  ;;  %448 = vmatpush.msra.mxu2 %v2636_v58 }
  0x55   :  { %238 = vmatmul.f32.gmra.mxu2 %v2533_v61  ;;  %429 = vmatpush.msra.mxu1 %v2638_v60  ;;  %v2672_v61 = vld [vmem:[#allocation8 + $0x110] sm:$0xff] }
  0x56   :  { %291 = vmatmul.f32.gmra.mxu3 %v2539_v62  ;;  %449 = vmatpush.msra.mxu2 %v2644_v63 }
  0x57   :  { %430 = vmatpush.msra.mxu1 %v2647_v23  ;;  %479 = vmatpush.msrb.mxu3 %v2650_v0 }
  0x58   :  { %450 = vmatpush.msra.mxu2 %v2654_v1  ;;  %636 = vmatpush.msrb.mxu0 %v2493_v32  ;;  %v2695_v32 = vld [vmem:[#allocation8 + $0xb0] sm:$0xff] }
  0x59   :  { %431 = vmatpush.msra.mxu1 %v2657_v26  ;;  %480 = vmatpush.msrb.mxu3 %v2660_v3 }
  0x5a   :  { %451 = vmatpush.msra.mxu2 %v2664_v5  ;;  %637 = vmatpush.msrb.mxu0 %v2496_v35  ;;  %v2718_v35 = vld [vmem:[#allocation8 + $0x70] sm:$0xff] }
  0x5b   :  { %686 = vmatpush.msra.mxu3 %v2524_v55  ;;  %432 = vmatpush.msra.mxu1 %v2666_v4 }
  0x5c   :  { %200 = vmatmul.f32.gmra.mxu1 %v2557_v13  ;;  %452 = vmatpush.msra.mxu2 %v2672_v61 }
  0x5d   :  { %241 = vmatmul.f32.gmra.mxu2 %v2557_v13  ;;  %433 = vmatpush.msra.mxu1 %v2674_v9  ;;  %v2703_v13 = vld [vmem:[#allocation8 + $0x90] sm:$0xff] }
  0x5e   :  { %294 = vmatmul.f32.gmra.mxu3 %v2563_v15  ;;  %453 = vmatpush.msra.mxu2 %v2679_v12 }
  0x5f   :  { %434 = vmatpush.msra.mxu1 %v2683_v29  ;;  %687 = vmatpush.msra.mxu3 %v2528_v59 }
  0x60   :  { %454 = vmatpush.msra.mxu2 %v2688_v16  ;;  %638 = vmatpush.msrb.mxu0 %v2499_v38  ;;  %v2723_v38 = vld [vmem:[#allocation8 + $0x28] sm:$0xff] }
  0x61   :  { %435 = vmatpush.msra.mxu1 %v2691_v6  ;;  %688 = vmatpush.msra.mxu3 %v2544_v2 }
  0x62   :  { %455 = vmatpush.msra.mxu2 %v2695_v32  ;;  %639 = vmatpush.msrb.mxu0 %v2502_v41 }
  0x63   :  { %436 = vmatpush.msra.mxu1 %v2698_v18  ;;  %689 = vmatpush.msra.mxu3 %v2548_v7 }
  0x64   :  { %203 = vmatmul.f32.gmra.mxu1 %v2581_v30  ;;  %456 = vmatpush.msra.mxu2 %v2703_v13 }
  0x65   :  { %244 = vmatmul.f32.gmra.mxu2 %v2581_v30  ;;  %437 = vmatpush.msra.mxu1 %v2706_v21  ;;  %v2735_v30 = vld [vmem:[#allocation8 + $0x10] sm:$0xff] }
  0x66   :  { %297 = vmatmul.f32.gmra.mxu3 %v2587_v31  ;;  %457 = vmatpush.msra.mxu2 %v2718_v35 }
  0x67   :  { %438 = vmatpush.msra.mxu1 %v2713_v22  ;;  %690 = vmatpush.msra.mxu3 %v2551_v10 }
  0x68   :  { %458 = vmatpush.msra.mxu2 %v2720_v8  ;;  %640 = vmatpush.msrb.mxu0 %v2505_v44  ;;  %v127_v44 = vld [vmem:[%s3726_s3] sm:$0xf] }
  0x69   :  { %439 = vmatpush.msra.mxu1 %v2723_v38  ;;  %691 = vmatpush.msra.mxu3 %v2568_v19  ;;  %v130_v45 = vperm.slane %v127_v44, 1 }
  0x6a   :  { %459 = vmatpush.msra.mxu2 %v2727_v25  ;;  %641 = vmatpush.msrb.mxu0 %v2520_v51 }
  0x6b   :  { %440 = vmatpush.msra.mxu1 %v2731_v28  ;;  %692 = vmatpush.msra.mxu3 %v2572_v24 }
  0x6c   :  { %206 = vmatmul.f32.gmra.mxu1 %v2517_v48  ;;  %460 = vmatpush.msra.mxu2 %v2735_v30 }
  0x6d   :  { %247 = vmatmul.f32.gmra.mxu2 %v2517_v48  ;;  %646 = vmatpush.msrb.mxu1 %v2603_v46  ;;  %v129_v48 = vperm.slane %v127_v44, 0 }
  0x6e   :  { %481 = vmatmul.f32.vlgmr.msrb.gmra.mxu3 %v2422_v57  ;;  %666 = vmatpush.msrb.mxu2 %v2606_v49 }
  0x6f   :  { %647 = vmatpush.msrb.mxu1 %v2610_v50  ;;  %693 = vmatpush.msra.mxu3 %v2575_v27 }
  0x70   :  { %667 = vmatpush.msrb.mxu2 %v2616_v52 }
  0x71   :  { %648 = vmatpush.msrb.mxu1 %v2619_v20  ;;  %694 = vmatpush.msra.mxu3 %v2592_v36 }
  0x72   :  { %668 = vmatpush.msrb.mxu2 %v2625_v54 }
  0x73   :  { %649 = vmatpush.msrb.mxu1 %v2628_v56  ;;  %695 = vmatpush.msra.mxu3 %v2596_v40 }
  0x74   :  { %209 = vmatmul.f32.gmra.mxu1 %v2539_v62  ;;  %669 = vmatpush.msrb.mxu2 %v2636_v58 }
  0x75   :  { %250 = vmatmul.f32.gmra.mxu2 %v2539_v62  ;;  %650 = vmatpush.msrb.mxu1 %v2638_v60 }
  0x76   :  { %670 = vmatpush.msrb.mxu2 %v2644_v63  ;;  %696 = vmatpush.msra.mxu3 %v2599_v43 }
  0x77   :  { %651 = vmatpush.msrb.mxu1 %v2647_v23 }
  0x78   :  { %671 = vmatpush.msrb.mxu2 %v2654_v1  ;;  %697 = vmatpush.msra.mxu3 %v2612_v17 }
  0x79   :  { %652 = vmatpush.msrb.mxu1 %v2657_v26 }
  0x7a   :  { %672 = vmatpush.msrb.mxu2 %v2664_v5  ;;  %698 = vmatpush.msra.mxu3 %v2622_v53 }
  0x7b   :  { %653 = vmatpush.msrb.mxu1 %v2666_v4 }
  0x7c   :  { %212 = vmatmul.f32.gmra.mxu1 %v2563_v15  ;;  %673 = vmatpush.msrb.mxu2 %v2672_v61 }
  0x7d   :  { %253 = vmatmul.f32.gmra.mxu2 %v2563_v15  ;;  %654 = vmatpush.msrb.mxu1 %v2674_v9 }
  0x7e   :  { %674 = vmatpush.msrb.mxu2 %v2679_v12  ;;  %699 = vmatpush.msra.mxu3 %v2631_v47 }
  0x7f   :  { %655 = vmatpush.msrb.mxu1 %v2683_v29 }
  0x80   :  { %675 = vmatpush.msrb.mxu2 %v2688_v16  ;;  %700 = vmatpush.msra.mxu3 %v2650_v0 }
  0x81   :  { %656 = vmatpush.msrb.mxu1 %v2691_v6 }
  0x82   :  { %676 = vmatpush.msrb.mxu2 %v2695_v32  ;;  %701 = vmatpush.msra.mxu3 %v2660_v3 }
  0x83   :  { %657 = vmatpush.msrb.mxu1 %v2698_v18 }
  0x84   :  { %908 = vmatpush.msrb.mxu3 %v2524_v55  ;;  %215 = vmatmul.f32.gmra.mxu1 %v2587_v31 }
  0x85   :  { %677 = vmatpush.msrb.mxu2 %v2703_v13  ;;  %658 = vmatpush.msrb.mxu1 %v2706_v21 }
  0x86   :  { %256 = vmatmul.f32.gmra.mxu2 %v2587_v31  ;;  %909 = vmatpush.msrb.mxu3 %v2528_v59 }
  0x87   :  { %678 = vmatpush.msrb.mxu2 %v2718_v35  ;;  %659 = vmatpush.msrb.mxu1 %v2713_v22 }
  0x88   :  { %910 = vmatpush.msrb.mxu3 %v2544_v2  ;;  %v132_v2 = vperm.slane %v127_v44, 3 }
  0x89   :  { %679 = vmatpush.msrb.mxu2 %v2720_v8  ;;  %660 = vmatpush.msrb.mxu1 %v2723_v38 }
  0x8a   :  { %911 = vmatpush.msrb.mxu3 %v2548_v7 }
  0x8b   :  { %680 = vmatpush.msrb.mxu2 %v2727_v25  ;;  %661 = vmatpush.msrb.mxu1 %v2731_v28 }
  0x8c   :  { %441 = vmatmul.f32.vlgmr.msra.gmra.mxu1 %v2422_v57  ;;  %912 = vmatpush.msrb.mxu3 %v2551_v10 }
  0x8d   :  { %681 = vmatpush.msrb.mxu2 %v2735_v30  ;;  %868 = vmatpush.msra.mxu1 %v2603_v46 }
  0x8e   :  { %461 = vmatmul.f32.vlgmr.msra.gmra.mxu2 %v2422_v57  ;;  %913 = vmatpush.msrb.mxu3 %v2568_v19 }
  0x8f   :  { %888 = vmatpush.msra.mxu2 %v2606_v49  ;;  %869 = vmatpush.msra.mxu1 %v2610_v50 }
  0x90   :  { %914 = vmatpush.msrb.mxu3 %v2572_v24 }
  0x91   :  { %889 = vmatpush.msra.mxu2 %v2616_v52  ;;  %870 = vmatpush.msra.mxu1 %v2619_v20  ;;  %v131_v20 = vperm.slane %v127_v44, 2 }
  0x92   :  { %915 = vmatpush.msrb.mxu3 %v2575_v27 }
  0x93   :  { %890 = vmatpush.msra.mxu2 %v2625_v54  ;;  %871 = vmatpush.msra.mxu1 %v2628_v56 }
  0x94   :  { %916 = vmatpush.msrb.mxu3 %v2592_v36 }
  0x95   :  { %891 = vmatpush.msra.mxu2 %v2636_v58  ;;  %872 = vmatpush.msra.mxu1 %v2638_v60 }
  0x96   :  { %917 = vmatpush.msrb.mxu3 %v2596_v40 }
  0x97   :  { %892 = vmatpush.msra.mxu2 %v2644_v63  ;;  %873 = vmatpush.msra.mxu1 %v2647_v23 }
  0x98   :  { %918 = vmatpush.msrb.mxu3 %v2599_v43 }
  0x99   :  { %893 = vmatpush.msra.mxu2 %v2654_v1  ;;  %874 = vmatpush.msra.mxu1 %v2657_v26 }
  0x9a   :  { %919 = vmatpush.msrb.mxu3 %v2612_v17 }
  0x9b   :  { %894 = vmatpush.msra.mxu2 %v2664_v5  ;;  %875 = vmatpush.msra.mxu1 %v2666_v4 }
  0x9c   :  { %920 = vmatpush.msrb.mxu3 %v2622_v53 }
  0x9d   :  { %895 = vmatpush.msra.mxu2 %v2672_v61  ;;  %876 = vmatpush.msra.mxu1 %v2674_v9 }
  0x9e   :  { %921 = vmatpush.msrb.mxu3 %v2631_v47 }
  0x9f   :  { %896 = vmatpush.msra.mxu2 %v2679_v12  ;;  %877 = vmatpush.msra.mxu1 %v2683_v29 }
  0xa0   :  { %922 = vmatpush.msrb.mxu3 %v2650_v0 }
  0xa1   :  { %897 = vmatpush.msra.mxu2 %v2688_v16  ;;  %878 = vmatpush.msra.mxu1 %v2691_v6 }
  0xa2   :  { %923 = vmatpush.msrb.mxu3 %v2660_v3 }
  0xa3   :  { %898 = vmatpush.msra.mxu2 %v2695_v32  ;;  %879 = vmatpush.msra.mxu1 %v2698_v18 }
  0xa5   :  { %899 = vmatpush.msra.mxu2 %v2703_v13  ;;  %880 = vmatpush.msra.mxu1 %v2706_v21 }
  0xa7   :  { %900 = vmatpush.msra.mxu2 %v2718_v35  ;;  %881 = vmatpush.msra.mxu1 %v2713_v22 }
  0xa9   :  { %901 = vmatpush.msra.mxu2 %v2720_v8  ;;  %v154_v41 = vpop.f32.mrf.mxu1  ;;  %882 = vmatpush.msra.mxu1 %v2723_v38 }
  0xaa   :  { %v155_v18 = vadd.f32 %v154_v41, %v129_v48 }
  0xab   :  { %902 = vmatpush.msra.mxu2 %v2727_v25  ;;  %883 = vmatpush.msra.mxu1 %v2731_v28 }
  0xac   :  { %v422_v21 = vpop.f32.mrf.mxu0 }
  0xad   :  { %903 = vmatpush.msra.mxu2 %v2735_v30  ;;  %v485_v22 = vadd.f32 %v422_v21, %v155_v18 }
  0xaf   :  { %v166_v51 = vpop.f32.mrf.mxu2  ;;  %v2192_v25 = vmul.f32 -1.442695, %v485_v22 }
  0xb0   :  { %v2847_v55 = vadd.f32 %v166_v51, %v129_v48  ;;  %v277_v57 = vpop.f32.mrf.mxu3 }
  0xb1   :  { %v157_v59 = vpop.f32.mrf.mxu1  ;;  %2238 = vpow2.f32 %v2192_v25  ;;  %v278_v44 = vadd.f32 %v277_v57, %v132_v2 }
  0xb2   :  { %3736 = vst [vmem:[#allocation12_spill] sm:$0xff] %v2847_v55  ;;  %v2849_v62 = vadd.f32 %v157_v59, %v129_v48 }
  0xb8   :  { %v169_v7 = vpop.f32.mrf.mxu2 }
  0xb9   :  { %v2851_v10 = vadd.f32 %v169_v7, %v129_v48  ;;  %v280_v15 = vpop.f32.mrf.mxu3  ;;  %v160_v19 = vpop.f32.mrf.mxu1 }
  0xba   :  { %v2853_v24 = vadd.f32 %v280_v15, %v132_v2  ;;  %v2855_v27 = vadd.f32 %v160_v19, %v129_v48 }
  0xbb   :  { %3737 = vst [vmem:[#allocation13_spill] sm:$0xff] %v2851_v10 }
  0xc0   :  { %v172_v31 = vpop.f32.mrf.mxu2 }
  0xc1   :  { %v2857_v33 = vadd.f32 %v172_v31, %v129_v48  ;;  %v283_v11 = vpop.f32.mrf.mxu3  ;;  %v163_v34 = vpop.f32.mrf.mxu1 }
  0xc2   :  { %v2859_v36 = vadd.f32 %v283_v11, %v132_v2  ;;  %v2861_v37 = vadd.f32 %v163_v34, %v129_v48 }
  0xc3   :  { %3738 = vst [vmem:[#allocation14_spill] sm:$0xff] %v2857_v33  ;;  %v3144_v33 = vld [vmem:[#allocation8 + $0x8] sm:$0xff] }
  0xc4   :  { %3739 = vst [vmem:[#allocation15_spill] sm:$0xff] %v2861_v37 }
  0xc8   :  { %v175_v39 = vpop.f32.mrf.mxu2 }
  0xc9   :  { %v2863_v40 = vadd.f32 %v175_v39, %v129_v48  ;;  %v286_v14 = vpop.f32.mrf.mxu3  ;;  %v195_v42 = vpop.f32.mrf.mxu1 }
  0xca   :  { %v2865_v43 = vadd.f32 %v286_v14, %v132_v2  ;;  %v2239_v48 = vpop.eup %2238  ;;  %v196_v11 = vadd.f32 %v195_v42, %v130_v45 }
  0xcb   :  { %3740 = vst [vmem:[#allocation16_spill] sm:$0xff] %v2863_v40  ;;  %v492_v31 = vadd.f32 1.0, %v2239_v48  ;;  %v3127_v40 = vld [vmem:[#allocation8 + $0x50] sm:$0xff] }
  0xcc   :  { %3741 = vst [vmem:[#allocation17_spill] sm:$0xff] %v2865_v43 }
  0xcd   :  { %vm498_vm1 = vweird.f32 %v492_v31  ;;  %v502_v25 = vand.u32 2147483647, %v492_v31 }
  0xcf   :  { %vm503_vm6 = vcmp.eq.f32.partialorder %v502_v25, 8.507059e+37 }
  0xd0   :  { %v2867_v46 = vpop.f32.mrf.mxu2 }
  0xd1   :  { %v289_v49 = vpop.f32.mrf.mxu3  ;;  %v198_v50 = vpop.f32.mrf.mxu1  ;;  %v237_v42 = vadd.f32 %v2867_v46, %v131_v20 }
  0xd2   :  { %v2869_v17 = vadd.f32 %v289_v49, %v132_v2  ;;  %v2871_v52 = vadd.f32 %v198_v50, %v130_v45 }
  0xd4   :  { %3742 = vst [vmem:[#allocation18_spill] sm:$0xff] %v2869_v17 }
  0xd8   :  { %v239_v53 = vpop.f32.mrf.mxu2 }
  0xd9   :  { %v2873_v54 = vadd.f32 %v239_v53, %v131_v20  ;;  %v292_v56 = vpop.f32.mrf.mxu3  ;;  %v201_v47 = vpop.f32.mrf.mxu1 }
  0xda   :  { %v2875_v58 = vadd.f32 %v292_v56, %v132_v2  ;;  %v2877_v60 = vadd.f32 %v201_v47, %v130_v45 }
  0xdc   :  { %3743 = vst [vmem:[#allocation19_spill] sm:$0xff] %v2875_v58 }
  0xe0   :  { %v242_v63 = vpop.f32.mrf.mxu2 }
  0xe1   :  { %v2879_v23 = vadd.f32 %v242_v63, %v131_v20  ;;  %v295_v0 = vpop.f32.mrf.mxu3  ;;  %v204_v1 = vpop.f32.mrf.mxu1 }
  0xe2   :  { %v2881_v26 = vadd.f32 %v295_v0, %v132_v2  ;;  %v2883_v3 = vadd.f32 %v204_v1, %v130_v45 }
  0xe4   :  { %3744 = vst [vmem:[#allocation20_spill] sm:$0xff] %v2881_v26  ;;  %v3141_v26 = vld [vmem:[#allocation8 + $0x38] sm:$0xff] }
  0xe5   :  { %3745 = vst [vmem:[#allocation21_spill] sm:$0xff] %v2883_v3 }
  0xe8   :  { %v245_v5 = vpop.f32.mrf.mxu2 }
  0xe9   :  { %v2885_v4 = vadd.f32 %v245_v5, %v131_v20  ;;  %v298_v61 = vpop.f32.mrf.mxu3  ;;  %v207_v9 = vpop.f32.mrf.mxu1 }
  0xea   :  { %v2887_v12 = vadd.f32 %v298_v61, %v132_v2  ;;  %v2889_v29 = vadd.f32 %v207_v9, %v130_v45 }
  0xeb   :  { %3746 = vst [vmem:[#allocation22_spill] sm:$0xff] %v2885_v4 }
  0xec   :  { %3747 = vst [vmem:[#allocation23_spill] sm:$0xff] %v2887_v12 }
  0xed   :  { %3748 = vst [vmem:[#allocation24_spill] sm:$0xff] %v2889_v29 }
  0xf0   :  { %v248_v16 = vpop.f32.mrf.mxu2 }
  0xf1   :  { %v2891_v6 = vadd.f32 %v248_v16, %v131_v20  ;;  %v210_v32 = vpop.f32.mrf.mxu1  ;;  %v482_v30 = vpop.f32.mrf.mxu3 }
  0xf2   :  { %v2893_v13 = vadd.f32 %v210_v32, %v130_v45  ;;  %v488_v59 = vadd.f32 %v482_v30, %v278_v44 }
  0xf3   :  { %3749 = vst [vmem:[#allocation25_spill] sm:$0xff] %v2891_v6 }
  0xf4   :  { %3750 = vst [vmem:[#allocation26_spill] sm:$0xff] %v2893_v13  ;;  %v2194_v19 = vmul.f32 -1.442695, %v488_v59 }
  0xf6   :  { %2240 = vpow2.f32 %v2194_v19 }
  0xf7   :  { %2242 = vrcp.f32 %v492_v31 }
  0xf8   :  { %v251_v35 = vpop.f32.mrf.mxu2 }
  0xf9   :  { %v2895_v8 = vadd.f32 %v251_v35, %v131_v20  ;;  %v213_v38 = vpop.f32.mrf.mxu1  ;;  %v504_v35 = vand.u32 2147483648, %v492_v31 }
  0xfa   :  { %v2897_v28 = vadd.f32 %v213_v38, %v130_v45 }
  0xfb   :  { %3751 = vst [vmem:[#allocation27_spill] sm:$0xff] %v2895_v8  ;;  %v3146_v8 = vld [vmem:[#allocation8 + $0x10] sm:$0xff] }
  0xfc   :  { %3752 = vst [vmem:[#allocation28_spill] sm:$0xff] %v2897_v28  ;;  %v2241_v57 = vpop.eup %2240 }
  0xfd   :  { %v2243_v2 = vpop.eup %2242  ;;  %v531_v53 = vadd.f32 1.0, %v2241_v57 }
  0xfe   :  { %v494_v47 = vmul.f32 %v2243_v2, %v492_v31  ;;  %vm499_vm0 = vweird.f32 %v2243_v2 }
  0xff   :  { %vm500_vm3 = vmor %vm498_vm1, %vm499_vm0  ;;  %v543_v57 = vand.u32 2147483648, %v531_v53  ;;  %vm537_vm9 = vweird.f32 %v531_v53 }
 0x100   :  { %v254_v51 = vpop.f32.mrf.mxu2  ;;  %v495_v0 = vsub.f32 1.0, %v494_v47 }
 0x101   :  { %v2899_v7 = vadd.f32 %v254_v51, %v131_v20  ;;  %v216_v15 = vpop.f32.mrf.mxu1  ;;  %v544_v47 = vor.u32 1.1754944e-38, %v543_v57 }
 0x102   :  { %v2901_v41 = vadd.f32 %v216_v15, %v130_v45  ;;  %v496_v61 = vmul.f32 %v2243_v2, %v495_v0  ;;  %v505_v15 = vor.u32 1.1754944e-38, %v504_v35  ;;  %v2942_v35 = vld [vmem:[#allocation8 + $0xc0] sm:$0xff] }
 0x103   :  { %3753 = vst [vmem:[#allocation29_spill] sm:$0xff] %v2899_v7  ;;  %v3135_v7 = vld [vmem:[#allocation8 + $0x28] sm:$0xff] }
 0x104   :  { %3754 = vst [vmem:[#allocation30_spill] sm:$0xff] %v2901_v41  ;;  %v497_v21 = vadd.f32 %v2243_v2, %v496_v61  ;;  %v2927_v61 = vld [vmem:[#allocation8 + $0x160] sm:$0xff]  ;;  %v3125_v41 = vld [vmem:[#allocation8 + $0x48] sm:$0xff] }
 0x106   :  { %v501_v46 = vsel %vm500_vm3, %v2243_v2, %v497_v21  ;;  %v541_v2 = vand.u32 2147483647, %v531_v53 }
 0x108   :  { %vm542_vm11 = vcmp.eq.f32.partialorder %v541_v2, 8.507059e+37 }
 0x109   :  { %v257_v34 = vpop.f32.mrf.mxu2  ;;  %v442_v14 = vpop.f32.mrf.mxu1 }
 0x10a   :  { %v2903_v39 = vadd.f32 %v257_v34, %v131_v20  ;;  %v486_v49 = vadd.f32 %v442_v14, %v196_v11  ;;  %v506_v11 = vsel %vm503_vm6, %v505_v15, %v501_v46  ;;  %v2959_v15 = vld [vmem:[#allocation8 + $0x20] sm:$0xff] }
 0x10c   :  { %3755 = vst [vmem:[#allocation31_spill] sm:$0xff] %v2903_v39  ;;  %v2193_v50 = vmul.f32 -1.442695, %v486_v49 }
 0x10e   :  { %2244 = vpow2.f32 %v2193_v50 }
 0x10f   :  { %2246 = vrcp.f32 %v531_v53 }
 0x111   :  { %v462_v1 = vpop.f32.mrf.mxu2 }
 0x112   :  { %v487_v45 = vadd.f32 %v462_v1, %v237_v42  ;;  %v2915_v42 = vld [vmem:[#allocation8 + $0x1e0] sm:$0xff] }
 0x113   :  { %848 = vmatpush.msra.mxu0 %v2915_v42 }
 0x114   :  { %v2245_v56 = vpop.eup %2244 }
 0x115   :  { %v511_v63 = vadd.f32 1.0, %v2245_v56  ;;  %v2247_v5 = vpop.eup %2246 }
 0x116   :  { %v533_v32 = vmul.f32 %v2247_v5, %v531_v53  ;;  %vm538_vm8 = vweird.f32 %v2247_v5  ;;  %v2918_v53 = vld [vmem:[#allocation8 + $0x1c0] sm:$0xff] }
 0x117   :  { %2248 = vrcp.f32 %v511_v63  ;;  %v523_v22 = vand.u32 2147483648, %v511_v63  ;;  %v521_v30 = vand.u32 2147483647, %v511_v63  ;;  %vm517_vm4 = vweird.f32 %v511_v63  ;;  %vm539_vm10 = vmor %vm537_vm9, %vm538_vm8  ;;  %849 = vmatpush.msra.mxu0 %v2918_v53 }
 0x118   :  { %2250 = vtanh.f32 %v487_v45  ;;  %v534_v44 = vsub.f32 1.0, %v533_v32  ;;  %v2921_v45 = vld [vmem:[#allocation8 + $0x1a0] sm:$0xff] }
 0x119   :  { %v524_v59 = vor.u32 1.1754944e-38, %v523_v22  ;;  %vm522_vm7 = vcmp.eq.f32.partialorder %v521_v30, 8.507059e+37  ;;  %850 = vmatpush.msra.mxu0 %v2921_v45  ;;  %v2936_v32 = vld [vmem:[#allocation8 + $0x100] sm:$0xff] }
 0x11a   :  { %v535_v19 = vmul.f32 %v2247_v5, %v534_v44  ;;  %v2947_v30 = vld [vmem:[#allocation8 + $0xa0] sm:$0xff] }
 0x11c   :  { %v536_v50 = vadd.f32 %v2247_v5, %v535_v19  ;;  %v2962_v19 = vld [vmem:[#allocation8] sm:$0xff] }
 0x11d   :  { %v2249_v9 = vpop.eup %2248 }
 0x11e   :  { %v513_v16 = vmul.f32 %v2249_v9, %v511_v63  ;;  %vm518_vm2 = vweird.f32 %v2249_v9  ;;  %v2251_v51 = vpop.eup %2250  ;;  %v540_v56 = vsel %vm539_vm10, %v2247_v5, %v536_v50  ;;  %v2924_v5 = vld [vmem:[#allocation8 + $0x180] sm:$0xff] }
 0x11f   :  { %vm519_vm5 = vmor %vm517_vm4, %vm518_vm2  ;;  %v548_v49 = vmul.f32 %v2251_v51, %v506_v11  ;;  %v545_v0 = vsel %vm542_vm11, %v544_v47, %v540_v56  ;;  %851 = vmatpush.msra.mxu0 %v2924_v5  ;;  %v2952_v51 = vld [vmem:[#allocation8 + $0x60] sm:$0xff] }
 0x120   :  { %v514_v18 = vsub.f32 1.0, %v513_v16  ;;  %v2933_v16 = vld [vmem:[#allocation8 + $0x120] sm:$0xff] }
 0x121   :  { %852 = vmatpush.msra.mxu0 %v2927_v61 }
 0x122   :  { %v515_v38 = vmul.f32 %v2249_v9, %v514_v18  ;;  %v2939_v18 = vld [vmem:[#allocation8 + $0xe0] sm:$0xff] }
 0x124   :  { %v516_v20 = vadd.f32 %v2249_v9, %v515_v38 }
 0x126   :  { %v520_v48 = vsel %vm519_vm5, %v2249_v9, %v516_v20  ;;  %v2930_v9 = vld [vmem:[#allocation8 + $0x140] sm:$0xff] }
 0x127   :  { %v525_v34 = vsel %vm522_vm7, %v524_v59, %v520_v48  ;;  %853 = vmatpush.msra.mxu0 %v2930_v9  ;;  %v2950_v20 = vld [vmem:[#allocation8 + $0x80] sm:$0xff] }
 0x128   :  { %v547_v14 = vmul.f32 0.0, %v525_v34  ;;  %v2955_v59 = vld [vmem:[#allocation8 + $0x40] sm:$0xff] }
 0x129   :  { %854 = vmatpush.msra.mxu0 %v2933_v16 }
 0x12a   :  { %v2906_v31 = vadd.f32 %v548_v49, %v547_v14 }
 0x12b   :  { %855 = vmatpush.msra.mxu0 %v2936_v32 }
 0x12c   :  { %2252 = vtanh.f32 %v2906_v31 }
 0x12d   :  { %856 = vmatpush.msra.mxu0 %v2939_v18 }
 0x12f   :  { %857 = vmatpush.msra.mxu0 %v2942_v35 }
 0x131   :  { %858 = vmatpush.msra.mxu0 %v2947_v30 }
 0x132   :  { %v2253_v63 = vpop.eup %2252 }
 0x133   :  { %v2909_v1 = vmul.f32 %v2253_v63, %v545_v0  ;;  %859 = vmatpush.msra.mxu0 %v2950_v20 }
 0x135   :  { %3756 = vst [vmem:[#allocation32_spill] sm:$0xff] %v2909_v1  ;;  %642 = vmatmul.f32.vlgmr.msrb.gmra.mxu0 %v2909_v1  ;;  %662 = vmatmul.f32.vlgmr.msrb.gmra.mxu1 %v2909_v1 }
 0x136   :  { %682 = vmatmul.f32.vlgmr.msrb.gmra.mxu2 %v2909_v1  ;;  %702 = vmatmul.f32.vlgmr.msra.gmra.mxu3 %v2909_v1 }
 0x137   :  { %860 = vmatpush.msra.mxu0 %v2952_v51 }
 0x139   :  { %861 = vmatpush.msra.mxu0 %v2955_v59 }
 0x13b   :  { %862 = vmatpush.msra.mxu0 %v2959_v15 }
 0x13d   :  { %863 = vmatpush.msra.mxu0 %v2962_v19 }
 0x13f   :  { %1070 = vmatpush.msrb.mxu0 %v2915_v42 }
 0x141   :  { %1071 = vmatpush.msrb.mxu0 %v2918_v53 }
 0x143   :  { %1072 = vmatpush.msrb.mxu0 %v2921_v45 }
 0x145   :  { %1073 = vmatpush.msrb.mxu0 %v2924_v5 }
 0x147   :  { %1074 = vmatpush.msrb.mxu0 %v2927_v61 }
 0x149   :  { %1075 = vmatpush.msrb.mxu0 %v2930_v9 }
 0x14b   :  { %1076 = vmatpush.msrb.mxu0 %v2933_v16 }
 0x14d   :  { %1077 = vmatpush.msrb.mxu0 %v2936_v32 }
 0x14f   :  { %1078 = vmatpush.msrb.mxu0 %v2939_v18 }
 0x151   :  { %1079 = vmatpush.msrb.mxu0 %v2942_v35 }
 0x153   :  { %1080 = vmatpush.msrb.mxu0 %v2947_v30 }
 0x155   :  { %1081 = vmatpush.msrb.mxu0 %v2950_v20 }
 0x157   :  { %1082 = vmatpush.msrb.mxu0 %v2952_v51 }
 0x159   :  { %1083 = vmatpush.msrb.mxu0 %v2955_v59 }
 0x15b   :  { %1084 = vmatpush.msrb.mxu0 %v2959_v15 }
 0x15d   :  { %1085 = vmatpush.msrb.mxu0 %v2962_v19 }
 0x1b2   :  { %v643_v21 = vpop.f32.mrf.mxu0  ;;  %v663_v22 = vpop.f32.mrf.mxu1 }
 0x1b3   :  { %v706_v38 = vadd.f32 %v643_v21, %v2849_v62  ;;  %v707_v25 = vadd.f32 %v663_v22, %v2871_v52 }
 0x1b5   :  { %v2195_v44 = vmul.f32 -1.442695, %v706_v38  ;;  %v2196_v46 = vmul.f32 -1.442695, %v707_v25 }
 0x1b7   :  { %2254 = vpow2.f32 %v2195_v44 }
 0x1b8   :  { %2256 = vpow2.f32 %v2196_v46 }
 0x1b9   :  { %v703_v62 = vpop.f32.mrf.mxu3 }
 0x1ba   :  { %v709_v52 = vadd.f32 %v703_v62, %v2853_v24  ;;  %v683_v24 = vpop.f32.mrf.mxu2 }
 0x1bb   :  { %v708_v56 = vadd.f32 %v683_v24, %v2873_v54 }
 0x1bc   :  { %v2197_v48 = vmul.f32 -1.442695, %v709_v52 }
 0x1bd   :  { %v2255_v11 = vpop.eup %2254 }
 0x1be   :  { %v2257_v34 = vpop.eup %2256  ;;  %v713_v14 = vadd.f32 1.0, %v2255_v11  ;;  %2258 = vpow2.f32 %v2197_v48 }
 0x1bf   :  { %v732_v49 = vadd.f32 1.0, %v2257_v34 }
 0x1c0   :  { %2260 = vrcp.f32 %v713_v14  ;;  %v725_v38 = vand.u32 2147483648, %v713_v14  ;;  %v723_v46 = vand.u32 2147483647, %v713_v14  ;;  %vm719_vm14 = vweird.f32 %v713_v14 }
 0x1c1   :  { %2262 = vrcp.f32 %v732_v49  ;;  %v744_v25 = vand.u32 2147483648, %v732_v49  ;;  %v742_v54 = vand.u32 2147483647, %v732_v49  ;;  %vm738_vm15 = vweird.f32 %v732_v49 }
 0x1c2   :  { %v726_v11 = vor.u32 1.1754944e-38, %v725_v38  ;;  %vm724_vm2 = vcmp.eq.f32.partialorder %v723_v46, 8.507059e+37 }
 0x1c3   :  { %vm743_vm3 = vcmp.eq.f32.partialorder %v742_v54, 8.507059e+37 }
 0x1c4   :  { %v2259_v50 = vpop.eup %2258 }
 0x1c5   :  { %v752_v57 = vadd.f32 1.0, %v2259_v50  ;;  %v745_v50 = vor.u32 1.1754944e-38, %v744_v25 }
 0x1c6   :  { %v2261_v2 = vpop.eup %2260 }
 0x1c7   :  { %v2263_v47 = vpop.eup %2262  ;;  %v715_v63 = vmul.f32 %v2261_v2, %v713_v14  ;;  %2264 = vrcp.f32 %v752_v57  ;;  %vm720_vm12 = vweird.f32 %v2261_v2  ;;  %vm758_vm5 = vweird.f32 %v752_v57 }
 0x1c8   :  { %v734_v0 = vmul.f32 %v2263_v47, %v732_v49  ;;  %2266 = vtanh.f32 %v708_v56  ;;  %vm739_vm13 = vweird.f32 %v2263_v47  ;;  %vm721_vm0 = vmor %vm719_vm14, %vm720_vm12  ;;  %v762_v25 = vand.u32 2147483647, %v752_v57 }
 0x1c9   :  { %v716_v21 = vsub.f32 1.0, %v715_v63  ;;  %vm740_vm1 = vmor %vm738_vm15, %vm739_vm13 }
 0x1ca   :  { %v735_v22 = vsub.f32 1.0, %v734_v0  ;;  %vm763_vm7 = vcmp.eq.f32.partialorder %v762_v25, 8.507059e+37 }
 0x1cb   :  { %v717_v44 = vmul.f32 %v2261_v2, %v716_v21 }
 0x1cc   :  { %v736_v62 = vmul.f32 %v2263_v47, %v735_v22 }
 0x1cd   :  { %v2265_v52 = vpop.eup %2264  ;;  %v718_v48 = vadd.f32 %v2261_v2, %v717_v44 }
 0x1ce   :  { %v737_v34 = vadd.f32 %v2263_v47, %v736_v62  ;;  %v754_v24 = vmul.f32 %v2265_v52, %v752_v57  ;;  %v2267_v63 = vpop.eup %2266  ;;  %vm759_vm4 = vweird.f32 %v2265_v52 }
 0x1cf   :  { %v722_v56 = vsel %vm721_vm0, %v2261_v2, %v718_v48  ;;  %vm760_vm6 = vmor %vm758_vm5, %vm759_vm4 }
 0x1d0   :  { %v727_v0 = vsel %vm724_vm2, %v726_v11, %v722_v56  ;;  %v741_v21 = vsel %vm740_vm1, %v2263_v47, %v737_v34  ;;  %v755_v22 = vsub.f32 1.0, %v754_v24  ;;  %v764_v47 = vand.u32 2147483648, %v752_v57  ;;  %v3056_v57 = vld [vmem:[#allocation8 + $0x150] sm:$0xff]  ;;  %v3063_v34 = vld [vmem:[#allocation8 + $0x128] sm:$0xff] }
 0x1d1   :  { %v746_v44 = vsel %vm743_vm3, %v745_v50, %v741_v21  ;;  %v769_v14 = vmul.f32 %v2267_v63, %v727_v0  ;;  %3758 = vst [vmem:[#allocation34_spill] sm:$0xff] %v3056_v57  ;;  %v3065_v24 = vld [vmem:[#allocation8 + $0x130] sm:$0xff]  ;;  %v3067_v50 = vld [vmem:[#allocation8 + $0x138] sm:$0xff]  ;;  %v3072_v56 = vld [vmem:[#allocation8 + $0x108] sm:$0xff] }
 0x1d2   :  { %v768_v49 = vmul.f32 %v746_v44, %v2906_v31  ;;  %v756_v38 = vmul.f32 %v2265_v52, %v755_v22  ;;  %v765_v46 = vor.u32 1.1754944e-38, %v764_v47  ;;  %3760 = vst [vmem:[#allocation36_spill] sm:$0xff] %v3063_v34  ;;  %v3074_v63 = vld [vmem:[#allocation8 + $0x110] sm:$0xff]  ;;  %v3076_v0 = vld [vmem:[#allocation8 + $0x118] sm:$0xff]  ;;  %v3081_v21 = vld [vmem:[#allocation8 + $0xe8] sm:$0xff] }
 0x1d3   :  { %3761 = vst [vmem:[#allocation37_spill] sm:$0xff] %v3067_v50  ;;  %v3083_v22 = vld [vmem:[#allocation8 + $0xf0] sm:$0xff]  ;;  %v3085_v44 = vld [vmem:[#allocation8 + $0xf8] sm:$0xff] }
 0x1d4   :  { %v2978_v62 = vadd.f32 %v769_v14, %v768_v49  ;;  %v757_v2 = vadd.f32 %v2265_v52, %v756_v38  ;;  %v3090_v38 = vld [vmem:[#allocation8 + $0xc8] sm:$0xff]  ;;  %v3094_v47 = vld [vmem:[#allocation8 + $0xd8] sm:$0xff] }
 0x1d6   :  { %2268 = vtanh.f32 %v2978_v62  ;;  %v761_v31 = vsel %vm760_vm6, %v2265_v52, %v757_v2  ;;  %v3058_v52 = vld [vmem:[#allocation8 + $0x158] sm:$0xff]  ;;  %v3092_v2 = vld [vmem:[#allocation8 + $0xd0] sm:$0xff] }
 0x1d7   :  { %v766_v48 = vsel %vm763_vm7, %v765_v46, %v761_v31  ;;  %3759 = vst [vmem:[#allocation35_spill] sm:$0xff] %v3058_v52  ;;  %v3101_v46 = vld [vmem:[#allocation8 + $0xa8] sm:$0xff] }
 0x1dc   :  { %v2269_v54 = vpop.eup %2268 }
 0x1dd   :  { %v2986_v11 = vmul.f32 %v2269_v54, %v766_v48  ;;  %v3103_v54 = vld [vmem:[#allocation8 + $0xb0] sm:$0xff]  ;;  %v3105_v48 = vld [vmem:[#allocation8 + $0xb8] sm:$0xff] }
 0x1df   :  { %3757 = vst [vmem:[#allocation33_spill] sm:$0xff] %v2986_v11  ;;  %864 = vmatmul.f32.vlgmr.msra.gmra.mxu0 %v2986_v11  ;;  %884 = vmatmul.f32.vlgmr.msra.gmra.mxu1 %v2986_v11 }
 0x1e0   :  { %904 = vmatmul.f32.vlgmr.msra.gmra.mxu2 %v2986_v11  ;;  %924 = vmatmul.f32.vlgmr.msrb.gmra.mxu3 %v2986_v11 }
 0x1e1   :  { %1292 = vmatpush.msra.mxu0 %v2915_v42  ;;  %v3009_v42 = vld [vmem:[#allocation8 + $0x1e8] sm:$0xff] }
 0x1e2   :  { %1090 = vmatpush.msrb.mxu1 %v3009_v42 }
 0x1e3   :  { %1293 = vmatpush.msra.mxu0 %v2918_v53  ;;  %v3011_v53 = vld [vmem:[#allocation8 + $0x1f0] sm:$0xff] }
 0x1e4   :  { %1110 = vmatpush.msrb.mxu2 %v3011_v53 }
 0x1e5   :  { %1294 = vmatpush.msra.mxu0 %v2921_v45  ;;  %v3013_v45 = vld [vmem:[#allocation8 + $0x1f8] sm:$0xff] }
 0x1e6   :  { %1130 = vmatpush.msra.mxu3 %v3013_v45 }
 0x1e7   :  { %1295 = vmatpush.msra.mxu0 %v2924_v5  ;;  %v3018_v5 = vld [vmem:[#allocation8 + $0x1c8] sm:$0xff] }
 0x1e8   :  { %1091 = vmatpush.msrb.mxu1 %v3018_v5 }
 0x1e9   :  { %1296 = vmatpush.msra.mxu0 %v2927_v61  ;;  %v3020_v61 = vld [vmem:[#allocation8 + $0x1d0] sm:$0xff] }
 0x1ea   :  { %1111 = vmatpush.msrb.mxu2 %v3020_v61 }
 0x1eb   :  { %1297 = vmatpush.msra.mxu0 %v2930_v9  ;;  %v3022_v9 = vld [vmem:[#allocation8 + $0x1d8] sm:$0xff] }
 0x1ec   :  { %1131 = vmatpush.msra.mxu3 %v3022_v9 }
 0x1ed   :  { %1298 = vmatpush.msra.mxu0 %v2933_v16  ;;  %v3027_v16 = vld [vmem:[#allocation8 + $0x1a8] sm:$0xff] }
 0x1ee   :  { %1092 = vmatpush.msrb.mxu1 %v3027_v16 }
 0x1ef   :  { %1299 = vmatpush.msra.mxu0 %v2936_v32  ;;  %v3029_v32 = vld [vmem:[#allocation8 + $0x1b0] sm:$0xff] }
 0x1f0   :  { %1112 = vmatpush.msrb.mxu2 %v3029_v32 }
 0x1f1   :  { %1300 = vmatpush.msra.mxu0 %v2939_v18  ;;  %v3031_v18 = vld [vmem:[#allocation8 + $0x1b8] sm:$0xff] }
 0x1f2   :  { %1132 = vmatpush.msra.mxu3 %v3031_v18 }
 0x1f3   :  { %1301 = vmatpush.msra.mxu0 %v2942_v35  ;;  %v3036_v35 = vld [vmem:[#allocation8 + $0x188] sm:$0xff] }
 0x1f4   :  { %1093 = vmatpush.msrb.mxu1 %v3036_v35 }
 0x1f5   :  { %1302 = vmatpush.msra.mxu0 %v2947_v30  ;;  %v3038_v30 = vld [vmem:[#allocation8 + $0x190] sm:$0xff] }
 0x1f6   :  { %1113 = vmatpush.msrb.mxu2 %v3038_v30 }
 0x1f7   :  { %1303 = vmatpush.msra.mxu0 %v2950_v20  ;;  %v3040_v20 = vld [vmem:[#allocation8 + $0x198] sm:$0xff] }
 0x1f8   :  { %1133 = vmatpush.msra.mxu3 %v3040_v20 }
 0x1f9   :  { %1304 = vmatpush.msra.mxu0 %v2952_v51  ;;  %v3045_v51 = vld [vmem:[#allocation8 + $0x168] sm:$0xff] }
 0x1fa   :  { %1094 = vmatpush.msrb.mxu1 %v3045_v51 }
 0x1fb   :  { %1305 = vmatpush.msra.mxu0 %v2955_v59  ;;  %v3047_v59 = vld [vmem:[#allocation8 + $0x170] sm:$0xff] }
 0x1fc   :  { %1114 = vmatpush.msrb.mxu2 %v3047_v59 }
 0x1fd   :  { %1306 = vmatpush.msra.mxu0 %v2959_v15  ;;  %v3049_v15 = vld [vmem:[#allocation8 + $0x178] sm:$0xff] }
 0x1fe   :  { %1134 = vmatpush.msra.mxu3 %v3049_v15  ;;  %1115 = vmatpush.msrb.mxu2 %v3056_v57 }
 0x1ff   :  { %1307 = vmatpush.msra.mxu0 %v2962_v19  ;;  %v3054_v19 = vld [vmem:[#allocation8 + $0x148] sm:$0xff] }
 0x200   :  { %1095 = vmatpush.msrb.mxu1 %v3054_v19  ;;  %1135 = vmatpush.msra.mxu3 %v3058_v52 }
 0x201   :  { %1116 = vmatpush.msrb.mxu2 %v3065_v24 }
 0x202   :  { %1096 = vmatpush.msrb.mxu1 %v3063_v34  ;;  %1136 = vmatpush.msra.mxu3 %v3067_v50 }
 0x203   :  { %1117 = vmatpush.msrb.mxu2 %v3074_v63 }
 0x204   :  { %1097 = vmatpush.msrb.mxu1 %v3072_v56  ;;  %1137 = vmatpush.msra.mxu3 %v3076_v0 }
 0x205   :  { %1118 = vmatpush.msrb.mxu2 %v3083_v22 }
 0x206   :  { %1098 = vmatpush.msrb.mxu1 %v3081_v21  ;;  %1138 = vmatpush.msra.mxu3 %v3085_v44 }
 0x207   :  { %1119 = vmatpush.msrb.mxu2 %v3092_v2 }
 0x208   :  { %1099 = vmatpush.msrb.mxu1 %v3090_v38  ;;  %1139 = vmatpush.msra.mxu3 %v3094_v47 }
 0x209   :  { %1120 = vmatpush.msrb.mxu2 %v3103_v54 }
 0x20a   :  { %1100 = vmatpush.msrb.mxu1 %v3101_v46  ;;  %1140 = vmatpush.msra.mxu3 %v3105_v48 }
 0x25c   :  { %v865_v14 = vpop.f32.mrf.mxu0  ;;  %v885_v49 = vpop.f32.mrf.mxu1 }
 0x25d   :  { %v928_v25 = vadd.f32 %v865_v14, %v2855_v27  ;;  %v929_v31 = vadd.f32 %v885_v49, %v2877_v60  ;;  %v3110_v27 = vld [vmem:[#allocation8 + $0x88] sm:$0xff]  ;;  %v3112_v60 = vld [vmem:[#allocation8 + $0x90] sm:$0xff]  ;;  %v3114_v14 = vld [vmem:[#allocation8 + $0x98] sm:$0xff] }
 0x25e   :  { %1101 = vmatpush.msrb.mxu1 %v3110_v27  ;;  %1121 = vmatpush.msrb.mxu2 %v3112_v60  ;;  %v3118_v49 = vld [vmem:[#allocation8 + $0x68] sm:$0xff] }
 0x25f   :  { %v2198_v39 = vmul.f32 -1.442695, %v928_v25  ;;  %v2199_v12 = vmul.f32 -1.442695, %v929_v31  ;;  %v3120_v25 = vld [vmem:[#allocation8 + $0x70] sm:$0xff]  ;;  %v3122_v31 = vld [vmem:[#allocation8 + $0x78] sm:$0xff]  ;;  %1141 = vmatpush.msra.mxu3 %v3114_v14 }
 0x260   :  { %1102 = vmatpush.msrb.mxu1 %v3118_v49  ;;  %1122 = vmatpush.msrb.mxu2 %v3120_v25 }
 0x261   :  { %2270 = vpow2.f32 %v2198_v39  ;;  %v3131_v39 = vld [vmem:[#allocation8 + $0x58] sm:$0xff]  ;;  %1142 = vmatpush.msra.mxu3 %v3122_v31 }
 0x262   :  { %2272 = vpow2.f32 %v2199_v12  ;;  %v3137_v12 = vld [vmem:[#allocation8 + $0x30] sm:$0xff]  ;;  %1103 = vmatpush.msrb.mxu1 %v3125_v41  ;;  %1123 = vmatpush.msrb.mxu2 %v3127_v40 }
 0x263   :  { %v925_v11 = vpop.f32.mrf.mxu3  ;;  %1143 = vmatpush.msra.mxu3 %v3131_v39 }
 0x264   :  { %v931_v1 = vadd.f32 %v925_v11, %v2859_v36  ;;  %1104 = vmatpush.msrb.mxu1 %v3135_v7  ;;  %1124 = vmatpush.msrb.mxu2 %v3137_v12  ;;  %v3150_v11 = vld [vmem:[#allocation8 + $0x18] sm:$0xff] }
 0x265   :  { %1144 = vmatpush.msra.mxu3 %v3141_v26 }
 0x266   :  { %v2200_v28 = vmul.f32 -1.442695, %v931_v1  ;;  %1105 = vmatpush.msrb.mxu1 %v3144_v33  ;;  %1125 = vmatpush.msrb.mxu2 %v3146_v8 }
 0x267   :  { %v2271_v36 = vpop.eup %2270  ;;  %1145 = vmatpush.msra.mxu3 %v3150_v11 }
 0x268   :  { %v2273_v58 = vpop.eup %2272  ;;  %v3152_v13 = vadd.f32 1.0, %v2271_v36  ;;  %2274 = vpow2.f32 %v2200_v28  ;;  %1312 = vmatpush.msra.mxu1 %v3009_v42  ;;  %1332 = vmatpush.msra.mxu2 %v3011_v53 }
 0x269   :  { %v3155_v1 = vadd.f32 1.0, %v2273_v58  ;;  %1352 = vmatpush.msrb.mxu3 %v3013_v45  ;;  %v905_v58 = vpop.f32.mrf.mxu2 }
 0x26a   :  { %2276 = vrcp.f32 %v3152_v13  ;;  %1313 = vmatpush.msra.mxu1 %v3018_v5  ;;  %1333 = vmatpush.msra.mxu2 %v3020_v61  ;;  %v930_v6 = vadd.f32 %v905_v58, %v2879_v23  ;;  %v947_v58 = vand.u32 2147483648, %v3152_v13  ;;  %v945_v3 = vand.u32 2147483647, %v3152_v13 }
 0x26b   :  { %2278 = vrcp.f32 %v3155_v1  ;;  %1353 = vmatpush.msrb.mxu3 %v3022_v9  ;;  %v966_v4 = vand.u32 2147483648, %v3155_v1  ;;  %v964_v37 = vand.u32 2147483647, %v3155_v1  ;;  %vm941_vm10 = vweird.f32 %v3152_v13 }
 0x26c   :  { %1314 = vmatpush.msra.mxu1 %v3027_v16  ;;  %1334 = vmatpush.msra.mxu2 %v3029_v32  ;;  %vm960_vm11 = vweird.f32 %v3155_v1  ;;  %vm946_vm14 = vcmp.eq.f32.partialorder %v945_v3, 8.507059e+37 }
 0x26d   :  { %1354 = vmatpush.msrb.mxu3 %v3031_v18  ;;  %vm965_vm15 = vcmp.eq.f32.partialorder %v964_v37, 8.507059e+37 }
 0x26e   :  { %v2275_v28 = vpop.eup %2274  ;;  %1315 = vmatpush.msra.mxu1 %v3036_v35  ;;  %1335 = vmatpush.msra.mxu2 %v3038_v30 }
 0x26f   :  { %v3169_v36 = vadd.f32 1.0, %v2275_v28  ;;  %1355 = vmatpush.msrb.mxu3 %v3040_v20 }
 0x270   :  { %v2277_v10 = vpop.eup %2276  ;;  %1316 = vmatpush.msra.mxu1 %v3045_v51  ;;  %1336 = vmatpush.msra.mxu2 %v3047_v59 }
 0x271   :  { %v2279_v17 = vpop.eup %2278  ;;  %v937_v29 = vmul.f32 %v2277_v10, %v3152_v13  ;;  %2280 = vrcp.f32 %v3169_v36  ;;  %1356 = vmatpush.msrb.mxu3 %v3049_v15  ;;  %vm942_vm8 = vweird.f32 %v2277_v10  ;;  %vm980_vm1 = vweird.f32 %v3169_v36 }
 0x272   :  { %v956_v28 = vmul.f32 %v2279_v17, %v3155_v1  ;;  %2282 = vtanh.f32 %v930_v6  ;;  %1317 = vmatpush.msra.mxu1 %v3054_v19  ;;  %1337 = vmatpush.msra.mxu2 %v3056_v57  ;;  %vm961_vm9 = vweird.f32 %v2279_v17  ;;  %vm943_vm12 = vmor %vm941_vm10, %vm942_vm8 }
 0x273   :  { %v938_v55 = vsub.f32 1.0, %v937_v29  ;;  %1357 = vmatpush.msrb.mxu3 %v3058_v52  ;;  %vm962_vm13 = vmor %vm960_vm11, %vm961_vm9  ;;  %v967_v52 = vor.u32 1.1754944e-38, %v966_v4  ;;  %v986_v4 = vand.u32 2147483648, %v3169_v36 }
 0x274   :  { %v957_v23 = vsub.f32 1.0, %v956_v28  ;;  %1318 = vmatpush.msra.mxu1 %v3063_v34  ;;  %1338 = vmatpush.msra.mxu2 %v3065_v24 }
 0x275   :  { %v939_v43 = vmul.f32 %v2277_v10, %v938_v55  ;;  %1358 = vmatpush.msrb.mxu3 %v3067_v50  ;;  %v948_v55 = vor.u32 1.1754944e-38, %v947_v58 }
 0x276   :  { %v958_v29 = vmul.f32 %v2279_v17, %v957_v23  ;;  %1319 = vmatpush.msra.mxu1 %v3072_v56  ;;  %1339 = vmatpush.msra.mxu2 %v3074_v63 }
 0x277   :  { %v2281_v28 = vpop.eup %2280  ;;  %v940_v6 = vadd.f32 %v2277_v10, %v939_v43  ;;  %1359 = vmatpush.msrb.mxu3 %v3076_v0 }
 0x278   :  { %v959_v57 = vadd.f32 %v2279_v17, %v958_v29  ;;  %v976_v23 = vmul.f32 %v2281_v28, %v3169_v36  ;;  %v2283_v43 = vpop.eup %2282  ;;  %1320 = vmatpush.msra.mxu1 %v3081_v21  ;;  %1340 = vmatpush.msra.mxu2 %v3083_v22  ;;  %vm981_vm0 = vweird.f32 %v2281_v28 }
 0x279   :  { %v944_v34 = vsel %vm943_vm12, %v2277_v10, %v940_v6  ;;  %1360 = vmatpush.msrb.mxu3 %v3085_v44  ;;  %vm982_vm2 = vmor %vm980_vm1, %vm981_vm0 }
 0x27a   :  { %v949_v13 = vsel %vm946_vm14, %v948_v55, %v944_v34  ;;  %v963_v50 = vsel %vm962_vm13, %v2279_v17, %v959_v57  ;;  %v977_v1 = vsub.f32 1.0, %v976_v23  ;;  %1321 = vmatpush.msra.mxu1 %v3090_v38  ;;  %1341 = vmatpush.msra.mxu2 %v3092_v2 }
 0x27b   :  { %v968_v58 = vsel %vm965_vm15, %v967_v52, %v963_v50  ;;  %v991_v29 = vmul.f32 %v2283_v43, %v949_v13  ;;  %1361 = vmatpush.msrb.mxu3 %v3094_v47  ;;  %v987_v52 = vor.u32 1.1754944e-38, %v986_v4 }
 0x27c   :  { %v990_v10 = vmul.f32 %v968_v58, %v2978_v62  ;;  %v978_v3 = vmul.f32 %v2281_v28, %v977_v1  ;;  %1322 = vmatpush.msra.mxu1 %v3101_v46  ;;  %1342 = vmatpush.msra.mxu2 %v3103_v54  ;;  %v984_v62 = vand.u32 2147483647, %v3169_v36 }
 0x27d   :  { %1362 = vmatpush.msrb.mxu3 %v3105_v48 }
 0x27e   :  { %v3206_v17 = vadd.f32 %v991_v29, %v990_v10  ;;  %v979_v37 = vadd.f32 %v2281_v28, %v978_v3  ;;  %1323 = vmatpush.msra.mxu1 %v3110_v27  ;;  %1343 = vmatpush.msra.mxu2 %v3112_v60  ;;  %vm985_vm3 = vcmp.eq.f32.partialorder %v984_v62, 8.507059e+37 }
 0x27f   :  { %1363 = vmatpush.msrb.mxu3 %v3114_v14 }
 0x280   :  { %2284 = vtanh.f32 %v3206_v17  ;;  %1324 = vmatpush.msra.mxu1 %v3118_v49  ;;  %v983_v57 = vsel %vm982_vm2, %v2281_v28, %v979_v37  ;;  %1344 = vmatpush.msra.mxu2 %v3120_v25 }
 0x281   :  { %1364 = vmatpush.msrb.mxu3 %v3122_v31  ;;  %v988_v50 = vsel %vm985_vm3, %v987_v52, %v983_v57 }
 0x282   :  { %1325 = vmatpush.msra.mxu1 %v3125_v41  ;;  %1345 = vmatpush.msra.mxu2 %v3127_v40 }
 0x283   :  { %1365 = vmatpush.msrb.mxu3 %v3131_v39 }
 0x284   :  { %1326 = vmatpush.msra.mxu1 %v3135_v7  ;;  %1346 = vmatpush.msra.mxu2 %v3137_v12 }
 0x285   :  { %1366 = vmatpush.msrb.mxu3 %v3141_v26 }
 0x286   :  { %v2285_v34 = vpop.eup %2284  ;;  %1327 = vmatpush.msra.mxu1 %v3144_v33  ;;  %1347 = vmatpush.msra.mxu2 %v3146_v8 }
 0x287   :  { %v3225_v36 = vmul.f32 %v2285_v34, %v988_v50  ;;  %1367 = vmatpush.msrb.mxu3 %v3150_v11  ;;  %v3301_v50 = vld [vmem:[#allocation8 + $0x1c0] sm:$0xff] }
 0x289   :  { %1086 = vmatmul.f32.vlgmr.msrb.gmra.mxu0 %v3225_v36  ;;  %1106 = vmatmul.f32.vlgmr.msrb.gmra.mxu1 %v3225_v36 }
 0x28a   :  { %1126 = vmatmul.f32.vlgmr.msrb.gmra.mxu2 %v3225_v36  ;;  %1146 = vmatmul.f32.vlgmr.msra.gmra.mxu3 %v3225_v36 }
 0x28b   :  { %1534 = vmatpush.msrb.mxu1 %v3009_v42  ;;  %1554 = vmatpush.msrb.mxu2 %v3011_v53  ;;  %v3762_v42 = vld [vmem:[#allocation34_spill] sm:$0xff]  ;;  %v3763_v53 = vld [vmem:[#allocation35_spill] sm:$0xff] }
 0x28c   :  { %1574 = vmatpush.msra.mxu3 %v3013_v45  ;;  %v3764_v45 = vld [vmem:[#allocation36_spill] sm:$0xff] }
 0x28d   :  { %1535 = vmatpush.msrb.mxu1 %v3018_v5  ;;  %1555 = vmatpush.msrb.mxu2 %v3020_v61  ;;  %v3765_v5 = vld [vmem:[#allocation37_spill] sm:$0xff] }
 0x28e   :  { %1575 = vmatpush.msra.mxu3 %v3022_v9 }
 0x28f   :  { %1536 = vmatpush.msrb.mxu1 %v3027_v16  ;;  %1556 = vmatpush.msrb.mxu2 %v3029_v32  ;;  %v3766_v16 = vld [vmem:[#allocation15_spill] sm:$0xff]  ;;  %v3767_v32 = vld [vmem:[#allocation21_spill] sm:$0xff] }
 0x290   :  { %1576 = vmatpush.msra.mxu3 %v3031_v18 }
 0x291   :  { %1537 = vmatpush.msrb.mxu1 %v3036_v35  ;;  %1557 = vmatpush.msrb.mxu2 %v3038_v30  ;;  %v3768_v30 = vld [vmem:[#allocation17_spill] sm:$0xff] }
 0x292   :  { %1577 = vmatpush.msra.mxu3 %v3040_v20 }
 0x293   :  { %1538 = vmatpush.msrb.mxu1 %v3045_v51  ;;  %1558 = vmatpush.msrb.mxu2 %v3047_v59 }
 0x294   :  { %1578 = vmatpush.msra.mxu3 %v3049_v15 }
 0x295   :  { %1539 = vmatpush.msrb.mxu1 %v3054_v19  ;;  %1559 = vmatpush.msrb.mxu2 %v3762_v42  ;;  %v3304_v42 = vld [vmem:[#allocation8 + $0x1a0] sm:$0xff] }
 0x296   :  { %1579 = vmatpush.msra.mxu3 %v3763_v53  ;;  %v3307_v53 = vld [vmem:[#allocation8 + $0x180] sm:$0xff] }
 0x297   :  { %1540 = vmatpush.msrb.mxu1 %v3764_v45  ;;  %1560 = vmatpush.msrb.mxu2 %v3065_v24  ;;  %v3310_v45 = vld [vmem:[#allocation8 + $0x160] sm:$0xff] }
 0x298   :  { %1580 = vmatpush.msra.mxu3 %v3765_v5  ;;  %v3313_v5 = vld [vmem:[#allocation8 + $0x140] sm:$0xff] }
 0x299   :  { %1541 = vmatpush.msrb.mxu1 %v3072_v56  ;;  %1561 = vmatpush.msrb.mxu2 %v3074_v63  ;;  %v3769_v63 = vld [vmem:[#allocation22_spill] sm:$0xff] }
 0x29a   :  { %1581 = vmatpush.msra.mxu3 %v3076_v0 }
 0x29b   :  { %1542 = vmatpush.msrb.mxu1 %v3081_v21  ;;  %1562 = vmatpush.msrb.mxu2 %v3083_v22 }
 0x29c   :  { %1582 = vmatpush.msra.mxu3 %v3085_v44 }
 0x29d   :  { %1543 = vmatpush.msrb.mxu1 %v3090_v38  ;;  %1563 = vmatpush.msrb.mxu2 %v3092_v2 }
 0x29e   :  { %1583 = vmatpush.msra.mxu3 %v3094_v47 }
 0x29f   :  { %1544 = vmatpush.msrb.mxu1 %v3101_v46  ;;  %1564 = vmatpush.msrb.mxu2 %v3103_v54 }
 0x2a0   :  { %1584 = vmatpush.msra.mxu3 %v3105_v48 }
 0x2a1   :  { %1545 = vmatpush.msrb.mxu1 %v3110_v27  ;;  %1565 = vmatpush.msrb.mxu2 %v3112_v60 }
 0x2a2   :  { %1585 = vmatpush.msra.mxu3 %v3114_v14 }
 0x2a3   :  { %1546 = vmatpush.msrb.mxu1 %v3118_v49  ;;  %1566 = vmatpush.msrb.mxu2 %v3120_v25 }
 0x2a4   :  { %1586 = vmatpush.msra.mxu3 %v3122_v31 }
 0x2a5   :  { %1547 = vmatpush.msrb.mxu1 %v3125_v41  ;;  %1567 = vmatpush.msrb.mxu2 %v3127_v40 }
 0x2a6   :  { %1587 = vmatpush.msra.mxu3 %v3131_v39 }
 0x2a7   :  { %1548 = vmatpush.msrb.mxu1 %v3135_v7  ;;  %1568 = vmatpush.msrb.mxu2 %v3137_v12 }
 0x2a8   :  { %1588 = vmatpush.msra.mxu3 %v3141_v26 }
 0x2a9   :  { %1549 = vmatpush.msrb.mxu1 %v3144_v33  ;;  %1569 = vmatpush.msrb.mxu2 %v3146_v8 }
 0x2aa   :  { %1589 = vmatpush.msra.mxu3 %v3150_v11 }
 0x306   :  { %v1087_v61 = vpop.f32.mrf.mxu0  ;;  %v1107_v9 = vpop.f32.mrf.mxu1 }
 0x307   :  { %v1150_v41 = vadd.f32 %v1087_v61, %v3766_v16  ;;  %v1151_v40 = vadd.f32 %v1107_v9, %v3767_v32  ;;  %v3316_v61 = vld [vmem:[#allocation8 + $0x120] sm:$0xff] }
 0x308   :  { %v3319_v9 = vld [vmem:[#allocation8 + $0x100] sm:$0xff] }
 0x309   :  { %v2201_v18 = vmul.f32 -1.442695, %v1150_v41  ;;  %v2202_v35 = vmul.f32 -1.442695, %v1151_v40  ;;  %v3322_v16 = vld [vmem:[#allocation8 + $0xe0] sm:$0xff] }
 0x30a   :  { %v3325_v40 = vld [vmem:[#allocation8 + $0xc0] sm:$0xff] }
 0x30b   :  { %2286 = vpow2.f32 %v2201_v18  ;;  %v3770_v18 = vld [vmem:[#allocation12_spill] sm:$0xff] }
 0x30c   :  { %2288 = vpow2.f32 %v2202_v35 }
 0x30d   :  { %v1147_v7 = vpop.f32.mrf.mxu3  ;;  %v1127_v15 = vpop.f32.mrf.mxu2 }
 0x30e   :  { %v1153_v20 = vadd.f32 %v1147_v7, %v3768_v30  ;;  %v1152_v0 = vadd.f32 %v1127_v15, %v3769_v63  ;;  %v3771_v7 = vld [vmem:[#allocation24_spill] sm:$0xff] }
 0x310   :  { %v2203_v26 = vmul.f32 -1.442695, %v1153_v20  ;;  %v3330_v20 = vld [vmem:[#allocation8 + $0xa0] sm:$0xff] }
 0x311   :  { %v2287_v51 = vpop.eup %2286 }
 0x312   :  { %v2289_v33 = vpop.eup %2288  ;;  %v1157_v59 = vadd.f32 1.0, %v2287_v51  ;;  %2290 = vpow2.f32 %v2203_v26 }
 0x313   :  { %v1176_v8 = vadd.f32 1.0, %v2289_v33  ;;  %v3333_v33 = vld [vmem:[#allocation8 + $0x80] sm:$0xff] }
 0x314   :  { %2292 = vrcp.f32 %v1157_v59  ;;  %v1169_v47 = vand.u32 2147483648, %v1157_v59  ;;  %v1167_v48 = vand.u32 2147483647, %v1157_v59  ;;  %vm1163_vm6 = vweird.f32 %v1157_v59 }
 0x315   :  { %2294 = vrcp.f32 %v1176_v8  ;;  %v1188_v46 = vand.u32 2147483648, %v1176_v8  ;;  %v1186_v60 = vand.u32 2147483647, %v1176_v8  ;;  %vm1182_vm7 = vweird.f32 %v1176_v8 }
 0x316   :  { %v1170_v25 = vor.u32 1.1754944e-38, %v1169_v47  ;;  %vm1168_vm10 = vcmp.eq.f32.partialorder %v1167_v48, 8.507059e+37  ;;  %v3773_v48 = vld [vmem:[#allocation25_spill] sm:$0xff] }
 0x317   :  { %v1189_v12 = vor.u32 1.1754944e-38, %v1188_v46  ;;  %vm1187_vm11 = vcmp.eq.f32.partialorder %v1186_v60, 8.507059e+37 }
 0x318   :  { %v2291_v19 = vpop.eup %2290 }
 0x319   :  { %v1196_v24 = vadd.f32 1.0, %v2291_v19  ;;  %v3772_v19 = vld [vmem:[#allocation18_spill] sm:$0xff] }
 0x31a   :  { %v2293_v56 = vpop.eup %2292 }
 0x31b   :  { %v2295_v21 = vpop.eup %2294  ;;  %v1159_v22 = vmul.f32 %v2293_v56, %v1157_v59  ;;  %2296 = vrcp.f32 %v1196_v24  ;;  %vm1164_vm4 = vweird.f32 %v2293_v56  ;;  %v1208_v3 = vand.u32 2147483648, %v1196_v24  ;;  %v3335_v59 = vld [vmem:[#allocation8 + $0x60] sm:$0xff] }
 0x31c   :  { %v1178_v44 = vmul.f32 %v2295_v21, %v1176_v8  ;;  %2298 = vtanh.f32 %v1152_v0  ;;  %vm1183_vm5 = vweird.f32 %v2295_v21  ;;  %vm1165_vm8 = vmor %vm1163_vm6, %vm1164_vm4  ;;  %vm1202_vm13 = vweird.f32 %v1196_v24  ;;  %v3338_v8 = vld [vmem:[#allocation8 + $0x40] sm:$0xff] }
 0x31d   :  { %v1160_v38 = vsub.f32 1.0, %v1159_v22  ;;  %vm1184_vm9 = vmor %vm1182_vm7, %vm1183_vm5  ;;  %v1206_v37 = vand.u32 2147483647, %v1196_v24  ;;  %v1209_v62 = vor.u32 1.1754944e-38, %v1208_v3  ;;  %v3345_v0 = vld [vmem:[#allocation8] sm:$0xff] }
 0x31e   :  { %v1179_v2 = vsub.f32 1.0, %v1178_v44 }
 0x31f   :  { %v1161_v54 = vmul.f32 %v2293_v56, %v1160_v38  ;;  %vm1207_vm15 = vcmp.eq.f32.partialorder %v1206_v37, 8.507059e+37 }
 0x320   :  { %v1180_v27 = vmul.f32 %v2295_v21, %v1179_v2 }
 0x321   :  { %v2297_v14 = vpop.eup %2296  ;;  %v1162_v49 = vadd.f32 %v2293_v56, %v1161_v54 }
 0x322   :  { %v1181_v31 = vadd.f32 %v2295_v21, %v1180_v27  ;;  %v1198_v39 = vmul.f32 %v2297_v14, %v1196_v24  ;;  %v2299_v28 = vpop.eup %2298  ;;  %vm1203_vm12 = vweird.f32 %v2297_v14 }
 0x323   :  { %v1166_v11 = vsel %vm1165_vm8, %v2293_v56, %v1162_v49  ;;  %vm1204_vm14 = vmor %vm1202_vm13, %vm1203_vm12  ;;  %v3342_v56 = vld [vmem:[#allocation8 + $0x20] sm:$0xff] }
 0x324   :  { %v1171_v6 = vsel %vm1168_vm10, %v1170_v25, %v1166_v11  ;;  %v1185_v55 = vsel %vm1184_vm9, %v2295_v21, %v1181_v31  ;;  %v1199_v23 = vsub.f32 1.0, %v1198_v39 }
 0x325   :  { %v1190_v43 = vsel %vm1187_vm11, %v1189_v12, %v1185_v55  ;;  %v1213_v13 = vmul.f32 %v2299_v28, %v1171_v6 }
 0x326   :  { %v1212_v1 = vmul.f32 %v1190_v43, %v3206_v17  ;;  %v1200_v58 = vmul.f32 %v2297_v14, %v1199_v23  ;;  %v3298_v17 = vld [vmem:[#allocation8 + $0x1e0] sm:$0xff] }
 0x327   :  { %1514 = vmatpush.msrb.mxu0 %v3298_v17 }
 0x328   :  { %v3289_v29 = vadd.f32 %v1213_v13, %v1212_v1  ;;  %v1201_v10 = vadd.f32 %v2297_v14, %v1200_v58 }
 0x329   :  { %1515 = vmatpush.msrb.mxu0 %v3301_v50 }
 0x32a   :  { %2300 = vtanh.f32 %v3289_v29  ;;  %v1205_v4 = vsel %vm1204_vm14, %v2297_v14, %v1201_v10 }
 0x32b   :  { %v1210_v52 = vsel %vm1207_vm15, %v1209_v62, %v1205_v4  ;;  %1516 = vmatpush.msrb.mxu0 %v3304_v42 }
 0x32d   :  { %1517 = vmatpush.msrb.mxu0 %v3307_v53 }
 0x32f   :  { %1518 = vmatpush.msrb.mxu0 %v3310_v45 }
 0x330   :  { %v2301_v57 = vpop.eup %2300 }
 0x331   :  { %v3292_v34 = vmul.f32 %v2301_v57, %v1210_v52  ;;  %1519 = vmatpush.msrb.mxu0 %v3313_v5 }
 0x333   :  { %1308 = vmatmul.f32.vlgmr.msra.gmra.mxu0 %v3292_v34  ;;  %1328 = vmatmul.f32.vlgmr.msra.gmra.mxu1 %v3292_v34 }
 0x334   :  { %1348 = vmatmul.f32.vlgmr.msra.gmra.mxu2 %v3292_v34  ;;  %1368 = vmatmul.f32.vlgmr.msrb.gmra.mxu3 %v3292_v34 }
 0x335   :  { %1520 = vmatpush.msrb.mxu0 %v3316_v61 }
 0x337   :  { %1521 = vmatpush.msrb.mxu0 %v3319_v9 }
 0x339   :  { %1522 = vmatpush.msrb.mxu0 %v3322_v16 }
 0x33b   :  { %1523 = vmatpush.msrb.mxu0 %v3325_v40 }
 0x33d   :  { %1524 = vmatpush.msrb.mxu0 %v3330_v20 }
 0x33f   :  { %1525 = vmatpush.msrb.mxu0 %v3333_v33 }
 0x341   :  { %1526 = vmatpush.msrb.mxu0 %v3335_v59 }
 0x343   :  { %1527 = vmatpush.msrb.mxu0 %v3338_v8 }
 0x345   :  { %1528 = vmatpush.msrb.mxu0 %v3342_v56 }
 0x347   :  { %1529 = vmatpush.msrb.mxu0 %v3345_v0 }
 0x349   :  { %1736 = vmatpush.msra.mxu0 %v3298_v17 }
 0x34b   :  { %1737 = vmatpush.msra.mxu0 %v3301_v50 }
 0x34d   :  { %1738 = vmatpush.msra.mxu0 %v3304_v42 }
 0x34f   :  { %1739 = vmatpush.msra.mxu0 %v3307_v53 }
 0x351   :  { %1740 = vmatpush.msra.mxu0 %v3310_v45 }
 0x353   :  { %1741 = vmatpush.msra.mxu0 %v3313_v5 }
 0x355   :  { %1742 = vmatpush.msra.mxu0 %v3316_v61 }
 0x357   :  { %1743 = vmatpush.msra.mxu0 %v3319_v9 }
 0x359   :  { %1744 = vmatpush.msra.mxu0 %v3322_v16 }
 0x35b   :  { %1745 = vmatpush.msra.mxu0 %v3325_v40 }
 0x35d   :  { %1746 = vmatpush.msra.mxu0 %v3330_v20 }
 0x35f   :  { %1747 = vmatpush.msra.mxu0 %v3333_v33 }
 0x361   :  { %1748 = vmatpush.msra.mxu0 %v3335_v59 }
 0x363   :  { %1749 = vmatpush.msra.mxu0 %v3338_v8 }
 0x365   :  { %1750 = vmatpush.msra.mxu0 %v3342_v56 }
 0x367   :  { %1751 = vmatpush.msra.mxu0 %v3345_v0 }
 0x3b0   :  { %v1309_v41 = vpop.f32.mrf.mxu0  ;;  %v1329_v32 = vpop.f32.mrf.mxu1 }
 0x3b1   :  { %v1372_v35 = vadd.f32 %v1309_v41, %v3770_v18  ;;  %v1373_v30 = vadd.f32 %v1329_v32, %v3771_v7 }
 0x3b3   :  { %v2204_v26 = vmul.f32 -1.442695, %v1372_v35  ;;  %v2205_v51 = vmul.f32 -1.442695, %v1373_v30 }
 0x3b5   :  { %2302 = vpow2.f32 %v2204_v26 }
 0x3b6   :  { %2304 = vpow2.f32 %v2205_v51 }
 0x3b7   :  { %v1369_v15 = vpop.f32.mrf.mxu3  ;;  %v1349_v2 = vpop.f32.mrf.mxu2 }
 0x3b8   :  { %v1375_v24 = vadd.f32 %v1369_v15, %v3772_v19  ;;  %v1374_v27 = vadd.f32 %v1349_v2, %v3773_v48  ;;  %v3455_v2 = vld [vmem:[#allocation8 + $0x108] sm:$0xff]  ;;  %v3466_v48 = vld [vmem:[#allocation8 + $0xf0] sm:$0xff] }
 0x3ba   :  { %v2206_v63 = vmul.f32 -1.442695, %v1375_v24 }
 0x3bb   :  { %v2303_v21 = vpop.eup %2302 }
 0x3bc   :  { %v2305_v22 = vpop.eup %2304  ;;  %v1379_v44 = vadd.f32 1.0, %v2303_v21  ;;  %2306 = vpow2.f32 %v2206_v63  ;;  %v3437_v63 = vld [vmem:[#allocation8 + $0x148] sm:$0xff]  ;;  %v3441_v21 = vld [vmem:[#allocation8 + $0x158] sm:$0xff] }
 0x3bd   :  { %v1398_v38 = vadd.f32 1.0, %v2305_v22  ;;  %v3446_v22 = vld [vmem:[#allocation8 + $0x128] sm:$0xff] }
 0x3be   :  { %2308 = vrcp.f32 %v1379_v44  ;;  %v1391_v39 = vand.u32 2147483648, %v1379_v44  ;;  %v1389_v28 = vand.u32 2147483647, %v1379_v44  ;;  %vm1385_vm2 = vweird.f32 %v1379_v44 }
 0x3bf   :  { %2310 = vrcp.f32 %v1398_v38  ;;  %v1410_v12 = vand.u32 2147483648, %v1398_v38  ;;  %v1408_v55 = vand.u32 2147483647, %v1398_v38  ;;  %vm1404_vm3 = vweird.f32 %v1398_v38 }
 0x3c0   :  { %v1392_v13 = vor.u32 1.1754944e-38, %v1391_v39  ;;  %vm1390_vm6 = vcmp.eq.f32.partialorder %v1389_v28, 8.507059e+37  ;;  %v3774_v39 = vld [vmem:[#allocation13_spill] sm:$0xff] }
 0x3c1   :  { %v1411_v10 = vor.u32 1.1754944e-38, %v1410_v12  ;;  %vm1409_vm7 = vcmp.eq.f32.partialorder %v1408_v55, 8.507059e+37  ;;  %v3486_v55 = vld [vmem:[#allocation8 + $0xb0] sm:$0xff] }
 0x3c2   :  { %v2307_v47 = vpop.eup %2306 }
 0x3c3   :  { %v1418_v46 = vadd.f32 1.0, %v2307_v47  ;;  %v3457_v47 = vld [vmem:[#allocation8 + $0x110] sm:$0xff] }
 0x3c4   :  { %v2309_v54 = vpop.eup %2308 }
 0x3c5   :  { %v2311_v60 = vpop.eup %2310  ;;  %v1381_v14 = vmul.f32 %v2309_v54, %v1379_v44  ;;  %2312 = vrcp.f32 %v1418_v46  ;;  %vm1386_vm0 = vweird.f32 %v2309_v54  ;;  %v1430_v30 = vand.u32 2147483648, %v1418_v46  ;;  %v3448_v44 = vld [vmem:[#allocation8 + $0x130] sm:$0xff] }
 0x3c6   :  { %v1400_v49 = vmul.f32 %v2311_v60, %v1398_v38  ;;  %2314 = vtanh.f32 %v1374_v27  ;;  %vm1405_vm1 = vweird.f32 %v2311_v60  ;;  %vm1387_vm4 = vmor %vm1385_vm2, %vm1386_vm0  ;;  %vm1424_vm9 = vweird.f32 %v1418_v46  ;;  %v3450_v38 = vld [vmem:[#allocation8 + $0x138] sm:$0xff] }
 0x3c7   :  { %v1382_v25 = vsub.f32 1.0, %v1381_v14  ;;  %vm1406_vm5 = vmor %vm1404_vm3, %vm1405_vm1  ;;  %v1428_v26 = vand.u32 2147483647, %v1418_v46  ;;  %v1431_v51 = vor.u32 1.1754944e-38, %v1430_v30  ;;  %v3468_v27 = vld [vmem:[#allocation8 + $0xf8] sm:$0xff]  ;;  %v3520_v30 = vld [vmem:[#allocation8 + $0x30] sm:$0xff] }
 0x3c8   :  { %v1401_v31 = vsub.f32 1.0, %v1400_v49  ;;  %v3473_v49 = vld [vmem:[#allocation8 + $0xc8] sm:$0xff] }
 0x3c9   :  { %v1383_v11 = vmul.f32 %v2309_v54, %v1382_v25  ;;  %vm1429_vm11 = vcmp.eq.f32.partialorder %v1428_v26, 8.507059e+37  ;;  %v3475_v25 = vld [vmem:[#allocation8 + $0xd0] sm:$0xff]  ;;  %v3524_v26 = vld [vmem:[#allocation8 + $0x38] sm:$0xff] }
 0x3ca   :  { %v1402_v6 = vmul.f32 %v2311_v60, %v1401_v31  ;;  %v3477_v31 = vld [vmem:[#allocation8 + $0xd8] sm:$0xff] }
 0x3cb   :  { %v2313_v23 = vpop.eup %2312  ;;  %v1384_v43 = vadd.f32 %v2309_v54, %v1383_v11  ;;  %v3775_v11 = vld [vmem:[#allocation26_spill] sm:$0xff] }
 0x3cc   :  { %v1403_v1 = vadd.f32 %v2311_v60, %v1402_v6  ;;  %v1420_v58 = vmul.f32 %v2313_v23, %v1418_v46  ;;  %v2315_v37 = vpop.eup %2314  ;;  %vm1425_vm8 = vweird.f32 %v2313_v23  ;;  %v3459_v46 = vld [vmem:[#allocation8 + $0x118] sm:$0xff]  ;;  %v3484_v6 = vld [vmem:[#allocation8 + $0xa8] sm:$0xff] }
 0x3cd   :  { %v1388_v3 = vsel %vm1387_vm4, %v2309_v54, %v1384_v43  ;;  %vm1426_vm10 = vmor %vm1424_vm9, %vm1425_vm8  ;;  %v3464_v54 = vld [vmem:[#allocation8 + $0xe8] sm:$0xff] }
 0x3ce   :  { %v1393_v4 = vsel %vm1390_vm6, %v1392_v13, %v1388_v3  ;;  %v1407_v62 = vsel %vm1406_vm5, %v2311_v60, %v1403_v1  ;;  %v1421_v57 = vsub.f32 1.0, %v1420_v58  ;;  %v3493_v1 = vld [vmem:[#allocation8 + $0x88] sm:$0xff]  ;;  %v3495_v58 = vld [vmem:[#allocation8 + $0x90] sm:$0xff] }
 0x3cf   :  { %v1412_v52 = vsel %vm1409_vm7, %v1411_v10, %v1407_v62  ;;  %v1435_v41 = vmul.f32 %v2315_v37, %v1393_v4  ;;  %v3497_v10 = vld [vmem:[#allocation8 + $0x98] sm:$0xff]  ;;  %v3501_v3 = vld [vmem:[#allocation8 + $0x68] sm:$0xff]  ;;  %v3503_v37 = vld [vmem:[#allocation8 + $0x70] sm:$0xff] }
 0x3d0   :  { %v1434_v32 = vmul.f32 %v1412_v52, %v3289_v29  ;;  %v1422_v18 = vmul.f32 %v2313_v23, %v1421_v57  ;;  %v3505_v4 = vld [vmem:[#allocation8 + $0x78] sm:$0xff]  ;;  %v3508_v62 = vld [vmem:[#allocation8 + $0x48] sm:$0xff]  ;;  %v3510_v57 = vld [vmem:[#allocation8 + $0x50] sm:$0xff] }
 0x3d2   :  { %v3361_v35 = vadd.f32 %v1435_v41, %v1434_v32  ;;  %v1423_v7 = vadd.f32 %v2313_v23, %v1422_v18  ;;  %v3514_v41 = vld [vmem:[#allocation8 + $0x58] sm:$0xff] }
 0x3d3   :  { %v3776_v32 = vld [vmem:[#allocation19_spill] sm:$0xff] }
 0x3d4   :  { %2316 = vtanh.f32 %v3361_v35  ;;  %v1427_v29 = vsel %vm1426_vm10, %v2313_v23, %v1423_v7  ;;  %v3488_v23 = vld [vmem:[#allocation8 + $0xb8] sm:$0xff]  ;;  %v3518_v7 = vld [vmem:[#allocation8 + $0x28] sm:$0xff] }
 0x3d5   :  { %v1432_v19 = vsel %vm1429_vm11, %v1431_v51, %v1427_v29  ;;  %v3527_v51 = vld [vmem:[#allocation8 + $0x8] sm:$0xff] }
 0x3da   :  { %v2317_v15 = vpop.eup %2316 }
 0x3db   :  { %v3369_v24 = vmul.f32 %v2317_v15, %v1432_v19  ;;  %v3529_v15 = vld [vmem:[#allocation8 + $0x10] sm:$0xff] }
 0x3dd   :  { %1530 = vmatmul.f32.vlgmr.msrb.gmra.mxu0 %v3369_v24  ;;  %1550 = vmatmul.f32.vlgmr.msrb.gmra.mxu1 %v3369_v24 }
 0x3de   :  { %1570 = vmatmul.f32.vlgmr.msrb.gmra.mxu2 %v3369_v24  ;;  %1590 = vmatmul.f32.vlgmr.msra.gmra.mxu3 %v3369_v24 }
 0x3df   :  { %1958 = vmatpush.msrb.mxu0 %v3298_v17  ;;  %v3392_v17 = vld [vmem:[#allocation8 + $0x1e8] sm:$0xff] }
 0x3e0   :  { %1756 = vmatpush.msra.mxu1 %v3392_v17 }
 0x3e1   :  { %1959 = vmatpush.msrb.mxu0 %v3301_v50  ;;  %v3394_v50 = vld [vmem:[#allocation8 + $0x1f0] sm:$0xff] }
 0x3e2   :  { %1776 = vmatpush.msra.mxu2 %v3394_v50 }
 0x3e3   :  { %1960 = vmatpush.msrb.mxu0 %v3304_v42  ;;  %v3396_v42 = vld [vmem:[#allocation8 + $0x1f8] sm:$0xff] }
 0x3e4   :  { %1796 = vmatpush.msrb.mxu3 %v3396_v42 }
 0x3e5   :  { %1961 = vmatpush.msrb.mxu0 %v3307_v53  ;;  %v3401_v53 = vld [vmem:[#allocation8 + $0x1c8] sm:$0xff] }
 0x3e6   :  { %1757 = vmatpush.msra.mxu1 %v3401_v53 }
 0x3e7   :  { %1962 = vmatpush.msrb.mxu0 %v3310_v45  ;;  %v3403_v45 = vld [vmem:[#allocation8 + $0x1d0] sm:$0xff] }
 0x3e8   :  { %1777 = vmatpush.msra.mxu2 %v3403_v45 }
 0x3e9   :  { %1963 = vmatpush.msrb.mxu0 %v3313_v5  ;;  %v3405_v5 = vld [vmem:[#allocation8 + $0x1d8] sm:$0xff] }
 0x3ea   :  { %1797 = vmatpush.msrb.mxu3 %v3405_v5 }
 0x3eb   :  { %1964 = vmatpush.msrb.mxu0 %v3316_v61  ;;  %v3410_v61 = vld [vmem:[#allocation8 + $0x1a8] sm:$0xff] }
 0x3ec   :  { %1758 = vmatpush.msra.mxu1 %v3410_v61 }
 0x3ed   :  { %1965 = vmatpush.msrb.mxu0 %v3319_v9  ;;  %v3412_v9 = vld [vmem:[#allocation8 + $0x1b0] sm:$0xff] }
 0x3ee   :  { %1778 = vmatpush.msra.mxu2 %v3412_v9 }
 0x3ef   :  { %1966 = vmatpush.msrb.mxu0 %v3322_v16  ;;  %v3414_v16 = vld [vmem:[#allocation8 + $0x1b8] sm:$0xff] }
 0x3f0   :  { %1798 = vmatpush.msrb.mxu3 %v3414_v16 }
 0x3f1   :  { %1967 = vmatpush.msrb.mxu0 %v3325_v40  ;;  %v3419_v40 = vld [vmem:[#allocation8 + $0x188] sm:$0xff] }
 0x3f2   :  { %1759 = vmatpush.msra.mxu1 %v3419_v40 }
 0x3f3   :  { %1968 = vmatpush.msrb.mxu0 %v3330_v20  ;;  %v3421_v20 = vld [vmem:[#allocation8 + $0x190] sm:$0xff] }
 0x3f4   :  { %1779 = vmatpush.msra.mxu2 %v3421_v20 }
 0x3f5   :  { %1969 = vmatpush.msrb.mxu0 %v3333_v33  ;;  %v3423_v33 = vld [vmem:[#allocation8 + $0x198] sm:$0xff] }
 0x3f6   :  { %1799 = vmatpush.msrb.mxu3 %v3423_v33 }
 0x3f7   :  { %1970 = vmatpush.msrb.mxu0 %v3335_v59  ;;  %v3428_v59 = vld [vmem:[#allocation8 + $0x168] sm:$0xff] }
 0x3f8   :  { %1760 = vmatpush.msra.mxu1 %v3428_v59 }
 0x3f9   :  { %1971 = vmatpush.msrb.mxu0 %v3338_v8  ;;  %v3430_v8 = vld [vmem:[#allocation8 + $0x170] sm:$0xff] }
 0x3fa   :  { %1780 = vmatpush.msra.mxu2 %v3430_v8  ;;  %1761 = vmatpush.msra.mxu1 %v3437_v63 }
 0x3fb   :  { %1972 = vmatpush.msrb.mxu0 %v3342_v56  ;;  %v3432_v56 = vld [vmem:[#allocation8 + $0x178] sm:$0xff] }
 0x3fc   :  { %1800 = vmatpush.msrb.mxu3 %v3432_v56  ;;  %1762 = vmatpush.msra.mxu1 %v3446_v22 }
 0x3fd   :  { %1973 = vmatpush.msrb.mxu0 %v3345_v0  ;;  %v3439_v0 = vld [vmem:[#allocation8 + $0x150] sm:$0xff] }
 0x3fe   :  { %1781 = vmatpush.msra.mxu2 %v3439_v0  ;;  %1801 = vmatpush.msrb.mxu3 %v3441_v21 }
 0x3ff   :  { %1763 = vmatpush.msra.mxu1 %v3455_v2 }
 0x400   :  { %1782 = vmatpush.msra.mxu2 %v3448_v44  ;;  %1802 = vmatpush.msrb.mxu3 %v3450_v38 }
 0x401   :  { %1764 = vmatpush.msra.mxu1 %v3464_v54 }
 0x402   :  { %1783 = vmatpush.msra.mxu2 %v3457_v47  ;;  %1803 = vmatpush.msrb.mxu3 %v3459_v46 }
 0x403   :  { %1765 = vmatpush.msra.mxu1 %v3473_v49 }
 0x404   :  { %1784 = vmatpush.msra.mxu2 %v3466_v48  ;;  %1804 = vmatpush.msrb.mxu3 %v3468_v27 }
 0x405   :  { %1766 = vmatpush.msra.mxu1 %v3484_v6 }
 0x406   :  { %1785 = vmatpush.msra.mxu2 %v3475_v25  ;;  %1805 = vmatpush.msrb.mxu3 %v3477_v31 }
 0x407   :  { %1767 = vmatpush.msra.mxu1 %v3493_v1 }
 0x408   :  { %1786 = vmatpush.msra.mxu2 %v3486_v55  ;;  %1806 = vmatpush.msrb.mxu3 %v3488_v23 }
 0x409   :  { %1768 = vmatpush.msra.mxu1 %v3501_v3 }
 0x40a   :  { %1787 = vmatpush.msra.mxu2 %v3495_v58  ;;  %1807 = vmatpush.msrb.mxu3 %v3497_v10 }
 0x40b   :  { %1769 = vmatpush.msra.mxu1 %v3508_v62 }
 0x40c   :  { %1788 = vmatpush.msra.mxu2 %v3503_v37  ;;  %1808 = vmatpush.msrb.mxu3 %v3505_v4 }
 0x40d   :  { %1770 = vmatpush.msra.mxu1 %v3518_v7 }
 0x40e   :  { %1789 = vmatpush.msra.mxu2 %v3510_v57  ;;  %1809 = vmatpush.msrb.mxu3 %v3514_v41 }
 0x40f   :  { %1771 = vmatpush.msra.mxu1 %v3527_v51 }
 0x410   :  { %1790 = vmatpush.msra.mxu2 %v3520_v30  ;;  %1810 = vmatpush.msrb.mxu3 %v3524_v26 }
 0x411   :  { %1978 = vmatpush.msrb.mxu1 %v3392_v17 }
 0x412   :  { %1791 = vmatpush.msra.mxu2 %v3529_v15 }
 0x413   :  { %1979 = vmatpush.msrb.mxu1 %v3401_v53 }
 0x414   :  { %1998 = vmatpush.msrb.mxu2 %v3394_v50  ;;  %v3777_v50 = vld [vmem:[#allocation27_spill] sm:$0xff] }
 0x415   :  { %1980 = vmatpush.msrb.mxu1 %v3410_v61 }
 0x416   :  { %1999 = vmatpush.msrb.mxu2 %v3403_v45 }
 0x417   :  { %1981 = vmatpush.msrb.mxu1 %v3419_v40 }
 0x418   :  { %2000 = vmatpush.msrb.mxu2 %v3412_v9 }
 0x419   :  { %1982 = vmatpush.msrb.mxu1 %v3428_v59 }
 0x41a   :  { %2001 = vmatpush.msrb.mxu2 %v3421_v20 }
 0x41b   :  { %1983 = vmatpush.msrb.mxu1 %v3437_v63 }
 0x41c   :  { %2002 = vmatpush.msrb.mxu2 %v3430_v8 }
 0x41d   :  { %1984 = vmatpush.msrb.mxu1 %v3446_v22 }
 0x41e   :  { %2003 = vmatpush.msrb.mxu2 %v3439_v0 }
 0x41f   :  { %1985 = vmatpush.msrb.mxu1 %v3455_v2 }
 0x420   :  { %2004 = vmatpush.msrb.mxu2 %v3448_v44 }
 0x421   :  { %1986 = vmatpush.msrb.mxu1 %v3464_v54 }
 0x422   :  { %2005 = vmatpush.msrb.mxu2 %v3457_v47 }
 0x423   :  { %1987 = vmatpush.msrb.mxu1 %v3473_v49 }
 0x424   :  { %2006 = vmatpush.msrb.mxu2 %v3466_v48 }
 0x425   :  { %1988 = vmatpush.msrb.mxu1 %v3484_v6  ;;  %v2132_v6 = vld [vmem:[%s3727_s4 + $0x78] sm:$0xff] }
 0x426   :  { %2007 = vmatpush.msrb.mxu2 %v3475_v25 }
 0x427   :  { %1989 = vmatpush.msrb.mxu1 %v3493_v1  ;;  %v2129_v1 = vld [vmem:[%s3727_s4 + $0x60] sm:$0xff] }
 0x428   :  { %2008 = vmatpush.msrb.mxu2 %v3486_v55  ;;  %v2131_v55 = vld [vmem:[%s3727_s4 + $0x70] sm:$0xff] }
 0x429   :  { %1990 = vmatpush.msrb.mxu1 %v3501_v3 }
 0x42a   :  { %2009 = vmatpush.msrb.mxu2 %v3495_v58  ;;  %v2128_v58 = vld [vmem:[%s3727_s4 + $0x58] sm:$0xff] }
 0x42b   :  { %1991 = vmatpush.msrb.mxu1 %v3508_v62 }
 0x42c   :  { %2010 = vmatpush.msrb.mxu2 %v3503_v37  ;;  %v2127_v37 = vld [vmem:[%s3727_s4 + $0x50] sm:$0xff] }
 0x42d   :  { %1992 = vmatpush.msrb.mxu1 %v3518_v7  ;;  %v2126_v7 = vld [vmem:[%s3727_s4 + $0x48] sm:$0xff] }
 0x42e   :  { %2011 = vmatpush.msrb.mxu2 %v3510_v57  ;;  %v3779_v57 = vld [vmem:[#allocation28_spill] sm:$0xff] }
 0x42f   :  { %1993 = vmatpush.msrb.mxu1 %v3527_v51  ;;  %v2125_v51 = vld [vmem:[%s3727_s4 + $0x40] sm:$0xff] }
 0x430   :  { %2012 = vmatpush.msrb.mxu2 %v3520_v30 }
 0x432   :  { %2013 = vmatpush.msrb.mxu2 %v3529_v15  ;;  %v2124_v15 = vld [vmem:[%s3727_s4 + $0x38] sm:$0xff] }
 0x45a   :  { %v1531_v60 = vpop.f32.mrf.mxu0  ;;  %v1551_v14 = vpop.f32.mrf.mxu1 }
 0x45b   :  { %v1594_v12 = vadd.f32 %v1531_v60, %v3774_v39  ;;  %v1595_v28 = vadd.f32 %v1551_v14, %v3775_v11  ;;  %v3533_v60 = vld [vmem:[#allocation8 + $0x18] sm:$0xff] }
 0x45c   :  { %1811 = vmatpush.msrb.mxu3 %v3533_v60 }
 0x45d   :  { %v2207_v43 = vmul.f32 -1.442695, %v1594_v12  ;;  %v2208_v13 = vmul.f32 -1.442695, %v1595_v28 }
 0x45e   :  { %2018 = vmatpush.msra.mxu3 %v3396_v42 }
 0x45f   :  { %2318 = vpow2.f32 %v2207_v43 }
 0x460   :  { %2320 = vpow2.f32 %v2208_v13  ;;  %2019 = vmatpush.msra.mxu3 %v3405_v5 }
 0x461   :  { %v1591_v52 = vpop.f32.mrf.mxu3  ;;  %v1571_v11 = vpop.f32.mrf.mxu2 }
 0x462   :  { %v1597_v18 = vadd.f32 %v1591_v52, %v3776_v32  ;;  %2020 = vmatpush.msra.mxu3 %v3414_v16  ;;  %v1596_v13 = vadd.f32 %v1571_v11, %v3777_v50 }
 0x464   :  { %v2209_v29 = vmul.f32 -1.442695, %v1597_v18  ;;  %2021 = vmatpush.msra.mxu3 %v3423_v33 }
 0x465   :  { %v2319_v19 = vpop.eup %2318 }
 0x466   :  { %v2321_v14 = vpop.eup %2320  ;;  %v3535_v39 = vadd.f32 1.0, %v2319_v19  ;;  %2322 = vpow2.f32 %v2209_v29  ;;  %2022 = vmatpush.msra.mxu3 %v3432_v56 }
 0x467   :  { %v3538_v12 = vadd.f32 1.0, %v2321_v14 }
 0x468   :  { %2324 = vrcp.f32 %v3535_v39  ;;  %v1613_v9 = vand.u32 2147483648, %v3535_v39  ;;  %v1611_v20 = vand.u32 2147483647, %v3535_v39  ;;  %2023 = vmatpush.msra.mxu3 %v3441_v21  ;;  %vm1607_vm14 = vweird.f32 %v3535_v39 }
 0x469   :  { %2326 = vrcp.f32 %v3538_v12  ;;  %v1632_v16 = vand.u32 2147483648, %v3538_v12  ;;  %v1630_v59 = vand.u32 2147483647, %v3538_v12  ;;  %vm1626_vm15 = vweird.f32 %v3538_v12 }
 0x46a   :  { %2024 = vmatpush.msra.mxu3 %v3450_v38  ;;  %v1614_v63 = vor.u32 1.1754944e-38, %v1613_v9  ;;  %vm1612_vm2 = vcmp.eq.f32.partialorder %v1611_v20, 8.507059e+37 }
 0x46b   :  { %v1633_v52 = vor.u32 1.1754944e-38, %v1632_v16  ;;  %vm1631_vm3 = vcmp.eq.f32.partialorder %v1630_v59, 8.507059e+37  ;;  %v3781_v59 = vld [vmem:[#allocation29_spill] sm:$0xff] }
 0x46c   :  { %v2323_v28 = vpop.eup %2322  ;;  %2025 = vmatpush.msra.mxu3 %v3459_v46 }
 0x46d   :  { %v3552_v43 = vadd.f32 1.0, %v2323_v28  ;;  %v2122_v28 = vld [vmem:[%s3727_s4 + $0x28] sm:$0xff] }
 0x46e   :  { %v2325_v17 = vpop.eup %2324  ;;  %2026 = vmatpush.msra.mxu3 %v3468_v27 }
 0x46f   :  { %v2327_v42 = vpop.eup %2326  ;;  %v1603_v53 = vmul.f32 %v2325_v17, %v3535_v39  ;;  %2328 = vrcp.f32 %v3552_v43  ;;  %vm1608_vm12 = vweird.f32 %v2325_v17  ;;  %vm1646_vm5 = vweird.f32 %v3552_v43 }
 0x470   :  { %v1622_v45 = vmul.f32 %v2327_v42, %v3538_v12  ;;  %2330 = vtanh.f32 %v1596_v13  ;;  %vm1627_vm13 = vweird.f32 %v2327_v42  ;;  %vm1609_vm0 = vmor %vm1607_vm14, %vm1608_vm12  ;;  %2027 = vmatpush.msra.mxu3 %v3477_v31  ;;  %v1650_v54 = vand.u32 2147483647, %v3552_v43  ;;  %v3780_v12 = vld [vmem:[#allocation20_spill] sm:$0xff] }
 0x471   :  { %v1604_v5 = vsub.f32 1.0, %v1603_v53  ;;  %vm1628_vm1 = vmor %vm1626_vm15, %vm1627_vm13 }
 0x472   :  { %v1623_v61 = vsub.f32 1.0, %v1622_v45  ;;  %2028 = vmatpush.msra.mxu3 %v3488_v23  ;;  %vm1651_vm7 = vcmp.eq.f32.partialorder %v1650_v54, 8.507059e+37  ;;  %v2130_v23 = vld [vmem:[%s3727_s4 + $0x68] sm:$0xff]  ;;  %v2120_v45 = vld [vmem:[%s3727_s4 + $0x18] sm:$0xff] }
 0x473   :  { %v1605_v40 = vmul.f32 %v2325_v17, %v1604_v5  ;;  %v2119_v5 = vld [vmem:[%s3727_s4 + $0x10] sm:$0xff] }
 0x474   :  { %v1624_v33 = vmul.f32 %v2327_v42, %v1623_v61  ;;  %2029 = vmatpush.msra.mxu3 %v3497_v10  ;;  %v2118_v61 = vld [vmem:[%s3727_s4 + $0x8] sm:$0xff] }
 0x475   :  { %v2329_v8 = vpop.eup %2328  ;;  %v1606_v56 = vadd.f32 %v2325_v17, %v1605_v40  ;;  %v2117_v40 = vld [vmem:[%s3727_s4] sm:$0xff] }
 0x476   :  { %v1625_v0 = vadd.f32 %v2327_v42, %v1624_v33  ;;  %v1642_v21 = vmul.f32 %v2329_v8, %v3552_v43  ;;  %v2331_v44 = vpop.eup %2330  ;;  %vm1647_vm4 = vweird.f32 %v2329_v8  ;;  %2030 = vmatpush.msra.mxu3 %v3505_v4  ;;  %v3778_v4 = vld [vmem:[#allocation14_spill] sm:$0xff] }
 0x477   :  { %v1610_v22 = vsel %vm1609_vm0, %v2325_v17, %v1606_v56  ;;  %vm1648_vm6 = vmor %vm1646_vm5, %vm1647_vm4  ;;  %v2121_v17 = vld [vmem:[%s3727_s4 + $0x20] sm:$0xff] }
 0x478   :  { %v1615_v32 = vsel %vm1612_vm2, %v1614_v63, %v1610_v22  ;;  %v1629_v38 = vsel %vm1628_vm1, %v2327_v42, %v1625_v0  ;;  %v1643_v18 = vsub.f32 1.0, %v1642_v21  ;;  %2031 = vmatpush.msra.mxu3 %v3514_v41 }
 0x479   :  { %v1634_v29 = vsel %vm1631_vm3, %v1633_v52, %v1629_v38  ;;  %v1657_v19 = vmul.f32 %v2331_v44, %v1615_v32 }
 0x47a   :  { %v1656_v2 = vmul.f32 %v1634_v29, %v3361_v35  ;;  %v1644_v14 = vmul.f32 %v2329_v8, %v1643_v18  ;;  %v1652_v35 = vand.u32 2147483648, %v3552_v43  ;;  %2032 = vmatpush.msra.mxu3 %v3524_v26 }
 0x47c   :  { %v3589_v47 = vadd.f32 %v1657_v19, %v1656_v2  ;;  %v1645_v46 = vadd.f32 %v2329_v8, %v1644_v14  ;;  %v1653_v27 = vor.u32 1.1754944e-38, %v1652_v35  ;;  %2033 = vmatpush.msra.mxu3 %v3533_v60  ;;  %v2123_v60 = vld [vmem:[%s3727_s4 + $0x30] sm:$0xff] }
 0x47e   :  { %2332 = vtanh.f32 %v3589_v47  ;;  %v1649_v48 = vsel %vm1648_vm6, %v2329_v8, %v1645_v46 }
 0x47f   :  { %v1654_v25 = vsel %vm1651_vm7, %v1653_v27, %v1649_v48 }
 0x484   :  { %v2333_v49 = vpop.eup %2332 }
 0x485   :  { %v3608_v31 = vmul.f32 %v2333_v49, %v1654_v25 }
 0x487   :  { %1752 = vmatmul.f32.vlgmr.msra.gmra.mxu0 %v3608_v31  ;;  %1772 = vmatmul.f32.vlgmr.msra.gmra.mxu1 %v3608_v31 }
 0x488   :  { %1792 = vmatmul.f32.vlgmr.msra.gmra.mxu2 %v3608_v31  ;;  %1812 = vmatmul.f32.vlgmr.msrb.gmra.mxu3 %v3608_v31 }
 0x489   :  { %2137 = vmatpush.msra.mxu0 %v2132_v6 }
 0x48b   :  { %2138 = vmatpush.msra.mxu0 %v2131_v55 }
 0x48d   :  { %2139 = vmatpush.msra.mxu0 %v2130_v23 }
 0x48f   :  { %2140 = vmatpush.msra.mxu0 %v2129_v1 }
 0x491   :  { %2141 = vmatpush.msra.mxu0 %v2128_v58 }
 0x493   :  { %2142 = vmatpush.msra.mxu0 %v2127_v37 }
 0x495   :  { %2143 = vmatpush.msra.mxu0 %v2126_v7 }
 0x497   :  { %2144 = vmatpush.msra.mxu0 %v2125_v51 }
 0x499   :  { %2145 = vmatpush.msra.mxu0 %v2124_v15 }
 0x49b   :  { %2146 = vmatpush.msra.mxu0 %v2123_v60  ;;  %v3784_v60 = vld [vmem:[#allocation16_spill] sm:$0xff] }
 0x49d   :  { %2147 = vmatpush.msra.mxu0 %v2122_v28 }
 0x49f   :  { %2148 = vmatpush.msra.mxu0 %v2121_v17 }
 0x4a1   :  { %2149 = vmatpush.msra.mxu0 %v2120_v45 }
 0x4a3   :  { %2150 = vmatpush.msra.mxu0 %v2119_v5 }
 0x4a5   :  { %2151 = vmatpush.msra.mxu0 %v2118_v61 }
 0x4a7   :  { %2152 = vmatpush.msra.mxu0 %v2117_v40 }
 0x504   :  { %v1753_v10 = vpop.f32.mrf.mxu0  ;;  %v1773_v3 = vpop.f32.mrf.mxu1 }
 0x505   :  { %v1816_v62 = vadd.f32 %v1753_v10, %v3778_v4  ;;  %v1817_v41 = vadd.f32 %v1773_v3, %v3779_v57 }
 0x507   :  { %v2210_v30 = vmul.f32 -1.442695, %v1816_v62  ;;  %v2211_v26 = vmul.f32 -1.442695, %v1817_v41 }
 0x509   :  { %2334 = vpow2.f32 %v2210_v30 }
 0x50a   :  { %2336 = vpow2.f32 %v2211_v26  ;;  %v3783_v26 = vld [vmem:[#allocation33_spill] sm:$0xff] }
 0x50b   :  { %v1813_v39 = vpop.f32.mrf.mxu3  ;;  %v1793_v9 = vpop.f32.mrf.mxu2 }
 0x50c   :  { %v1819_v11 = vadd.f32 %v1813_v39, %v3780_v12  ;;  %v1818_v8 = vadd.f32 %v1793_v9, %v3781_v59  ;;  %v3785_v12 = vld [vmem:[#allocation30_spill] sm:$0xff]  ;;  %v3787_v59 = vld [vmem:[#allocation31_spill] sm:$0xff] }
 0x50e   :  { %v2212_v43 = vmul.f32 -1.442695, %v1819_v11 }
 0x50f   :  { %v2335_v50 = vpop.eup %2334 }
 0x510   :  { %v2337_v13 = vpop.eup %2336  ;;  %v1823_v42 = vadd.f32 1.0, %v2335_v50  ;;  %2338 = vpow2.f32 %v2212_v43 }
 0x511   :  { %v1842_v53 = vadd.f32 1.0, %v2337_v13 }
 0x512   :  { %2340 = vrcp.f32 %v1823_v42  ;;  %v1835_v22 = vand.u32 2147483648, %v1823_v42  ;;  %v1833_v38 = vand.u32 2147483647, %v1823_v42  ;;  %vm1829_vm10 = vweird.f32 %v1823_v42 }
 0x513   :  { %2342 = vrcp.f32 %v1842_v53  ;;  %v1854_v44 = vand.u32 2147483648, %v1842_v53  ;;  %v1852_v29 = vand.u32 2147483647, %v1842_v53  ;;  %vm1848_vm11 = vweird.f32 %v1842_v53 }
 0x514   :  { %v1836_v14 = vor.u32 1.1754944e-38, %v1835_v22  ;;  %vm1834_vm14 = vcmp.eq.f32.partialorder %v1833_v38, 8.507059e+37 }
 0x515   :  { %v1855_v54 = vor.u32 1.1754944e-38, %v1854_v44  ;;  %vm1853_vm15 = vcmp.eq.f32.partialorder %v1852_v29, 8.507059e+37 }
 0x516   :  { %v2339_v16 = vpop.eup %2338 }
 0x517   :  { %v1862_v20 = vadd.f32 1.0, %v2339_v16 }
 0x518   :  { %v2341_v33 = vpop.eup %2340 }
 0x519   :  { %v2343_v56 = vpop.eup %2342  ;;  %v1825_v63 = vmul.f32 %v2341_v33, %v1823_v42  ;;  %2344 = vrcp.f32 %v1862_v20  ;;  %vm1830_vm8 = vweird.f32 %v2341_v33  ;;  %v1874_v37 = vand.u32 2147483648, %v1862_v20 }
 0x51a   :  { %v1844_v0 = vmul.f32 %v2343_v56, %v1842_v53  ;;  %2346 = vtanh.f32 %v1818_v8  ;;  %vm1849_vm9 = vweird.f32 %v2343_v56  ;;  %vm1831_vm12 = vmor %vm1829_vm10, %vm1830_vm8  ;;  %vm1868_vm1 = vweird.f32 %v1862_v20 }
 0x51b   :  { %v1826_v21 = vsub.f32 1.0, %v1825_v63  ;;  %vm1850_vm13 = vmor %vm1848_vm11, %vm1849_vm9  ;;  %v1872_v4 = vand.u32 2147483647, %v1862_v20  ;;  %v1875_v57 = vor.u32 1.1754944e-38, %v1874_v37 }
 0x51c   :  { %v1845_v52 = vsub.f32 1.0, %v1844_v0 }
 0x51d   :  { %v1827_v32 = vmul.f32 %v2341_v33, %v1826_v21  ;;  %vm1873_vm3 = vcmp.eq.f32.partialorder %v1872_v4, 8.507059e+37 }
 0x51e   :  { %v1846_v18 = vmul.f32 %v2343_v56, %v1845_v52 }
 0x51f   :  { %v2345_v19 = vpop.eup %2344  ;;  %v1828_v2 = vadd.f32 %v2341_v33, %v1827_v32 }
 0x520   :  { %v1847_v46 = vadd.f32 %v2343_v56, %v1846_v18  ;;  %v1864_v35 = vmul.f32 %v2345_v19, %v1862_v20  ;;  %v2347_v27 = vpop.eup %2346  ;;  %vm1869_vm0 = vweird.f32 %v2345_v19 }
 0x521   :  { %v1832_v48 = vsel %vm1831_vm12, %v2341_v33, %v1828_v2  ;;  %vm1870_vm2 = vmor %vm1868_vm1, %vm1869_vm0 }
 0x522   :  { %v1837_v49 = vsel %vm1834_vm14, %v1836_v14, %v1832_v48  ;;  %v1851_v25 = vsel %vm1850_vm13, %v2343_v56, %v1847_v46  ;;  %v1865_v6 = vsub.f32 1.0, %v1864_v35 }
 0x523   :  { %v1856_v55 = vsel %vm1853_vm15, %v1855_v54, %v1851_v25  ;;  %v1879_v23 = vmul.f32 %v2347_v27, %v1837_v49 }
 0x524   :  { %v1878_v1 = vmul.f32 %v1856_v55, %v3589_v47  ;;  %v1866_v58 = vmul.f32 %v2345_v19, %v1865_v6  ;;  %v3782_v47 = vld [vmem:[#allocation32_spill] sm:$0xff] }
 0x526   :  { %v3672_v10 = vadd.f32 %v1879_v23, %v1878_v1  ;;  %v1867_v3 = vadd.f32 %v2345_v19, %v1866_v58 }
 0x528   :  { %2348 = vtanh.f32 %v3672_v10  ;;  %v1871_v62 = vsel %vm1870_vm2, %v2345_v19, %v1867_v3 }
 0x529   :  { %v1876_v7 = vsel %vm1873_vm3, %v1875_v57, %v1871_v62 }
 0x52e   :  { %v2349_v41 = vpop.eup %2348 }
 0x52f   :  { %v1882_v30 = vmul.f32 %v2349_v41, %v1876_v7 }
 0x531   :  { %1974 = vmatmul.f32.vlgmr.msrb.gmra.mxu0 %v1882_v30  ;;  %1994 = vmatmul.f32.vlgmr.msrb.gmra.mxu1 %v1882_v30 }
 0x532   :  { %2014 = vmatmul.f32.vlgmr.msrb.gmra.mxu2 %v1882_v30  ;;  %2034 = vmatmul.f32.vlgmr.msra.gmra.mxu3 %v1882_v30 }
 0x539   :  { %2153 = vmatmul.f32.vlgmr.msra.gmra.mxu0 %v3782_v47 }
 0x541   :  { %2156 = vmatmul.f32.gmra.mxu0 %v3783_v26 }
 0x549   :  { %2159 = vmatmul.f32.gmra.mxu0 %v3225_v36  ;;  %v3686_v36 = vld [vmem:[%s3728_s5] ss:$0 sm:$0xff] }
 0x551   :  { %2162 = vmatmul.f32.gmra.mxu0 %v3292_v34 }
 0x559   :  { %2165 = vmatmul.f32.gmra.mxu0 %v3369_v24  ;;  %v3786_v24 = vld [vmem:[#allocation23_spill] sm:$0xff] }
 0x561   :  { %2168 = vmatmul.f32.gmra.mxu0 %v3608_v31 }
 0x569   :  { %2171 = vmatmul.f32.gmra.mxu0 %v1882_v30 }
 0x5ae   :  { %v1975_v51 = vpop.f32.mrf.mxu0  ;;  %v1995_v15 = vpop.f32.mrf.mxu1 }
 0x5af   :  { %v2038_v39 = vadd.f32 %v1975_v51, %v3784_v60  ;;  %v2039_v11 = vadd.f32 %v1995_v15, %v3785_v12 }
 0x5b1   :  { %v2213_v28 = vmul.f32 -1.442695, %v2038_v39  ;;  %v2214_v43 = vmul.f32 -1.442695, %v2039_v11 }
 0x5b3   :  { %2350 = vpow2.f32 %v2213_v28 }
 0x5b4   :  { %2352 = vpow2.f32 %v2214_v43 }
 0x5b5   :  { %v2035_v34 = vpop.f32.mrf.mxu3  ;;  %v2015_v9 = vpop.f32.mrf.mxu2 }
 0x5b6   :  { %v2041_v17 = vadd.f32 %v2035_v34, %v3786_v24  ;;  %v2154_v31 = vpop.f32.mrf.mxu0  ;;  %v2040_v8 = vadd.f32 %v2015_v9, %v3787_v59 }
 0x5b7   :  { %v2155_v50 = vadd.f32 %v3686_v36, %v2154_v31 }
 0x5b8   :  { %v2215_v13 = vmul.f32 -1.442695, %v2041_v17 }
 0x5b9   :  { %v2351_v42 = vpop.eup %2350  ;;  %2178 = vst [vmem:[%s3729_s6] sm:$0xff] %v2155_v50 }
 0x5ba   :  { %v2353_v53 = vpop.eup %2352  ;;  %v2045_v45 = vadd.f32 1.0, %v2351_v42  ;;  %2354 = vpow2.f32 %v2215_v13 }
 0x5bb   :  { %v2064_v5 = vadd.f32 1.0, %v2353_v53 }
 0x5bc   :  { %2356 = vrcp.f32 %v2045_v45  ;;  %v2055_v22 = vand.u32 2147483647, %v2045_v45  ;;  %v2057_v44 = vand.u32 2147483648, %v2045_v45  ;;  %vm2051_vm6 = vweird.f32 %v2045_v45 }
 0x5bd   :  { %2358 = vrcp.f32 %v2064_v5  ;;  %v2076_v38 = vand.u32 2147483648, %v2064_v5  ;;  %v2074_v2 = vand.u32 2147483647, %v2064_v5  ;;  %vm2070_vm7 = vweird.f32 %v2064_v5 }
 0x5be   :  { %v2157_v61 = vpop.f32.mrf.mxu0  ;;  %v2058_v35 = vor.u32 1.1754944e-38, %v2057_v44  ;;  %vm2056_vm9 = vcmp.eq.f32.partialorder %v2055_v22, 8.507059e+37 }
 0x5bf   :  { %v2158_v16 = vadd.f32 %v3686_v36, %v2157_v61  ;;  %v2077_v27 = vor.u32 1.1754944e-38, %v2076_v38  ;;  %vm2075_vm11 = vcmp.eq.f32.partialorder %v2074_v2, 8.507059e+37 }
 0x5c0   :  { %v2355_v40 = vpop.eup %2354 }
 0x5c1   :  { %v2084_v20 = vadd.f32 1.0, %v2355_v40  ;;  %2179 = vst [vmem:[%s3729_s6 + $0x8] sm:$0xff] %v2158_v16 }
 0x5c2   :  { %v2357_v33 = vpop.eup %2356 }
 0x5c3   :  { %v2359_v56 = vpop.eup %2358  ;;  %v2047_v63 = vmul.f32 %v2357_v33, %v2045_v45  ;;  %2360 = vrcp.f32 %v2084_v20  ;;  %vm2052_vm4 = vweird.f32 %v2357_v33  ;;  %v2096_v7 = vand.u32 2147483648, %v2084_v20 }
 0x5c4   :  { %v2066_v0 = vmul.f32 %v2359_v56, %v2064_v5  ;;  %2362 = vtanh.f32 %v2040_v8  ;;  %vm2071_vm5 = vweird.f32 %v2359_v56  ;;  %vm2053_vm8 = vmor %vm2051_vm6, %vm2052_vm4  ;;  %vm2090_vm13 = vweird.f32 %v2084_v20 }
 0x5c5   :  { %v2048_v21 = vsub.f32 1.0, %v2047_v63  ;;  %vm2072_vm10 = vmor %vm2070_vm7, %vm2071_vm5  ;;  %v2094_v30 = vand.u32 2147483647, %v2084_v20  ;;  %v2097_v51 = vor.u32 1.1754944e-38, %v2096_v7 }
 0x5c6   :  { %v2067_v52 = vsub.f32 1.0, %v2066_v0  ;;  %v2160_v32 = vpop.f32.mrf.mxu0 }
 0x5c7   :  { %v2049_v18 = vmul.f32 %v2357_v33, %v2048_v21  ;;  %v2161_v29 = vadd.f32 %v3686_v36, %v2160_v32  ;;  %vm2095_vm15 = vcmp.eq.f32.partialorder %v2094_v30, 8.507059e+37 }
 0x5c8   :  { %v2068_v19 = vmul.f32 %v2359_v56, %v2067_v52 }
 0x5c9   :  { %v2361_v14 = vpop.eup %2360  ;;  %v2050_v46 = vadd.f32 %v2357_v33, %v2049_v18  ;;  %2180 = vst [vmem:[%s3729_s6 + $0x10] sm:$0xff] %v2161_v29 }
 0x5ca   :  { %v2069_v54 = vadd.f32 %v2359_v56, %v2068_v19  ;;  %v2086_v48 = vmul.f32 %v2361_v14, %v2084_v20  ;;  %v2363_v25 = vpop.eup %2362  ;;  %vm2091_vm12 = vweird.f32 %v2361_v14 }
 0x5cb   :  { %v2054_v49 = vsel %vm2053_vm8, %v2357_v33, %v2050_v46  ;;  %vm2092_vm14 = vmor %vm2090_vm13, %vm2091_vm12 }
 0x5cc   :  { %v2059_v6 = vsel %vm2056_vm9, %v2058_v35, %v2054_v49  ;;  %v2073_v55 = vsel %vm2072_vm10, %v2359_v56, %v2069_v54  ;;  %v2087_v23 = vsub.f32 1.0, %v2086_v48 }
 0x5cd   :  { %v2101_v1 = vmul.f32 %v2363_v25, %v2059_v6  ;;  %v2078_v58 = vsel %vm2075_vm11, %v2077_v27, %v2073_v55 }
 0x5ce   :  { %v2163_v3 = vpop.f32.mrf.mxu0  ;;  %v2088_v37 = vmul.f32 %v2361_v14, %v2087_v23  ;;  %v2100_v4 = vmul.f32 %v2078_v58, %v3672_v10 }
 0x5cf   :  { %v2164_v62 = vadd.f32 %v3686_v36, %v2163_v3 }
 0x5d0   :  { %v2102_v57 = vadd.f32 %v2101_v1, %v2100_v4  ;;  %v2089_v41 = vadd.f32 %v2361_v14, %v2088_v37 }
 0x5d1   :  { %2181 = vst [vmem:[%s3729_s6 + $0x18] sm:$0xff] %v2164_v62 }
 0x5d2   :  { %2364 = vtanh.f32 %v2102_v57  ;;  %v2093_v47 = vsel %vm2092_vm14, %v2361_v14, %v2089_v41 }
 0x5d3   :  { %v2098_v60 = vsel %vm2095_vm15, %v2097_v51, %v2093_v47 }
 0x5d6   :  { %v2166_v26 = vpop.f32.mrf.mxu0 }
 0x5d7   :  { %v2167_v15 = vadd.f32 %v3686_v36, %v2166_v26 }
 0x5d8   :  { %v2365_v10 = vpop.eup %2364 }
 0x5d9   :  { %2182 = vst [vmem:[%s3729_s6 + $0x20] sm:$0xff] %v2167_v15  ;;  %v2104_v39 = vmul.f32 %v2365_v10, %v2098_v60 }
 0x5db   :  { %2174 = vmatmul.f32.gmra.mxu0 %v2104_v39 }
 0x5de   :  { %v2169_v12 = vpop.f32.mrf.mxu0 }
 0x5df   :  { %v2170_v11 = vadd.f32 %v3686_v36, %v2169_v12 }
 0x5e1   :  { %2183 = vst [vmem:[%s3729_s6 + $0x28] sm:$0xff] %v2170_v11 }
 0x5e6   :  { %v2172_v28 = vpop.f32.mrf.mxu0 }
 0x5e7   :  { %v2173_v43 = vadd.f32 %v3686_v36, %v2172_v28 }
 0x5e9   :  { %2184 = vst [vmem:[%s3729_s6 + $0x30] sm:$0xff] %v2173_v43 }
 0x658   :  { %v2175_v34 = vpop.f32.mrf.mxu0 }
 0x659   :  { %v2176_v24 = vadd.f32 %v3686_v36, %v2175_v34 }
 0x65b   :  { %2185 = vst [vmem:[%s3729_s6 + $0x38] sm:$0xff] %v2176_v24 }
 0x65c   :  { %2190 = vsyncpa [#allocation7], 1 }
 0x65d   :  { %2191 = vsyncpa [#allocation9], 1 }

</bundles_post_ra>
